<compile_context>
chip_gen: v7x
topology: tpu7x:2x2x1
jax: 0.10.0
libtpu: 0.0.40
codegen_flags: <defaults>
</compile_context>

<pallas_src>
import functools

import jax
import jax.numpy as jnp
from jax import lax
from jax.experimental import pallas as pl
from jax.experimental.pallas import tpu as pltpu

RATES = (6, 12, 18, 24)
MAXPAD = max(RATES)
LANE = 128


def _round_up(x, m):
    return (x + m - 1) // m * m


def _pick_tile_h(h, target=32):
    """Largest divisor of h that is <= target (band height heuristic)."""
    best = 1
    for d in range(1, h + 1):
        if h % d == 0 and d <= target:
            best = d
    return best


def _aspp_kernel(x_hbm, w_ref, b_ref, o_ref, xband_ref, acc_ref, *,
                 th, w_out, tco):
    # x_hbm   : (N, Hp, Wp, Cpin) bf16, resident in HBM (memory_space=pl.ANY)
    # w_ref   : (36, Cpin, TCO)   bf16, taps stacked as (rate, kh, kw)
    # b_ref   : (1, TCO)          f32, summed biases for this Cout block
    # o_ref   : (1, th, W, TCO)   f32 output band
    # xband_ref: VMEM (th + 2*MAXPAD, Wp, Cpin) bf16 scratch (halo'd band)
    # acc_ref : VMEM (th*W, TCO) f32 scratch accumulator
    n = pl.program_id(0)
    hb = pl.program_id(1)

    band_h = th + 2 * MAXPAD
    h0 = hb * th
    # Halo'd input band: padded rows [hb*th, hb*th + th + 2*MAXPAD).
    pltpu.sync_copy(x_hbm.at[n, pl.ds(h0, band_h), :, :], xband_ref)

    # Start the accumulator at the summed bias -> no separate epilogue add.
    acc_ref[...] = jnp.broadcast_to(b_ref[...], (th * w_out, tco))

    # 4 rates x 9 taps, each a lane-dense (M, Cpin) x (Cpin, TCO) MXU matmul.
    for ri, rate in enumerate(RATES):
        for kh in range(3):
            hs = MAXPAD + (kh - 1) * rate
            for kw in range(3):
                ws = MAXPAD + (kw - 1) * rate
                patch = xband_ref[hs:hs + th, ws:ws + w_out, :]   # (th, W, Cpin)
                lhs = patch.reshape(th * w_out, -1)               # (M, K) 2-D
                t = (ri * 3 + kh) * 3 + kw
                acc_ref[...] += jnp.dot(lhs, w_ref[t],
                                        preferred_element_type=jnp.float32)

    o_ref[0] = acc_ref[...].reshape(th, w_out, tco).astype(o_ref.dtype)


def aspp_forward(x_nchw, weights, biases, *, tile_h=None):
    """x_nchw: (N, Cin, H, W); weights: (R, Cout, Cin, 3, 3); biases: (R, Cout)."""
    N, Cin, H, W = x_nchw.shape
    R, Cout = weights.shape[0], weights.shape[1]
    assert R == len(RATES)

    cpin = _round_up(Cin, LANE)
    cpout = _round_up(Cout, LANE)
    tco = min(cpout, LANE)
    th = tile_h if tile_h is not None else _pick_tile_h(H)
    assert H % th == 0, "tile_h must divide H"

    Hp, Wp = H + 2 * MAXPAD, W + 2 * MAXPAD
    n_hb = H // th
    n_co = cpout // tco
    band_h = th + 2 * MAXPAD

    # ---- wrapper-side layout glue (interface is PyTorch NCHW) ----
    x = jnp.transpose(x_nchw, (0, 2, 3, 1)).astype(jnp.bfloat16)   # NHWC bf16
    x = jnp.pad(x, ((0, 0), (MAXPAD, MAXPAD), (MAXPAD, MAXPAD),
                    (0, cpin - Cin)))                              # lane-dense Cin

    # (R, Cout, Cin, 3, 3) -> (R, 3, 3, Cin, Cout) -> pad -> (36, Cpin, Cpout)
    w = jnp.transpose(weights, (0, 3, 4, 2, 1))
    w = jnp.pad(w, ((0, 0), (0, 0), (0, 0), (0, cpin - Cin), (0, cpout - Cout)))
    w = w.reshape(R * 9, cpin, cpout).astype(jnp.bfloat16)

    # sum(conv_i(x)) adds all biases once per output channel.
    b = jnp.pad(jnp.sum(biases, axis=0), (0, cpout - Cout))
    b = b.reshape(1, cpout).astype(jnp.float32)

    kernel = functools.partial(_aspp_kernel, th=th, w_out=W, tco=tco)

    out_nhwc = pl.pallas_call(
        kernel,
        out_shape=jax.ShapeDtypeStruct((N, H, W, cpout), jnp.float32),
        grid_spec=pltpu.PrefetchScalarGridSpec(
            num_scalar_prefetch=0,
            grid=(N, n_hb, n_co),
            in_specs=[
                pl.BlockSpec(memory_space=pl.ANY),              # x stays in HBM
                pl.BlockSpec((R * 9, cpin, tco), lambda n, hb, co: (0, 0, co)),
                pl.BlockSpec((1, tco), lambda n, hb, co: (0, co)),
            ],
            out_specs=pl.BlockSpec((1, th, W, tco),
                                   lambda n, hb, co: (n, hb, 0, co)),
            scratch_shapes=[
                pltpu.VMEM((band_h, Wp, cpin), jnp.bfloat16),   # halo'd band
                pltpu.VMEM((th * W, tco), jnp.float32),         # accumulator
            ],
        ),
        compiler_params=pltpu.CompilerParams(
            dimension_semantics=("parallel", "parallel", "parallel"),
            vmem_limit_bytes=48 * 1024 * 1024,
        ),
    )(x, w, b)

    out_nhwc = out_nhwc[..., :Cout]                              # drop Cout pad
    return jnp.transpose(out_nhwc, (0, 3, 1, 2))                 # back to NCHW


def aspp_reference(x_nchw, weights, biases):
    """Pure-JAX reference with the same bf16-input / f32-accumulate contract."""
    x = x_nchw.astype(jnp.bfloat16)
    w = weights.astype(jnp.bfloat16)
    out = None
    for ri, rate in enumerate(RATES):
        y = lax.conv_general_dilated(
            x, w[ri],
            window_strides=(1, 1),
            padding=[(rate, rate), (rate, rate)],
            rhs_dilation=(rate, rate),
            dimension_numbers=("NCHW", "OIHW", "NCHW"),
            preferred_element_type=jnp.float32,
        ) + biases[ri][None, :, None, None].astype(jnp.float32)
        out = y if out is None else out + y
    return out


if __name__ == "__main__":
    key = jax.random.PRNGKey(0)
    N, Cin, H, W = 2, 4, 16, 16
    Cout = 8
    R = len(RATES)

    kx, kw, kb = jax.random.split(key, 3)
    x = jax.random.normal(kx, (N, Cin, H, W), dtype=jnp.float32)
    # ASPP._init_weights: weight ~ N(0, 0.01); biases would be 0 at init, use
    # small non-zero values here to exercise the bias path of the forward.
    weights = 0.01 * jax.random.normal(kw, (R, Cout, Cin, 3, 3),
                                       dtype=jnp.float32)
    biases = 0.1 * jax.random.normal(kb, (R, Cout), dtype=jnp.float32)

    # tile_h=8 -> 2 H-bands, exercising the halo'd spatial tiling.
    out = jax.block_until_ready(aspp_forward(x, weights, biases, tile_h=8))
    ref = jax.block_until_ready(aspp_reference(x, weights, biases))

    assert out.shape == (N, Cout, H, W)
    max_err = float(jnp.max(jnp.abs(out - ref)))
    # Both paths use identical bf16 inputs with f32 accumulation; differences
    # are accumulation-order only (~1e-6).
    assert jnp.allclose(out, ref, atol=1e-3, rtol=1e-3), max_err

    print("KERNEL_OK")
</pallas_src>

<mosaic_0001>
module attributes {stable_mosaic.version = 11 : i64} {
  func.func @_aspp_kernel(%arg0: i32, %arg1: i32, %arg2: i32, %arg3: memref<2x64x64x128xbf16, #tpu.memory_space<any>>, %arg4: memref<36x128x128xbf16, #tpu.memory_space<vmem>>, %arg5: memref<1x128xf32, #tpu.memory_space<vmem>>, %arg6: memref<1x8x16x128xf32, #tpu.memory_space<vmem>>, %arg7: memref<56x64x128xbf16, #tpu.memory_space<vmem>>, %arg8: memref<128x128xf32, #tpu.memory_space<vmem>>) attributes {dimension_semantics = [#tpu.dimension_semantics<parallel>, #tpu.dimension_semantics<parallel>, #tpu.dimension_semantics<parallel>], iteration_bounds = array<i64: 2, 2, 1>, scalar_prefetch = 0 : i64, scratch_operands = 2 : i64, tpu.core_type = #tpu.core_type<tc>, window_params = [{}, {transform_indices = @transform_1, window_bounds = array<i64: 36, 128, 128>}, {transform_indices = @transform_2, window_bounds = array<i64: 1, 128>}, {transform_indices = @transform_3, window_bounds = array<i64: 1, 8, 16, 128>}]} {
    %c8_i32 = arith.constant 8 : i32
    %0 = arith.muli %arg1, %c8_i32 : i32
    "tpu.region"() ({
      %298 = tpu.sem_alloc : memref<!tpu.dma_semaphore, #tpu.memory_space<semaphore_mem>>
      %c0_i32 = arith.constant 0 : i32
      %c0_i32_366 = arith.constant 0 : i32
      %299 = tpu.memref_slice %arg3[%arg0, %0, %c0_i32, %c0_i32_366] : memref<2x64x64x128xbf16, #tpu.memory_space<any>> -> memref<1x56x64x128xbf16, #tpu.memory_space<any>>
      %300 = tpu.memref_squeeze %299 : memref<1x56x64x128xbf16, #tpu.memory_space<any>> -> memref<56x64x128xbf16, #tpu.memory_space<any>>
      tpu.enqueue_dma source(%300 : memref<56x64x128xbf16, #tpu.memory_space<any>>) target(%arg7 : memref<56x64x128xbf16, #tpu.memory_space<vmem>>) target_semaphore(%298 : memref<!tpu.dma_semaphore, #tpu.memory_space<semaphore_mem>>)
      %c0_i32_367 = arith.constant 0 : i32
      %c0_i32_368 = arith.constant 0 : i32
      %301 = tpu.memref_slice %arg3[%arg0, %0, %c0_i32_367, %c0_i32_368] : memref<2x64x64x128xbf16, #tpu.memory_space<any>> -> memref<1x56x64x128xbf16, #tpu.memory_space<any>>
      %302 = tpu.memref_squeeze %301 : memref<1x56x64x128xbf16, #tpu.memory_space<any>> -> memref<56x64x128xbf16, #tpu.memory_space<any>>
      tpu.wait_dma2 semaphore(%298 : memref<!tpu.dma_semaphore, #tpu.memory_space<semaphore_mem>>) src(%302 : memref<56x64x128xbf16, #tpu.memory_space<any>>) dst(%arg7 : memref<56x64x128xbf16, #tpu.memory_space<vmem>>)
      tpu.yield
    }) : () -> ()
    %c0 = arith.constant 0 : index
    %c0_0 = arith.constant 0 : index
    %1 = vector.load %arg5[%c0, %c0_0] : memref<1x128xf32, #tpu.memory_space<vmem>>, vector<1x128xf32>
    %2 = vector.shape_cast %1 : vector<1x128xf32> to vector<1x128xf32>
    %3 = vector.broadcast %2 : vector<1x128xf32> to vector<128x128xf32>
    %c0_1 = arith.constant 0 : index
    %c0_2 = arith.constant 0 : index
    %4 = vector.load %arg8[%c0_1, %c0_2] : memref<128x128xf32, #tpu.memory_space<vmem>>, vector<128x128xf32>
    tpu.vector_store %arg8[%c0_1, %c0_2], %3 {strides = array<i32>} : memref<128x128xf32, #tpu.memory_space<vmem>>, vector<128x128xf32>,
    %c18 = arith.constant 18 : index
    %c18_3 = arith.constant 18 : index
    %c0_4 = arith.constant 0 : index
    %5 = vector.load %arg7[%c18, %c18_3, %c0_4] : memref<56x64x128xbf16, #tpu.memory_space<vmem>>, vector<8x16x128xbf16>
    %6 = vector.shape_cast %5 : vector<8x16x128xbf16> to vector<128x128xbf16>
    %c0_5 = arith.constant 0 : index
    %c0_6 = arith.constant 0 : index
    %7 = vector.load %arg8[%c0_5, %c0_6] : memref<128x128xf32, #tpu.memory_space<vmem>>, vector<128x128xf32>
    %c0_7 = arith.constant 0 : index
    %c0_8 = arith.constant 0 : index
    %c0_9 = arith.constant 0 : index
    %8 = vector.load %arg4[%c0_7, %c0_8, %c0_9] : memref<36x128x128xbf16, #tpu.memory_space<vmem>>, vector<1x128x128xbf16>
    %9 = vector.shape_cast %8 : vector<1x128x128xbf16> to vector<128x128xbf16>
    %cst = arith.constant dense<0.000000e+00> : vector<128x128xf32>
    %10 = tpu.matmul %6, %9, %cst {dimension_numbers = #tpu.dot_dimension_numbers<[1], [0], [0], [1], [0, 0, 1, 1], [], []>} : vector<128x128xbf16>, vector<128x128xbf16>, vector<128x128xf32> -> vector<128x128xf32>
    %11 = arith.addf %7, %10 : vector<128x128xf32>
    %c0_10 = arith.constant 0 : index
    %c0_11 = arith.constant 0 : index
    %12 = vector.load %arg8[%c0_10, %c0_11] : memref<128x128xf32, #tpu.memory_space<vmem>>, vector<128x128xf32>
    tpu.vector_store %arg8[%c0_10, %c0_11], %11 {strides = array<i32>} : memref<128x128xf32, #tpu.memory_space<vmem>>, vector<128x128xf32>,
    %c18_12 = arith.constant 18 : index
    %c24 = arith.constant 24 : index
    %c0_13 = arith.constant 0 : index
    %13 = vector.load %arg7[%c18_12, %c24, %c0_13] : memref<56x64x128xbf16, #tpu.memory_space<vmem>>, vector<8x16x128xbf16>
    %14 = vector.shape_cast %13 : vector<8x16x128xbf16> to vector<128x128xbf16>
    %c0_14 = arith.constant 0 : index
    %c0_15 = arith.constant 0 : index
    %15 = vector.load %arg8[%c0_14, %c0_15] : memref<128x128xf32, #tpu.memory_space<vmem>>, vector<128x128xf32>
    %c1 = arith.constant 1 : index
    %c0_16 = arith.constant 0 : index
    %c0_17 = arith.constant 0 : index
    %16 = vector.load %arg4[%c1, %c0_16, %c0_17] : memref<36x128x128xbf16, #tpu.memory_space<vmem>>, vector<1x128x128xbf16>
    %17 = vector.shape_cast %16 : vector<1x128x128xbf16> to vector<128x128xbf16>
    %cst_18 = arith.constant dense<0.000000e+00> : vector<128x128xf32>
    %18 = tpu.matmul %14, %17, %cst_18 {dimension_numbers = #tpu.dot_dimension_numbers<[1], [0], [0], [1], [0, 0, 1, 1], [], []>} : vector<128x128xbf16>, vector<128x128xbf16>, vector<128x128xf32> -> vector<128x128xf32>
    %19 = arith.addf %15, %18 : vector<128x128xf32>
    %c0_19 = arith.constant 0 : index
    %c0_20 = arith.constant 0 : index
    %20 = vector.load %arg8[%c0_19, %c0_20] : memref<128x128xf32, #tpu.memory_space<vmem>>, vector<128x128xf32>
    tpu.vector_store %arg8[%c0_19, %c0_20], %19 {strides = array<i32>} : memref<128x128xf32, #tpu.memory_space<vmem>>, vector<128x128xf32>,
    %c18_21 = arith.constant 18 : index
    %c30 = arith.constant 30 : index
    %c0_22 = arith.constant 0 : index
    %21 = vector.load %arg7[%c18_21, %c30, %c0_22] : memref<56x64x128xbf16, #tpu.memory_space<vmem>>, vector<8x16x128xbf16>
    %22 = vector.shape_cast %21 : vector<8x16x128xbf16> to vector<128x128xbf16>
    %c0_23 = arith.constant 0 : index
    %c0_24 = arith.constant 0 : index
    %23 = vector.load %arg8[%c0_23, %c0_24] : memref<128x128xf32, #tpu.memory_space<vmem>>, vector<128x128xf32>
    %c2 = arith.constant 2 : index
    %c0_25 = arith.constant 0 : index
    %c0_26 = arith.constant 0 : index
    %24 = vector.load %arg4[%c2, %c0_25, %c0_26] : memref<36x128x128xbf16, #tpu.memory_space<vmem>>, vector<1x128x128xbf16>
    %25 = vector.shape_cast %24 : vector<1x128x128xbf16> to vector<128x128xbf16>
    %cst_27 = arith.constant dense<0.000000e+00> : vector<128x128xf32>
    %26 = tpu.matmul %22, %25, %cst_27 {dimension_numbers = #tpu.dot_dimension_numbers<[1], [0], [0], [1], [0, 0, 1, 1], [], []>} : vector<128x128xbf16>, vector<128x128xbf16>, vector<128x128xf32> -> vector<128x128xf32>
    %27 = arith.addf %23, %26 : vector<128x128xf32>
    %c0_28 = arith.constant 0 : index
    %c0_29 = arith.constant 0 : index
    %28 = vector.load %arg8[%c0_28, %c0_29] : memref<128x128xf32, #tpu.memory_space<vmem>>, vector<128x128xf32>
    tpu.vector_store %arg8[%c0_28, %c0_29], %27 {strides = array<i32>} : memref<128x128xf32, #tpu.memory_space<vmem>>, vector<128x128xf32>,
    %c24_30 = arith.constant 24 : index
    %c18_31 = arith.constant 18 : index
    %c0_32 = arith.constant 0 : index
    %29 = vector.load %arg7[%c24_30, %c18_31, %c0_32] : memref<56x64x128xbf16, #tpu.memory_space<vmem>>, vector<8x16x128xbf16>
    %30 = vector.shape_cast %29 : vector<8x16x128xbf16> to vector<128x128xbf16>
    %c0_33 = arith.constant 0 : index
    %c0_34 = arith.constant 0 : index
    %31 = vector.load %arg8[%c0_33, %c0_34] : memref<128x128xf32, #tpu.memory_space<vmem>>, vector<128x128xf32>
    %c3 = arith.constant 3 : index
    %c0_35 = arith.constant 0 : index
    %c0_36 = arith.constant 0 : index
    %32 = vector.load %arg4[%c3, %c0_35, %c0_36] : memref<36x128x128xbf16, #tpu.memory_space<vmem>>, vector<1x128x128xbf16>
    %33 = vector.shape_cast %32 : vector<1x128x128xbf16> to vector<128x128xbf16>
    %cst_37 = arith.constant dense<0.000000e+00> : vector<128x128xf32>
    %34 = tpu.matmul %30, %33, %cst_37 {dimension_numbers = #tpu.dot_dimension_numbers<[1], [0], [0], [1], [0, 0, 1, 1], [], []>} : vector<128x128xbf16>, vector<128x128xbf16>, vector<128x128xf32> -> vector<128x128xf32>
    %35 = arith.addf %31, %34 : vector<128x128xf32>
    %c0_38 = arith.constant 0 : index
    %c0_39 = arith.constant 0 : index
    %36 = vector.load %arg8[%c0_38, %c0_39] : memref<128x128xf32, #tpu.memory_space<vmem>>, vector<128x128xf32>
    tpu.vector_store %arg8[%c0_38, %c0_39], %35 {strides = array<i32>} : memref<128x128xf32, #tpu.memory_space<vmem>>, vector<128x128xf32>,
    %c24_40 = arith.constant 24 : index
    %c24_41 = arith.constant 24 : index
    %c0_42 = arith.constant 0 : index
    %37 = vector.load %arg7[%c24_40, %c24_41, %c0_42] : memref<56x64x128xbf16, #tpu.memory_space<vmem>>, vector<8x16x128xbf16>
    %38 = vector.shape_cast %37 : vector<8x16x128xbf16> to vector<128x128xbf16>
    %c0_43 = arith.constant 0 : index
    %c0_44 = arith.constant 0 : index
    %39 = vector.load %arg8[%c0_43, %c0_44] : memref<128x128xf32, #tpu.memory_space<vmem>>, vector<128x128xf32>
    %c4 = arith.constant 4 : index
    %c0_45 = arith.constant 0 : index
    %c0_46 = arith.constant 0 : index
    %40 = vector.load %arg4[%c4, %c0_45, %c0_46] : memref<36x128x128xbf16, #tpu.memory_space<vmem>>, vector<1x128x128xbf16>
    %41 = vector.shape_cast %40 : vector<1x128x128xbf16> to vector<128x128xbf16>
    %cst_47 = arith.constant dense<0.000000e+00> : vector<128x128xf32>
    %42 = tpu.matmul %38, %41, %cst_47 {dimension_numbers = #tpu.dot_dimension_numbers<[1], [0], [0], [1], [0, 0, 1, 1], [], []>} : vector<128x128xbf16>, vector<128x128xbf16>, vector<128x128xf32> -> vector<128x128xf32>
    %43 = arith.addf %39, %42 : vector<128x128xf32>
    %c0_48 = arith.constant 0 : index
    %c0_49 = arith.constant 0 : index
    %44 = vector.load %arg8[%c0_48, %c0_49] : memref<128x128xf32, #tpu.memory_space<vmem>>, vector<128x128xf32>
    tpu.vector_store %arg8[%c0_48, %c0_49], %43 {strides = array<i32>} : memref<128x128xf32, #tpu.memory_space<vmem>>, vector<128x128xf32>,
    %c24_50 = arith.constant 24 : index
    %c30_51 = arith.constant 30 : index
    %c0_52 = arith.constant 0 : index
    %45 = vector.load %arg7[%c24_50, %c30_51, %c0_52] : memref<56x64x128xbf16, #tpu.memory_space<vmem>>, vector<8x16x128xbf16>
    %46 = vector.shape_cast %45 : vector<8x16x128xbf16> to vector<128x128xbf16>
    %c0_53 = arith.constant 0 : index
    %c0_54 = arith.constant 0 : index
    %47 = vector.load %arg8[%c0_53, %c0_54] : memref<128x128xf32, #tpu.memory_space<vmem>>, vector<128x128xf32>
    %c5 = arith.constant 5 : index
    %c0_55 = arith.constant 0 : index
    %c0_56 = arith.constant 0 : index
    %48 = vector.load %arg4[%c5, %c0_55, %c0_56] : memref<36x128x128xbf16, #tpu.memory_space<vmem>>, vector<1x128x128xbf16>
    %49 = vector.shape_cast %48 : vector<1x128x128xbf16> to vector<128x128xbf16>
    %cst_57 = arith.constant dense<0.000000e+00> : vector<128x128xf32>
    %50 = tpu.matmul %46, %49, %cst_57 {dimension_numbers = #tpu.dot_dimension_numbers<[1], [0], [0], [1], [0, 0, 1, 1], [], []>} : vector<128x128xbf16>, vector<128x128xbf16>, vector<128x128xf32> -> vector<128x128xf32>
    %51 = arith.addf %47, %50 : vector<128x128xf32>
    %c0_58 = arith.constant 0 : index
    %c0_59 = arith.constant 0 : index
    %52 = vector.load %arg8[%c0_58, %c0_59] : memref<128x128xf32, #tpu.memory_space<vmem>>, vector<128x128xf32>
    tpu.vector_store %arg8[%c0_58, %c0_59], %51 {strides = array<i32>} : memref<128x128xf32, #tpu.memory_space<vmem>>, vector<128x128xf32>,
    %c30_60 = arith.constant 30 : index
    %c18_61 = arith.constant 18 : index
    %c0_62 = arith.constant 0 : index
    %53 = vector.load %arg7[%c30_60, %c18_61, %c0_62] : memref<56x64x128xbf16, #tpu.memory_space<vmem>>, vector<8x16x128xbf16>
    %54 = vector.shape_cast %53 : vector<8x16x128xbf16> to vector<128x128xbf16>
    %c0_63 = arith.constant 0 : index
    %c0_64 = arith.constant 0 : index
    %55 = vector.load %arg8[%c0_63, %c0_64] : memref<128x128xf32, #tpu.memory_space<vmem>>, vector<128x128xf32>
    %c6 = arith.constant 6 : index
    %c0_65 = arith.constant 0 : index
    %c0_66 = arith.constant 0 : index
    %56 = vector.load %arg4[%c6, %c0_65, %c0_66] : memref<36x128x128xbf16, #tpu.memory_space<vmem>>, vector<1x128x128xbf16>
    %57 = vector.shape_cast %56 : vector<1x128x128xbf16> to vector<128x128xbf16>
    %cst_67 = arith.constant dense<0.000000e+00> : vector<128x128xf32>
    %58 = tpu.matmul %54, %57, %cst_67 {dimension_numbers = #tpu.dot_dimension_numbers<[1], [0], [0], [1], [0, 0, 1, 1], [], []>} : vector<128x128xbf16>, vector<128x128xbf16>, vector<128x128xf32> -> vector<128x128xf32>
    %59 = arith.addf %55, %58 : vector<128x128xf32>
    %c0_68 = arith.constant 0 : index
    %c0_69 = arith.constant 0 : index
    %60 = vector.load %arg8[%c0_68, %c0_69] : memref<128x128xf32, #tpu.memory_space<vmem>>, vector<128x128xf32>
    tpu.vector_store %arg8[%c0_68, %c0_69], %59 {strides = array<i32>} : memref<128x128xf32, #tpu.memory_space<vmem>>, vector<128x128xf32>,
    %c30_70 = arith.constant 30 : index
    %c24_71 = arith.constant 24 : index
    %c0_72 = arith.constant 0 : index
    %61 = vector.load %arg7[%c30_70, %c24_71, %c0_72] : memref<56x64x128xbf16, #tpu.memory_space<vmem>>, vector<8x16x128xbf16>
    %62 = vector.shape_cast %61 : vector<8x16x128xbf16> to vector<128x128xbf16>
    %c0_73 = arith.constant 0 : index
    %c0_74 = arith.constant 0 : index
    %63 = vector.load %arg8[%c0_73, %c0_74] : memref<128x128xf32, #tpu.memory_space<vmem>>, vector<128x128xf32>
    %c7 = arith.constant 7 : index
    %c0_75 = arith.constant 0 : index
    %c0_76 = arith.constant 0 : index
    %64 = vector.load %arg4[%c7, %c0_75, %c0_76] : memref<36x128x128xbf16, #tpu.memory_space<vmem>>, vector<1x128x128xbf16>
    %65 = vector.shape_cast %64 : vector<1x128x128xbf16> to vector<128x128xbf16>
    %cst_77 = arith.constant dense<0.000000e+00> : vector<128x128xf32>
    %66 = tpu.matmul %62, %65, %cst_77 {dimension_numbers = #tpu.dot_dimension_numbers<[1], [0], [0], [1], [0, 0, 1, 1], [], []>} : vector<128x128xbf16>, vector<128x128xbf16>, vector<128x128xf32> -> vector<128x128xf32>
    %67 = arith.addf %63, %66 : vector<128x128xf32>
    %c0_78 = arith.constant 0 : index
    %c0_79 = arith.constant 0 : index
    %68 = vector.load %arg8[%c0_78, %c0_79] : memref<128x128xf32, #tpu.memory_space<vmem>>, vector<128x128xf32>
    tpu.vector_store %arg8[%c0_78, %c0_79], %67 {strides = array<i32>} : memref<128x128xf32, #tpu.memory_space<vmem>>, vector<128x128xf32>,
    %c30_80 = arith.constant 30 : index
    %c30_81 = arith.constant 30 : index
    %c0_82 = arith.constant 0 : index
    %69 = vector.load %arg7[%c30_80, %c30_81, %c0_82] : memref<56x64x128xbf16, #tpu.memory_space<vmem>>, vector<8x16x128xbf16>
    %70 = vector.shape_cast %69 : vector<8x16x128xbf16> to vector<128x128xbf16>
    %c0_83 = arith.constant 0 : index
    %c0_84 = arith.constant 0 : index
    %71 = vector.load %arg8[%c0_83, %c0_84] : memref<128x128xf32, #tpu.memory_space<vmem>>, vector<128x128xf32>
    %c8 = arith.constant 8 : index
    %c0_85 = arith.constant 0 : index
    %c0_86 = arith.constant 0 : index
    %72 = vector.load %arg4[%c8, %c0_85, %c0_86] : memref<36x128x128xbf16, #tpu.memory_space<vmem>>, vector<1x128x128xbf16>
    %73 = vector.shape_cast %72 : vector<1x128x128xbf16> to vector<128x128xbf16>
    %cst_87 = arith.constant dense<0.000000e+00> : vector<128x128xf32>
    %74 = tpu.matmul %70, %73, %cst_87 {dimension_numbers = #tpu.dot_dimension_numbers<[1], [0], [0], [1], [0, 0, 1, 1], [], []>} : vector<128x128xbf16>, vector<128x128xbf16>, vector<128x128xf32> -> vector<128x128xf32>
    %75 = arith.addf %71, %74 : vector<128x128xf32>
    %c0_88 = arith.constant 0 : index
    %c0_89 = arith.constant 0 : index
    %76 = vector.load %arg8[%c0_88, %c0_89] : memref<128x128xf32, #tpu.memory_space<vmem>>, vector<128x128xf32>
    tpu.vector_store %arg8[%c0_88, %c0_89], %75 {strides = array<i32>} : memref<128x128xf32, #tpu.memory_space<vmem>>, vector<128x128xf32>,
    %c12 = arith.constant 12 : index
    %c12_90 = arith.constant 12 : index
    %c0_91 = arith.constant 0 : index
    %77 = vector.load %arg7[%c12, %c12_90, %c0_91] : memref<56x64x128xbf16, #tpu.memory_space<vmem>>, vector<8x16x128xbf16>
    %78 = vector.shape_cast %77 : vector<8x16x128xbf16> to vector<128x128xbf16>
    %c0_92 = arith.constant 0 : index
    %c0_93 = arith.constant 0 : index
    %79 = vector.load %arg8[%c0_92, %c0_93] : memref<128x128xf32, #tpu.memory_space<vmem>>, vector<128x128xf32>
    %c9 = arith.constant 9 : index
    %c0_94 = arith.constant 0 : index
    %c0_95 = arith.constant 0 : index
    %80 = vector.load %arg4[%c9, %c0_94, %c0_95] : memref<36x128x128xbf16, #tpu.memory_space<vmem>>, vector<1x128x128xbf16>
    %81 = vector.shape_cast %80 : vector<1x128x128xbf16> to vector<128x128xbf16>
    %cst_96 = arith.constant dense<0.000000e+00> : vector<128x128xf32>
    %82 = tpu.matmul %78, %81, %cst_96 {dimension_numbers = #tpu.dot_dimension_numbers<[1], [0], [0], [1], [0, 0, 1, 1], [], []>} : vector<128x128xbf16>, vector<128x128xbf16>, vector<128x128xf32> -> vector<128x128xf32>
    %83 = arith.addf %79, %82 : vector<128x128xf32>
    %c0_97 = arith.constant 0 : index
    %c0_98 = arith.constant 0 : index
    %84 = vector.load %arg8[%c0_97, %c0_98] : memref<128x128xf32, #tpu.memory_space<vmem>>, vector<128x128xf32>
    tpu.vector_store %arg8[%c0_97, %c0_98], %83 {strides = array<i32>} : memref<128x128xf32, #tpu.memory_space<vmem>>, vector<128x128xf32>,
    %c12_99 = arith.constant 12 : index
    %c24_100 = arith.constant 24 : index
    %c0_101 = arith.constant 0 : index
    %85 = vector.load %arg7[%c12_99, %c24_100, %c0_101] : memref<56x64x128xbf16, #tpu.memory_space<vmem>>, vector<8x16x128xbf16>
    %86 = vector.shape_cast %85 : vector<8x16x128xbf16> to vector<128x128xbf16>
    %c0_102 = arith.constant 0 : index
    %c0_103 = arith.constant 0 : index
    %87 = vector.load %arg8[%c0_102, %c0_103] : memref<128x128xf32, #tpu.memory_space<vmem>>, vector<128x128xf32>
    %c10 = arith.constant 10 : index
    %c0_104 = arith.constant 0 : index
    %c0_105 = arith.constant 0 : index
    %88 = vector.load %arg4[%c10, %c0_104, %c0_105] : memref<36x128x128xbf16, #tpu.memory_space<vmem>>, vector<1x128x128xbf16>
    %89 = vector.shape_cast %88 : vector<1x128x128xbf16> to vector<128x128xbf16>
    %cst_106 = arith.constant dense<0.000000e+00> : vector<128x128xf32>
    %90 = tpu.matmul %86, %89, %cst_106 {dimension_numbers = #tpu.dot_dimension_numbers<[1], [0], [0], [1], [0, 0, 1, 1], [], []>} : vector<128x128xbf16>, vector<128x128xbf16>, vector<128x128xf32> -> vector<128x128xf32>
    %91 = arith.addf %87, %90 : vector<128x128xf32>
    %c0_107 = arith.constant 0 : index
    %c0_108 = arith.constant 0 : index
    %92 = vector.load %arg8[%c0_107, %c0_108] : memref<128x128xf32, #tpu.memory_space<vmem>>, vector<128x128xf32>
    tpu.vector_store %arg8[%c0_107, %c0_108], %91 {strides = array<i32>} : memref<128x128xf32, #tpu.memory_space<vmem>>, vector<128x128xf32>,
    %c12_109 = arith.constant 12 : index
    %c36 = arith.constant 36 : index
    %c0_110 = arith.constant 0 : index
    %93 = vector.load %arg7[%c12_109, %c36, %c0_110] : memref<56x64x128xbf16, #tpu.memory_space<vmem>>, vector<8x16x128xbf16>
    %94 = vector.shape_cast %93 : vector<8x16x128xbf16> to vector<128x128xbf16>
    %c0_111 = arith.constant 0 : index
    %c0_112 = arith.constant 0 : index
    %95 = vector.load %arg8[%c0_111, %c0_112] : memref<128x128xf32, #tpu.memory_space<vmem>>, vector<128x128xf32>
    %c11 = arith.constant 11 : index
    %c0_113 = arith.constant 0 : index
    %c0_114 = arith.constant 0 : index
    %96 = vector.load %arg4[%c11, %c0_113, %c0_114] : memref<36x128x128xbf16, #tpu.memory_space<vmem>>, vector<1x128x128xbf16>
    %97 = vector.shape_cast %96 : vector<1x128x128xbf16> to vector<128x128xbf16>
    %cst_115 = arith.constant dense<0.000000e+00> : vector<128x128xf32>
    %98 = tpu.matmul %94, %97, %cst_115 {dimension_numbers = #tpu.dot_dimension_numbers<[1], [0], [0], [1], [0, 0, 1, 1], [], []>} : vector<128x128xbf16>, vector<128x128xbf16>, vector<128x128xf32> -> vector<128x128xf32>
    %99 = arith.addf %95, %98 : vector<128x128xf32>
    %c0_116 = arith.constant 0 : index
    %c0_117 = arith.constant 0 : index
    %100 = vector.load %arg8[%c0_116, %c0_117] : memref<128x128xf32, #tpu.memory_space<vmem>>, vector<128x128xf32>
    tpu.vector_store %arg8[%c0_116, %c0_117], %99 {strides = array<i32>} : memref<128x128xf32, #tpu.memory_space<vmem>>, vector<128x128xf32>,
    %c24_118 = arith.constant 24 : index
    %c12_119 = arith.constant 12 : index
    %c0_120 = arith.constant 0 : index
    %101 = vector.load %arg7[%c24_118, %c12_119, %c0_120] : memref<56x64x128xbf16, #tpu.memory_space<vmem>>, vector<8x16x128xbf16>
    %102 = vector.shape_cast %101 : vector<8x16x128xbf16> to vector<128x128xbf16>
    %c0_121 = arith.constant 0 : index
    %c0_122 = arith.constant 0 : index
    %103 = vector.load %arg8[%c0_121, %c0_122] : memref<128x128xf32, #tpu.memory_space<vmem>>, vector<128x128xf32>
    %c12_123 = arith.constant 12 : index
    %c0_124 = arith.constant 0 : index
    %c0_125 = arith.constant 0 : index
    %104 = vector.load %arg4[%c12_123, %c0_124, %c0_125] : memref<36x128x128xbf16, #tpu.memory_space<vmem>>, vector<1x128x128xbf16>
    %105 = vector.shape_cast %104 : vector<1x128x128xbf16> to vector<128x128xbf16>
    %cst_126 = arith.constant dense<0.000000e+00> : vector<128x128xf32>
    %106 = tpu.matmul %102, %105, %cst_126 {dimension_numbers = #tpu.dot_dimension_numbers<[1], [0], [0], [1], [0, 0, 1, 1], [], []>} : vector<128x128xbf16>, vector<128x128xbf16>, vector<128x128xf32> -> vector<128x128xf32>
    %107 = arith.addf %103, %106 : vector<128x128xf32>
    %c0_127 = arith.constant 0 : index
    %c0_128 = arith.constant 0 : index
    %108 = vector.load %arg8[%c0_127, %c0_128] : memref<128x128xf32, #tpu.memory_space<vmem>>, vector<128x128xf32>
    tpu.vector_store %arg8[%c0_127, %c0_128], %107 {strides = array<i32>} : memref<128x128xf32, #tpu.memory_space<vmem>>, vector<128x128xf32>,
    %c24_129 = arith.constant 24 : index
    %c24_130 = arith.constant 24 : index
    %c0_131 = arith.constant 0 : index
    %109 = vector.load %arg7[%c24_129, %c24_130, %c0_131] : memref<56x64x128xbf16, #tpu.memory_space<vmem>>, vector<8x16x128xbf16>
    %110 = vector.shape_cast %109 : vector<8x16x128xbf16> to vector<128x128xbf16>
    %c0_132 = arith.constant 0 : index
    %c0_133 = arith.constant 0 : index
    %111 = vector.load %arg8[%c0_132, %c0_133] : memref<128x128xf32, #tpu.memory_space<vmem>>, vector<128x128xf32>
    %c13 = arith.constant 13 : index
    %c0_134 = arith.constant 0 : index
    %c0_135 = arith.constant 0 : index
    %112 = vector.load %arg4[%c13, %c0_134, %c0_135] : memref<36x128x128xbf16, #tpu.memory_space<vmem>>, vector<1x128x128xbf16>
    %113 = vector.shape_cast %112 : vector<1x128x128xbf16> to vector<128x128xbf16>
    %cst_136 = arith.constant dense<0.000000e+00> : vector<128x128xf32>
    %114 = tpu.matmul %110, %113, %cst_136 {dimension_numbers = #tpu.dot_dimension_numbers<[1], [0], [0], [1], [0, 0, 1, 1], [], []>} : vector<128x128xbf16>, vector<128x128xbf16>, vector<128x128xf32> -> vector<128x128xf32>
    %115 = arith.addf %111, %114 : vector<128x128xf32>
    %c0_137 = arith.constant 0 : index
    %c0_138 = arith.constant 0 : index
    %116 = vector.load %arg8[%c0_137, %c0_138] : memref<128x128xf32, #tpu.memory_space<vmem>>, vector<128x128xf32>
    tpu.vector_store %arg8[%c0_137, %c0_138], %115 {strides = array<i32>} : memref<128x128xf32, #tpu.memory_space<vmem>>, vector<128x128xf32>,
    %c24_139 = arith.constant 24 : index
    %c36_140 = arith.constant 36 : index
    %c0_141 = arith.constant 0 : index
    %117 = vector.load %arg7[%c24_139, %c36_140, %c0_141] : memref<56x64x128xbf16, #tpu.memory_space<vmem>>, vector<8x16x128xbf16>
    %118 = vector.shape_cast %117 : vector<8x16x128xbf16> to vector<128x128xbf16>
    %c0_142 = arith.constant 0 : index
    %c0_143 = arith.constant 0 : index
    %119 = vector.load %arg8[%c0_142, %c0_143] : memref<128x128xf32, #tpu.memory_space<vmem>>, vector<128x128xf32>
    %c14 = arith.constant 14 : index
    %c0_144 = arith.constant 0 : index
    %c0_145 = arith.constant 0 : index
    %120 = vector.load %arg4[%c14, %c0_144, %c0_145] : memref<36x128x128xbf16, #tpu.memory_space<vmem>>, vector<1x128x128xbf16>
    %121 = vector.shape_cast %120 : vector<1x128x128xbf16> to vector<128x128xbf16>
    %cst_146 = arith.constant dense<0.000000e+00> : vector<128x128xf32>
    %122 = tpu.matmul %118, %121, %cst_146 {dimension_numbers = #tpu.dot_dimension_numbers<[1], [0], [0], [1], [0, 0, 1, 1], [], []>} : vector<128x128xbf16>, vector<128x128xbf16>, vector<128x128xf32> -> vector<128x128xf32>
    %123 = arith.addf %119, %122 : vector<128x128xf32>
    %c0_147 = arith.constant 0 : index
    %c0_148 = arith.constant 0 : index
    %124 = vector.load %arg8[%c0_147, %c0_148] : memref<128x128xf32, #tpu.memory_space<vmem>>, vector<128x128xf32>
    tpu.vector_store %arg8[%c0_147, %c0_148], %123 {strides = array<i32>} : memref<128x128xf32, #tpu.memory_space<vmem>>, vector<128x128xf32>,
    %c36_149 = arith.constant 36 : index
    %c12_150 = arith.constant 12 : index
    %c0_151 = arith.constant 0 : index
    %125 = vector.load %arg7[%c36_149, %c12_150, %c0_151] : memref<56x64x128xbf16, #tpu.memory_space<vmem>>, vector<8x16x128xbf16>
    %126 = vector.shape_cast %125 : vector<8x16x128xbf16> to vector<128x128xbf16>
    %c0_152 = arith.constant 0 : index
    %c0_153 = arith.constant 0 : index
    %127 = vector.load %arg8[%c0_152, %c0_153] : memref<128x128xf32, #tpu.memory_space<vmem>>, vector<128x128xf32>
    %c15 = arith.constant 15 : index
    %c0_154 = arith.constant 0 : index
    %c0_155 = arith.constant 0 : index
    %128 = vector.load %arg4[%c15, %c0_154, %c0_155] : memref<36x128x128xbf16, #tpu.memory_space<vmem>>, vector<1x128x128xbf16>
    %129 = vector.shape_cast %128 : vector<1x128x128xbf16> to vector<128x128xbf16>
    %cst_156 = arith.constant dense<0.000000e+00> : vector<128x128xf32>
    %130 = tpu.matmul %126, %129, %cst_156 {dimension_numbers = #tpu.dot_dimension_numbers<[1], [0], [0], [1], [0, 0, 1, 1], [], []>} : vector<128x128xbf16>, vector<128x128xbf16>, vector<128x128xf32> -> vector<128x128xf32>
    %131 = arith.addf %127, %130 : vector<128x128xf32>
    %c0_157 = arith.constant 0 : index
    %c0_158 = arith.constant 0 : index
    %132 = vector.load %arg8[%c0_157, %c0_158] : memref<128x128xf32, #tpu.memory_space<vmem>>, vector<128x128xf32>
    tpu.vector_store %arg8[%c0_157, %c0_158], %131 {strides = array<i32>} : memref<128x128xf32, #tpu.memory_space<vmem>>, vector<128x128xf32>,
    %c36_159 = arith.constant 36 : index
    %c24_160 = arith.constant 24 : index
    %c0_161 = arith.constant 0 : index
    %133 = vector.load %arg7[%c36_159, %c24_160, %c0_161] : memref<56x64x128xbf16, #tpu.memory_space<vmem>>, vector<8x16x128xbf16>
    %134 = vector.shape_cast %133 : vector<8x16x128xbf16> to vector<128x128xbf16>
    %c0_162 = arith.constant 0 : index
    %c0_163 = arith.constant 0 : index
    %135 = vector.load %arg8[%c0_162, %c0_163] : memref<128x128xf32, #tpu.memory_space<vmem>>, vector<128x128xf32>
    %c16 = arith.constant 16 : index
    %c0_164 = arith.constant 0 : index
    %c0_165 = arith.constant 0 : index
    %136 = vector.load %arg4[%c16, %c0_164, %c0_165] : memref<36x128x128xbf16, #tpu.memory_space<vmem>>, vector<1x128x128xbf16>
    %137 = vector.shape_cast %136 : vector<1x128x128xbf16> to vector<128x128xbf16>
    %cst_166 = arith.constant dense<0.000000e+00> : vector<128x128xf32>
    %138 = tpu.matmul %134, %137, %cst_166 {dimension_numbers = #tpu.dot_dimension_numbers<[1], [0], [0], [1], [0, 0, 1, 1], [], []>} : vector<128x128xbf16>, vector<128x128xbf16>, vector<128x128xf32> -> vector<128x128xf32>
    %139 = arith.addf %135, %138 : vector<128x128xf32>
    %c0_167 = arith.constant 0 : index
    %c0_168 = arith.constant 0 : index
    %140 = vector.load %arg8[%c0_167, %c0_168] : memref<128x128xf32, #tpu.memory_space<vmem>>, vector<128x128xf32>
    tpu.vector_store %arg8[%c0_167, %c0_168], %139 {strides = array<i32>} : memref<128x128xf32, #tpu.memory_space<vmem>>, vector<128x128xf32>,
    %c36_169 = arith.constant 36 : index
    %c36_170 = arith.constant 36 : index
    %c0_171 = arith.constant 0 : index
    %141 = vector.load %arg7[%c36_169, %c36_170, %c0_171] : memref<56x64x128xbf16, #tpu.memory_space<vmem>>, vector<8x16x128xbf16>
    %142 = vector.shape_cast %141 : vector<8x16x128xbf16> to vector<128x128xbf16>
    %c0_172 = arith.constant 0 : index
    %c0_173 = arith.constant 0 : index
    %143 = vector.load %arg8[%c0_172, %c0_173] : memref<128x128xf32, #tpu.memory_space<vmem>>, vector<128x128xf32>
    %c17 = arith.constant 17 : index
    %c0_174 = arith.constant 0 : index
    %c0_175 = arith.constant 0 : index
    %144 = vector.load %arg4[%c17, %c0_174, %c0_175] : memref<36x128x128xbf16, #tpu.memory_space<vmem>>, vector<1x128x128xbf16>
    %145 = vector.shape_cast %144 : vector<1x128x128xbf16> to vector<128x128xbf16>
    %cst_176 = arith.constant dense<0.000000e+00> : vector<128x128xf32>
    %146 = tpu.matmul %142, %145, %cst_176 {dimension_numbers = #tpu.dot_dimension_numbers<[1], [0], [0], [1], [0, 0, 1, 1], [], []>} : vector<128x128xbf16>, vector<128x128xbf16>, vector<128x128xf32> -> vector<128x128xf32>
    %147 = arith.addf %143, %146 : vector<128x128xf32>
    %c0_177 = arith.constant 0 : index
    %c0_178 = arith.constant 0 : index
    %148 = vector.load %arg8[%c0_177, %c0_178] : memref<128x128xf32, #tpu.memory_space<vmem>>, vector<128x128xf32>
    tpu.vector_store %arg8[%c0_177, %c0_178], %147 {strides = array<i32>} : memref<128x128xf32, #tpu.memory_space<vmem>>, vector<128x128xf32>,
    %c6_179 = arith.constant 6 : index
    %c6_180 = arith.constant 6 : index
    %c0_181 = arith.constant 0 : index
    %149 = vector.load %arg7[%c6_179, %c6_180, %c0_181] : memref<56x64x128xbf16, #tpu.memory_space<vmem>>, vector<8x16x128xbf16>
    %150 = vector.shape_cast %149 : vector<8x16x128xbf16> to vector<128x128xbf16>
    %c0_182 = arith.constant 0 : index
    %c0_183 = arith.constant 0 : index
    %151 = vector.load %arg8[%c0_182, %c0_183] : memref<128x128xf32, #tpu.memory_space<vmem>>, vector<128x128xf32>
    %c18_184 = arith.constant 18 : index
    %c0_185 = arith.constant 0 : index
    %c0_186 = arith.constant 0 : index
    %152 = vector.load %arg4[%c18_184, %c0_185, %c0_186] : memref<36x128x128xbf16, #tpu.memory_space<vmem>>, vector<1x128x128xbf16>
    %153 = vector.shape_cast %152 : vector<1x128x128xbf16> to vector<128x128xbf16>
    %cst_187 = arith.constant dense<0.000000e+00> : vector<128x128xf32>
    %154 = tpu.matmul %150, %153, %cst_187 {dimension_numbers = #tpu.dot_dimension_numbers<[1], [0], [0], [1], [0, 0, 1, 1], [], []>} : vector<128x128xbf16>, vector<128x128xbf16>, vector<128x128xf32> -> vector<128x128xf32>
    %155 = arith.addf %151, %154 : vector<128x128xf32>
    %c0_188 = arith.constant 0 : index
    %c0_189 = arith.constant 0 : index
    %156 = vector.load %arg8[%c0_188, %c0_189] : memref<128x128xf32, #tpu.memory_space<vmem>>, vector<128x128xf32>
    tpu.vector_store %arg8[%c0_188, %c0_189], %155 {strides = array<i32>} : memref<128x128xf32, #tpu.memory_space<vmem>>, vector<128x128xf32>,
    %c6_190 = arith.constant 6 : index
    %c24_191 = arith.constant 24 : index
    %c0_192 = arith.constant 0 : index
    %157 = vector.load %arg7[%c6_190, %c24_191, %c0_192] : memref<56x64x128xbf16, #tpu.memory_space<vmem>>, vector<8x16x128xbf16>
    %158 = vector.shape_cast %157 : vector<8x16x128xbf16> to vector<128x128xbf16>
    %c0_193 = arith.constant 0 : index
    %c0_194 = arith.constant 0 : index
    %159 = vector.load %arg8[%c0_193, %c0_194] : memref<128x128xf32, #tpu.memory_space<vmem>>, vector<128x128xf32>
    %c19 = arith.constant 19 : index
    %c0_195 = arith.constant 0 : index
    %c0_196 = arith.constant 0 : index
    %160 = vector.load %arg4[%c19, %c0_195, %c0_196] : memref<36x128x128xbf16, #tpu.memory_space<vmem>>, vector<1x128x128xbf16>
    %161 = vector.shape_cast %160 : vector<1x128x128xbf16> to vector<128x128xbf16>
    %cst_197 = arith.constant dense<0.000000e+00> : vector<128x128xf32>
    %162 = tpu.matmul %158, %161, %cst_197 {dimension_numbers = #tpu.dot_dimension_numbers<[1], [0], [0], [1], [0, 0, 1, 1], [], []>} : vector<128x128xbf16>, vector<128x128xbf16>, vector<128x128xf32> -> vector<128x128xf32>
    %163 = arith.addf %159, %162 : vector<128x128xf32>
    %c0_198 = arith.constant 0 : index
    %c0_199 = arith.constant 0 : index
    %164 = vector.load %arg8[%c0_198, %c0_199] : memref<128x128xf32, #tpu.memory_space<vmem>>, vector<128x128xf32>
    tpu.vector_store %arg8[%c0_198, %c0_199], %163 {strides = array<i32>} : memref<128x128xf32, #tpu.memory_space<vmem>>, vector<128x128xf32>,
    %c6_200 = arith.constant 6 : index
    %c42 = arith.constant 42 : index
    %c0_201 = arith.constant 0 : index
    %165 = vector.load %arg7[%c6_200, %c42, %c0_201] : memref<56x64x128xbf16, #tpu.memory_space<vmem>>, vector<8x16x128xbf16>
    %166 = vector.shape_cast %165 : vector<8x16x128xbf16> to vector<128x128xbf16>
    %c0_202 = arith.constant 0 : index
    %c0_203 = arith.constant 0 : index
    %167 = vector.load %arg8[%c0_202, %c0_203] : memref<128x128xf32, #tpu.memory_space<vmem>>, vector<128x128xf32>
    %c20 = arith.constant 20 : index
    %c0_204 = arith.constant 0 : index
    %c0_205 = arith.constant 0 : index
    %168 = vector.load %arg4[%c20, %c0_204, %c0_205] : memref<36x128x128xbf16, #tpu.memory_space<vmem>>, vector<1x128x128xbf16>
    %169 = vector.shape_cast %168 : vector<1x128x128xbf16> to vector<128x128xbf16>
    %cst_206 = arith.constant dense<0.000000e+00> : vector<128x128xf32>
    %170 = tpu.matmul %166, %169, %cst_206 {dimension_numbers = #tpu.dot_dimension_numbers<[1], [0], [0], [1], [0, 0, 1, 1], [], []>} : vector<128x128xbf16>, vector<128x128xbf16>, vector<128x128xf32> -> vector<128x128xf32>
    %171 = arith.addf %167, %170 : vector<128x128xf32>
    %c0_207 = arith.constant 0 : index
    %c0_208 = arith.constant 0 : index
    %172 = vector.load %arg8[%c0_207, %c0_208] : memref<128x128xf32, #tpu.memory_space<vmem>>, vector<128x128xf32>
    tpu.vector_store %arg8[%c0_207, %c0_208], %171 {strides = array<i32>} : memref<128x128xf32, #tpu.memory_space<vmem>>, vector<128x128xf32>,
    %c24_209 = arith.constant 24 : index
    %c6_210 = arith.constant 6 : index
    %c0_211 = arith.constant 0 : index
    %173 = vector.load %arg7[%c24_209, %c6_210, %c0_211] : memref<56x64x128xbf16, #tpu.memory_space<vmem>>, vector<8x16x128xbf16>
    %174 = vector.shape_cast %173 : vector<8x16x128xbf16> to vector<128x128xbf16>
    %c0_212 = arith.constant 0 : index
    %c0_213 = arith.constant 0 : index
    %175 = vector.load %arg8[%c0_212, %c0_213] : memref<128x128xf32, #tpu.memory_space<vmem>>, vector<128x128xf32>
    %c21 = arith.constant 21 : index
    %c0_214 = arith.constant 0 : index
    %c0_215 = arith.constant 0 : index
    %176 = vector.load %arg4[%c21, %c0_214, %c0_215] : memref<36x128x128xbf16, #tpu.memory_space<vmem>>, vector<1x128x128xbf16>
    %177 = vector.shape_cast %176 : vector<1x128x128xbf16> to vector<128x128xbf16>
    %cst_216 = arith.constant dense<0.000000e+00> : vector<128x128xf32>
    %178 = tpu.matmul %174, %177, %cst_216 {dimension_numbers = #tpu.dot_dimension_numbers<[1], [0], [0], [1], [0, 0, 1, 1], [], []>} : vector<128x128xbf16>, vector<128x128xbf16>, vector<128x128xf32> -> vector<128x128xf32>
    %179 = arith.addf %175, %178 : vector<128x128xf32>
    %c0_217 = arith.constant 0 : index
    %c0_218 = arith.constant 0 : index
    %180 = vector.load %arg8[%c0_217, %c0_218] : memref<128x128xf32, #tpu.memory_space<vmem>>, vector<128x128xf32>
    tpu.vector_store %arg8[%c0_217, %c0_218], %179 {strides = array<i32>} : memref<128x128xf32, #tpu.memory_space<vmem>>, vector<128x128xf32>,
    %c24_219 = arith.constant 24 : index
    %c24_220 = arith.constant 24 : index
    %c0_221 = arith.constant 0 : index
    %181 = vector.load %arg7[%c24_219, %c24_220, %c0_221] : memref<56x64x128xbf16, #tpu.memory_space<vmem>>, vector<8x16x128xbf16>
    %182 = vector.shape_cast %181 : vector<8x16x128xbf16> to vector<128x128xbf16>
    %c0_222 = arith.constant 0 : index
    %c0_223 = arith.constant 0 : index
    %183 = vector.load %arg8[%c0_222, %c0_223] : memref<128x128xf32, #tpu.memory_space<vmem>>, vector<128x128xf32>
    %c22 = arith.constant 22 : index
    %c0_224 = arith.constant 0 : index
    %c0_225 = arith.constant 0 : index
    %184 = vector.load %arg4[%c22, %c0_224, %c0_225] : memref<36x128x128xbf16, #tpu.memory_space<vmem>>, vector<1x128x128xbf16>
    %185 = vector.shape_cast %184 : vector<1x128x128xbf16> to vector<128x128xbf16>
    %cst_226 = arith.constant dense<0.000000e+00> : vector<128x128xf32>
    %186 = tpu.matmul %182, %185, %cst_226 {dimension_numbers = #tpu.dot_dimension_numbers<[1], [0], [0], [1], [0, 0, 1, 1], [], []>} : vector<128x128xbf16>, vector<128x128xbf16>, vector<128x128xf32> -> vector<128x128xf32>
    %187 = arith.addf %183, %186 : vector<128x128xf32>
    %c0_227 = arith.constant 0 : index
    %c0_228 = arith.constant 0 : index
    %188 = vector.load %arg8[%c0_227, %c0_228] : memref<128x128xf32, #tpu.memory_space<vmem>>, vector<128x128xf32>
    tpu.vector_store %arg8[%c0_227, %c0_228], %187 {strides = array<i32>} : memref<128x128xf32, #tpu.memory_space<vmem>>, vector<128x128xf32>,
    %c24_229 = arith.constant 24 : index
    %c42_230 = arith.constant 42 : index
    %c0_231 = arith.constant 0 : index
    %189 = vector.load %arg7[%c24_229, %c42_230, %c0_231] : memref<56x64x128xbf16, #tpu.memory_space<vmem>>, vector<8x16x128xbf16>
    %190 = vector.shape_cast %189 : vector<8x16x128xbf16> to vector<128x128xbf16>
    %c0_232 = arith.constant 0 : index
    %c0_233 = arith.constant 0 : index
    %191 = vector.load %arg8[%c0_232, %c0_233] : memref<128x128xf32, #tpu.memory_space<vmem>>, vector<128x128xf32>
    %c23 = arith.constant 23 : index
    %c0_234 = arith.constant 0 : index
    %c0_235 = arith.constant 0 : index
    %192 = vector.load %arg4[%c23, %c0_234, %c0_235] : memref<36x128x128xbf16, #tpu.memory_space<vmem>>, vector<1x128x128xbf16>
    %193 = vector.shape_cast %192 : vector<1x128x128xbf16> to vector<128x128xbf16>
    %cst_236 = arith.constant dense<0.000000e+00> : vector<128x128xf32>
    %194 = tpu.matmul %190, %193, %cst_236 {dimension_numbers = #tpu.dot_dimension_numbers<[1], [0], [0], [1], [0, 0, 1, 1], [], []>} : vector<128x128xbf16>, vector<128x128xbf16>, vector<128x128xf32> -> vector<128x128xf32>
    %195 = arith.addf %191, %194 : vector<128x128xf32>
    %c0_237 = arith.constant 0 : index
    %c0_238 = arith.constant 0 : index
    %196 = vector.load %arg8[%c0_237, %c0_238] : memref<128x128xf32, #tpu.memory_space<vmem>>, vector<128x128xf32>
    tpu.vector_store %arg8[%c0_237, %c0_238], %195 {strides = array<i32>} : memref<128x128xf32, #tpu.memory_space<vmem>>, vector<128x128xf32>,
    %c42_239 = arith.constant 42 : index
    %c6_240 = arith.constant 6 : index
    %c0_241 = arith.constant 0 : index
    %197 = vector.load %arg7[%c42_239, %c6_240, %c0_241] : memref<56x64x128xbf16, #tpu.memory_space<vmem>>, vector<8x16x128xbf16>
    %198 = vector.shape_cast %197 : vector<8x16x128xbf16> to vector<128x128xbf16>
    %c0_242 = arith.constant 0 : index
    %c0_243 = arith.constant 0 : index
    %199 = vector.load %arg8[%c0_242, %c0_243] : memref<128x128xf32, #tpu.memory_space<vmem>>, vector<128x128xf32>
    %c24_244 = arith.constant 24 : index
    %c0_245 = arith.constant 0 : index
    %c0_246 = arith.constant 0 : index
    %200 = vector.load %arg4[%c24_244, %c0_245, %c0_246] : memref<36x128x128xbf16, #tpu.memory_space<vmem>>, vector<1x128x128xbf16>
    %201 = vector.shape_cast %200 : vector<1x128x128xbf16> to vector<128x128xbf16>
    %cst_247 = arith.constant dense<0.000000e+00> : vector<128x128xf32>
    %202 = tpu.matmul %198, %201, %cst_247 {dimension_numbers = #tpu.dot_dimension_numbers<[1], [0], [0], [1], [0, 0, 1, 1], [], []>} : vector<128x128xbf16>, vector<128x128xbf16>, vector<128x128xf32> -> vector<128x128xf32>
    %203 = arith.addf %199, %202 : vector<128x128xf32>
    %c0_248 = arith.constant 0 : index
    %c0_249 = arith.constant 0 : index
    %204 = vector.load %arg8[%c0_248, %c0_249] : memref<128x128xf32, #tpu.memory_space<vmem>>, vector<128x128xf32>
    tpu.vector_store %arg8[%c0_248, %c0_249], %203 {strides = array<i32>} : memref<128x128xf32, #tpu.memory_space<vmem>>, vector<128x128xf32>,
    %c42_250 = arith.constant 42 : index
    %c24_251 = arith.constant 24 : index
    %c0_252 = arith.constant 0 : index
    %205 = vector.load %arg7[%c42_250, %c24_251, %c0_252] : memref<56x64x128xbf16, #tpu.memory_space<vmem>>, vector<8x16x128xbf16>
    %206 = vector.shape_cast %205 : vector<8x16x128xbf16> to vector<128x128xbf16>
    %c0_253 = arith.constant 0 : index
    %c0_254 = arith.constant 0 : index
    %207 = vector.load %arg8[%c0_253, %c0_254] : memref<128x128xf32, #tpu.memory_space<vmem>>, vector<128x128xf32>
    %c25 = arith.constant 25 : index
    %c0_255 = arith.constant 0 : index
    %c0_256 = arith.constant 0 : index
    %208 = vector.load %arg4[%c25, %c0_255, %c0_256] : memref<36x128x128xbf16, #tpu.memory_space<vmem>>, vector<1x128x128xbf16>
    %209 = vector.shape_cast %208 : vector<1x128x128xbf16> to vector<128x128xbf16>
    %cst_257 = arith.constant dense<0.000000e+00> : vector<128x128xf32>
    %210 = tpu.matmul %206, %209, %cst_257 {dimension_numbers = #tpu.dot_dimension_numbers<[1], [0], [0], [1], [0, 0, 1, 1], [], []>} : vector<128x128xbf16>, vector<128x128xbf16>, vector<128x128xf32> -> vector<128x128xf32>
    %211 = arith.addf %207, %210 : vector<128x128xf32>
    %c0_258 = arith.constant 0 : index
    %c0_259 = arith.constant 0 : index
    %212 = vector.load %arg8[%c0_258, %c0_259] : memref<128x128xf32, #tpu.memory_space<vmem>>, vector<128x128xf32>
    tpu.vector_store %arg8[%c0_258, %c0_259], %211 {strides = array<i32>} : memref<128x128xf32, #tpu.memory_space<vmem>>, vector<128x128xf32>,
    %c42_260 = arith.constant 42 : index
    %c42_261 = arith.constant 42 : index
    %c0_262 = arith.constant 0 : index
    %213 = vector.load %arg7[%c42_260, %c42_261, %c0_262] : memref<56x64x128xbf16, #tpu.memory_space<vmem>>, vector<8x16x128xbf16>
    %214 = vector.shape_cast %213 : vector<8x16x128xbf16> to vector<128x128xbf16>
    %c0_263 = arith.constant 0 : index
    %c0_264 = arith.constant 0 : index
    %215 = vector.load %arg8[%c0_263, %c0_264] : memref<128x128xf32, #tpu.memory_space<vmem>>, vector<128x128xf32>
    %c26 = arith.constant 26 : index
    %c0_265 = arith.constant 0 : index
    %c0_266 = arith.constant 0 : index
    %216 = vector.load %arg4[%c26, %c0_265, %c0_266] : memref<36x128x128xbf16, #tpu.memory_space<vmem>>, vector<1x128x128xbf16>
    %217 = vector.shape_cast %216 : vector<1x128x128xbf16> to vector<128x128xbf16>
    %cst_267 = arith.constant dense<0.000000e+00> : vector<128x128xf32>
    %218 = tpu.matmul %214, %217, %cst_267 {dimension_numbers = #tpu.dot_dimension_numbers<[1], [0], [0], [1], [0, 0, 1, 1], [], []>} : vector<128x128xbf16>, vector<128x128xbf16>, vector<128x128xf32> -> vector<128x128xf32>
    %219 = arith.addf %215, %218 : vector<128x128xf32>
    %c0_268 = arith.constant 0 : index
    %c0_269 = arith.constant 0 : index
    %220 = vector.load %arg8[%c0_268, %c0_269] : memref<128x128xf32, #tpu.memory_space<vmem>>, vector<128x128xf32>
    tpu.vector_store %arg8[%c0_268, %c0_269], %219 {strides = array<i32>} : memref<128x128xf32, #tpu.memory_space<vmem>>, vector<128x128xf32>,
    %c0_270 = arith.constant 0 : index
    %c0_271 = arith.constant 0 : index
    %c0_272 = arith.constant 0 : index
    %221 = vector.load %arg7[%c0_270, %c0_271, %c0_272] : memref<56x64x128xbf16, #tpu.memory_space<vmem>>, vector<8x16x128xbf16>
    %222 = vector.shape_cast %221 : vector<8x16x128xbf16> to vector<128x128xbf16>
    %c0_273 = arith.constant 0 : index
    %c0_274 = arith.constant 0 : index
    %223 = vector.load %arg8[%c0_273, %c0_274] : memref<128x128xf32, #tpu.memory_space<vmem>>, vector<128x128xf32>
    %c27 = arith.constant 27 : index
    %c0_275 = arith.constant 0 : index
    %c0_276 = arith.constant 0 : index
    %224 = vector.load %arg4[%c27, %c0_275, %c0_276] : memref<36x128x128xbf16, #tpu.memory_space<vmem>>, vector<1x128x128xbf16>
    %225 = vector.shape_cast %224 : vector<1x128x128xbf16> to vector<128x128xbf16>
    %cst_277 = arith.constant dense<0.000000e+00> : vector<128x128xf32>
    %226 = tpu.matmul %222, %225, %cst_277 {dimension_numbers = #tpu.dot_dimension_numbers<[1], [0], [0], [1], [0, 0, 1, 1], [], []>} : vector<128x128xbf16>, vector<128x128xbf16>, vector<128x128xf32> -> vector<128x128xf32>
    %227 = arith.addf %223, %226 : vector<128x128xf32>
    %c0_278 = arith.constant 0 : index
    %c0_279 = arith.constant 0 : index
    %228 = vector.load %arg8[%c0_278, %c0_279] : memref<128x128xf32, #tpu.memory_space<vmem>>, vector<128x128xf32>
    tpu.vector_store %arg8[%c0_278, %c0_279], %227 {strides = array<i32>} : memref<128x128xf32, #tpu.memory_space<vmem>>, vector<128x128xf32>,
    %c0_280 = arith.constant 0 : index
    %c24_281 = arith.constant 24 : index
    %c0_282 = arith.constant 0 : index
    %229 = vector.load %arg7[%c0_280, %c24_281, %c0_282] : memref<56x64x128xbf16, #tpu.memory_space<vmem>>, vector<8x16x128xbf16>
    %230 = vector.shape_cast %229 : vector<8x16x128xbf16> to vector<128x128xbf16>
    %c0_283 = arith.constant 0 : index
    %c0_284 = arith.constant 0 : index
    %231 = vector.load %arg8[%c0_283, %c0_284] : memref<128x128xf32, #tpu.memory_space<vmem>>, vector<128x128xf32>
    %c28 = arith.constant 28 : index
    %c0_285 = arith.constant 0 : index
    %c0_286 = arith.constant 0 : index
    %232 = vector.load %arg4[%c28, %c0_285, %c0_286] : memref<36x128x128xbf16, #tpu.memory_space<vmem>>, vector<1x128x128xbf16>
    %233 = vector.shape_cast %232 : vector<1x128x128xbf16> to vector<128x128xbf16>
    %cst_287 = arith.constant dense<0.000000e+00> : vector<128x128xf32>
    %234 = tpu.matmul %230, %233, %cst_287 {dimension_numbers = #tpu.dot_dimension_numbers<[1], [0], [0], [1], [0, 0, 1, 1], [], []>} : vector<128x128xbf16>, vector<128x128xbf16>, vector<128x128xf32> -> vector<128x128xf32>
    %235 = arith.addf %231, %234 : vector<128x128xf32>
    %c0_288 = arith.constant 0 : index
    %c0_289 = arith.constant 0 : index
    %236 = vector.load %arg8[%c0_288, %c0_289] : memref<128x128xf32, #tpu.memory_space<vmem>>, vector<128x128xf32>
    tpu.vector_store %arg8[%c0_288, %c0_289], %235 {strides = array<i32>} : memref<128x128xf32, #tpu.memory_space<vmem>>, vector<128x128xf32>,
    %c0_290 = arith.constant 0 : index
    %c48 = arith.constant 48 : index
    %c0_291 = arith.constant 0 : index
    %237 = vector.load %arg7[%c0_290, %c48, %c0_291] : memref<56x64x128xbf16, #tpu.memory_space<vmem>>, vector<8x16x128xbf16>
    %238 = vector.shape_cast %237 : vector<8x16x128xbf16> to vector<128x128xbf16>
    %c0_292 = arith.constant 0 : index
    %c0_293 = arith.constant 0 : index
    %239 = vector.load %arg8[%c0_292, %c0_293] : memref<128x128xf32, #tpu.memory_space<vmem>>, vector<128x128xf32>
    %c29 = arith.constant 29 : index
    %c0_294 = arith.constant 0 : index
    %c0_295 = arith.constant 0 : index
    %240 = vector.load %arg4[%c29, %c0_294, %c0_295] : memref<36x128x128xbf16, #tpu.memory_space<vmem>>, vector<1x128x128xbf16>
    %241 = vector.shape_cast %240 : vector<1x128x128xbf16> to vector<128x128xbf16>
    %cst_296 = arith.constant dense<0.000000e+00> : vector<128x128xf32>
    %242 = tpu.matmul %238, %241, %cst_296 {dimension_numbers = #tpu.dot_dimension_numbers<[1], [0], [0], [1], [0, 0, 1, 1], [], []>} : vector<128x128xbf16>, vector<128x128xbf16>, vector<128x128xf32> -> vector<128x128xf32>
    %243 = arith.addf %239, %242 : vector<128x128xf32>
    %c0_297 = arith.constant 0 : index
    %c0_298 = arith.constant 0 : index
    %244 = vector.load %arg8[%c0_297, %c0_298] : memref<128x128xf32, #tpu.memory_space<vmem>>, vector<128x128xf32>
    tpu.vector_store %arg8[%c0_297, %c0_298], %243 {strides = array<i32>} : memref<128x128xf32, #tpu.memory_space<vmem>>, vector<128x128xf32>,
    %c24_299 = arith.constant 24 : index
    %c0_300 = arith.constant 0 : index
    %c0_301 = arith.constant 0 : index
    %245 = vector.load %arg7[%c24_299, %c0_300, %c0_301] : memref<56x64x128xbf16, #tpu.memory_space<vmem>>, vector<8x16x128xbf16>
    %246 = vector.shape_cast %245 : vector<8x16x128xbf16> to vector<128x128xbf16>
    %c0_302 = arith.constant 0 : index
    %c0_303 = arith.constant 0 : index
    %247 = vector.load %arg8[%c0_302, %c0_303] : memref<128x128xf32, #tpu.memory_space<vmem>>, vector<128x128xf32>
    %c30_304 = arith.constant 30 : index
    %c0_305 = arith.constant 0 : index
    %c0_306 = arith.constant 0 : index
    %248 = vector.load %arg4[%c30_304, %c0_305, %c0_306] : memref<36x128x128xbf16, #tpu.memory_space<vmem>>, vector<1x128x128xbf16>
    %249 = vector.shape_cast %248 : vector<1x128x128xbf16> to vector<128x128xbf16>
    %cst_307 = arith.constant dense<0.000000e+00> : vector<128x128xf32>
    %250 = tpu.matmul %246, %249, %cst_307 {dimension_numbers = #tpu.dot_dimension_numbers<[1], [0], [0], [1], [0, 0, 1, 1], [], []>} : vector<128x128xbf16>, vector<128x128xbf16>, vector<128x128xf32> -> vector<128x128xf32>
    %251 = arith.addf %247, %250 : vector<128x128xf32>
    %c0_308 = arith.constant 0 : index
    %c0_309 = arith.constant 0 : index
    %252 = vector.load %arg8[%c0_308, %c0_309] : memref<128x128xf32, #tpu.memory_space<vmem>>, vector<128x128xf32>
    tpu.vector_store %arg8[%c0_308, %c0_309], %251 {strides = array<i32>} : memref<128x128xf32, #tpu.memory_space<vmem>>, vector<128x128xf32>,
    %c24_310 = arith.constant 24 : index
    %c24_311 = arith.constant 24 : index
    %c0_312 = arith.constant 0 : index
    %253 = vector.load %arg7[%c24_310, %c24_311, %c0_312] : memref<56x64x128xbf16, #tpu.memory_space<vmem>>, vector<8x16x128xbf16>
    %254 = vector.shape_cast %253 : vector<8x16x128xbf16> to vector<128x128xbf16>
    %c0_313 = arith.constant 0 : index
    %c0_314 = arith.constant 0 : index
    %255 = vector.load %arg8[%c0_313, %c0_314] : memref<128x128xf32, #tpu.memory_space<vmem>>, vector<128x128xf32>
    %c31 = arith.constant 31 : index
    %c0_315 = arith.constant 0 : index
    %c0_316 = arith.constant 0 : index
    %256 = vector.load %arg4[%c31, %c0_315, %c0_316] : memref<36x128x128xbf16, #tpu.memory_space<vmem>>, vector<1x128x128xbf16>
    %257 = vector.shape_cast %256 : vector<1x128x128xbf16> to vector<128x128xbf16>
    %cst_317 = arith.constant dense<0.000000e+00> : vector<128x128xf32>
    %258 = tpu.matmul %254, %257, %cst_317 {dimension_numbers = #tpu.dot_dimension_numbers<[1], [0], [0], [1], [0, 0, 1, 1], [], []>} : vector<128x128xbf16>, vector<128x128xbf16>, vector<128x128xf32> -> vector<128x128xf32>
    %259 = arith.addf %255, %258 : vector<128x128xf32>
    %c0_318 = arith.constant 0 : index
    %c0_319 = arith.constant 0 : index
    %260 = vector.load %arg8[%c0_318, %c0_319] : memref<128x128xf32, #tpu.memory_space<vmem>>, vector<128x128xf32>
    tpu.vector_store %arg8[%c0_318, %c0_319], %259 {strides = array<i32>} : memref<128x128xf32, #tpu.memory_space<vmem>>, vector<128x128xf32>,
    %c24_320 = arith.constant 24 : index
    %c48_321 = arith.constant 48 : index
    %c0_322 = arith.constant 0 : index
    %261 = vector.load %arg7[%c24_320, %c48_321, %c0_322] : memref<56x64x128xbf16, #tpu.memory_space<vmem>>, vector<8x16x128xbf16>
    %262 = vector.shape_cast %261 : vector<8x16x128xbf16> to vector<128x128xbf16>
    %c0_323 = arith.constant 0 : index
    %c0_324 = arith.constant 0 : index
    %263 = vector.load %arg8[%c0_323, %c0_324] : memref<128x128xf32, #tpu.memory_space<vmem>>, vector<128x128xf32>
    %c32 = arith.constant 32 : index
    %c0_325 = arith.constant 0 : index
    %c0_326 = arith.constant 0 : index
    %264 = vector.load %arg4[%c32, %c0_325, %c0_326] : memref<36x128x128xbf16, #tpu.memory_space<vmem>>, vector<1x128x128xbf16>
    %265 = vector.shape_cast %264 : vector<1x128x128xbf16> to vector<128x128xbf16>
    %cst_327 = arith.constant dense<0.000000e+00> : vector<128x128xf32>
    %266 = tpu.matmul %262, %265, %cst_327 {dimension_numbers = #tpu.dot_dimension_numbers<[1], [0], [0], [1], [0, 0, 1, 1], [], []>} : vector<128x128xbf16>, vector<128x128xbf16>, vector<128x128xf32> -> vector<128x128xf32>
    %267 = arith.addf %263, %266 : vector<128x128xf32>
    %c0_328 = arith.constant 0 : index
    %c0_329 = arith.constant 0 : index
    %268 = vector.load %arg8[%c0_328, %c0_329] : memref<128x128xf32, #tpu.memory_space<vmem>>, vector<128x128xf32>
    tpu.vector_store %arg8[%c0_328, %c0_329], %267 {strides = array<i32>} : memref<128x128xf32, #tpu.memory_space<vmem>>, vector<128x128xf32>,
    %c48_330 = arith.constant 48 : index
    %c0_331 = arith.constant 0 : index
    %c0_332 = arith.constant 0 : index
    %269 = vector.load %arg7[%c48_330, %c0_331, %c0_332] : memref<56x64x128xbf16, #tpu.memory_space<vmem>>, vector<8x16x128xbf16>
    %270 = vector.shape_cast %269 : vector<8x16x128xbf16> to vector<128x128xbf16>
    %c0_333 = arith.constant 0 : index
    %c0_334 = arith.constant 0 : index
    %271 = vector.load %arg8[%c0_333, %c0_334] : memref<128x128xf32, #tpu.memory_space<vmem>>, vector<128x128xf32>
    %c33 = arith.constant 33 : index
    %c0_335 = arith.constant 0 : index
    %c0_336 = arith.constant 0 : index
    %272 = vector.load %arg4[%c33, %c0_335, %c0_336] : memref<36x128x128xbf16, #tpu.memory_space<vmem>>, vector<1x128x128xbf16>
    %273 = vector.shape_cast %272 : vector<1x128x128xbf16> to vector<128x128xbf16>
    %cst_337 = arith.constant dense<0.000000e+00> : vector<128x128xf32>
    %274 = tpu.matmul %270, %273, %cst_337 {dimension_numbers = #tpu.dot_dimension_numbers<[1], [0], [0], [1], [0, 0, 1, 1], [], []>} : vector<128x128xbf16>, vector<128x128xbf16>, vector<128x128xf32> -> vector<128x128xf32>
    %275 = arith.addf %271, %274 : vector<128x128xf32>
    %c0_338 = arith.constant 0 : index
    %c0_339 = arith.constant 0 : index
    %276 = vector.load %arg8[%c0_338, %c0_339] : memref<128x128xf32, #tpu.memory_space<vmem>>, vector<128x128xf32>
    tpu.vector_store %arg8[%c0_338, %c0_339], %275 {strides = array<i32>} : memref<128x128xf32, #tpu.memory_space<vmem>>, vector<128x128xf32>,
    %c48_340 = arith.constant 48 : index
    %c24_341 = arith.constant 24 : index
    %c0_342 = arith.constant 0 : index
    %277 = vector.load %arg7[%c48_340, %c24_341, %c0_342] : memref<56x64x128xbf16, #tpu.memory_space<vmem>>, vector<8x16x128xbf16>
    %278 = vector.shape_cast %277 : vector<8x16x128xbf16> to vector<128x128xbf16>
    %c0_343 = arith.constant 0 : index
    %c0_344 = arith.constant 0 : index
    %279 = vector.load %arg8[%c0_343, %c0_344] : memref<128x128xf32, #tpu.memory_space<vmem>>, vector<128x128xf32>
    %c34 = arith.constant 34 : index
    %c0_345 = arith.constant 0 : index
    %c0_346 = arith.constant 0 : index
    %280 = vector.load %arg4[%c34, %c0_345, %c0_346] : memref<36x128x128xbf16, #tpu.memory_space<vmem>>, vector<1x128x128xbf16>
    %281 = vector.shape_cast %280 : vector<1x128x128xbf16> to vector<128x128xbf16>
    %cst_347 = arith.constant dense<0.000000e+00> : vector<128x128xf32>
    %282 = tpu.matmul %278, %281, %cst_347 {dimension_numbers = #tpu.dot_dimension_numbers<[1], [0], [0], [1], [0, 0, 1, 1], [], []>} : vector<128x128xbf16>, vector<128x128xbf16>, vector<128x128xf32> -> vector<128x128xf32>
    %283 = arith.addf %279, %282 : vector<128x128xf32>
    %c0_348 = arith.constant 0 : index
    %c0_349 = arith.constant 0 : index
    %284 = vector.load %arg8[%c0_348, %c0_349] : memref<128x128xf32, #tpu.memory_space<vmem>>, vector<128x128xf32>
    tpu.vector_store %arg8[%c0_348, %c0_349], %283 {strides = array<i32>} : memref<128x128xf32, #tpu.memory_space<vmem>>, vector<128x128xf32>,
    %c48_350 = arith.constant 48 : index
    %c48_351 = arith.constant 48 : index
    %c0_352 = arith.constant 0 : index
    %285 = vector.load %arg7[%c48_350, %c48_351, %c0_352] : memref<56x64x128xbf16, #tpu.memory_space<vmem>>, vector<8x16x128xbf16>
    %286 = vector.shape_cast %285 : vector<8x16x128xbf16> to vector<128x128xbf16>
    %c0_353 = arith.constant 0 : index
    %c0_354 = arith.constant 0 : index
    %287 = vector.load %arg8[%c0_353, %c0_354] : memref<128x128xf32, #tpu.memory_space<vmem>>, vector<128x128xf32>
    %c35 = arith.constant 35 : index
    %c0_355 = arith.constant 0 : index
    %c0_356 = arith.constant 0 : index
    %288 = vector.load %arg4[%c35, %c0_355, %c0_356] : memref<36x128x128xbf16, #tpu.memory_space<vmem>>, vector<1x128x128xbf16>
    %289 = vector.shape_cast %288 : vector<1x128x128xbf16> to vector<128x128xbf16>
    %cst_357 = arith.constant dense<0.000000e+00> : vector<128x128xf32>
    %290 = tpu.matmul %286, %289, %cst_357 {dimension_numbers = #tpu.dot_dimension_numbers<[1], [0], [0], [1], [0, 0, 1, 1], [], []>} : vector<128x128xbf16>, vector<128x128xbf16>, vector<128x128xf32> -> vector<128x128xf32>
    %291 = arith.addf %287, %290 : vector<128x128xf32>
    %c0_358 = arith.constant 0 : index
    %c0_359 = arith.constant 0 : index
    %292 = vector.load %arg8[%c0_358, %c0_359] : memref<128x128xf32, #tpu.memory_space<vmem>>, vector<128x128xf32>
    tpu.vector_store %arg8[%c0_358, %c0_359], %291 {strides = array<i32>} : memref<128x128xf32, #tpu.memory_space<vmem>>, vector<128x128xf32>,
    %c0_360 = arith.constant 0 : index
    %c0_361 = arith.constant 0 : index
    %293 = vector.load %arg8[%c0_360, %c0_361] : memref<128x128xf32, #tpu.memory_space<vmem>>, vector<128x128xf32>
    %294 = vector.shape_cast %293 : vector<128x128xf32> to vector<8x16x128xf32>
    %c0_362 = arith.constant 0 : index
    %c0_363 = arith.constant 0 : index
    %c0_364 = arith.constant 0 : index
    %c0_365 = arith.constant 0 : index
    %295 = vector.load %arg6[%c0_362, %c0_363, %c0_364, %c0_365] : memref<1x8x16x128xf32, #tpu.memory_space<vmem>>, vector<1x8x16x128xf32>
    %296 = vector.shape_cast %295 : vector<1x8x16x128xf32> to vector<8x16x128xf32>
    %297 = vector.shape_cast %294 : vector<8x16x128xf32> to vector<1x8x16x128xf32>
    tpu.vector_store %arg6[%c0_362, %c0_363, %c0_364, %c0_365], %297 {strides = array<i32>} : memref<1x8x16x128xf32, #tpu.memory_space<vmem>>, vector<1x8x16x128xf32>,
    return
  }
  func.func @transform_1(%arg0: i32, %arg1: i32, %arg2: i32) -> (i32, i32, i32) {
    %c0_i32 = arith.constant 0 : i32
    %c0_i32_0 = arith.constant 0 : i32
    %c0_i32_1 = arith.constant 0 : i32
    return %c0_i32, %c0_i32_0, %arg2 : i32, i32, i32
  }
  func.func @transform_2(%arg0: i32, %arg1: i32, %arg2: i32) -> (i32, i32) {
    %c0_i32 = arith.constant 0 : i32
    %c0_i32_0 = arith.constant 0 : i32
    return %c0_i32, %arg2 : i32, i32
  }
  func.func @transform_3(%arg0: i32, %arg1: i32, %arg2: i32) -> (i32, i32, i32, i32) {
    %c0_i32 = arith.constant 0 : i32
    %c0_i32_0 = arith.constant 0 : i32
    return %arg0, %arg1, %c0_i32, %arg2 : i32, i32, i32, i32
  }
}

</mosaic_0001>

<bundles_post_ra>
// kernel: tpu_custom_call.1
= control target key start
LH: loop header
LB: loop body
LE: loop exit
PB: predicated region body
PF: predicated region fallthrough
CT: control target
= control target key end

     0   :  { %8 = vsyncpa [#allocation5], 0  ;;  %s13633_s0 = inlined_call_operand.hbm [shape: bf16[2,64,64,128], index: 0, kind: input, shape index: {}]   ;;  %s13634_s1 = inlined_call_operand.hbm [shape: bf16[36,128,128], index: 1, kind: input, shape index: {}]   ;;  %s13635_s2 = inlined_call_operand.hbm [shape: f32[1,128], index: 2, kind: input, shape index: {}]   ;;  %s13636_s3 = inlined_call_operand.hbm [shape: f32[2,16,16,128], index: 3, kind: output, shape index: {}]  }
   0x1   :  { %9 = vsyncpa [#allocation8], 0 }
   0x2   :  { %10 = vsyncpa [#allocation6], 0 }
   0x3   :  { %12 = vsyncpa [#allocation6 + $0x1], 0  ;;  %s13140_s12 = smov 0   ;;  %s13142_s13 = smov 0  }
   0x4   :  { %s13144_s14 = smov 0   ;;  %s13146_s15 = smov 0  }
   0x5   :  { %s13148_s16 = smov 0   ;;  %s13150_s17 = smov 0  }
   0x6   :  { %s13152_s18 = smov 0   ;;  %s13154_s19 = smov 0  }
   0x7 LB: > { %13644 = sst [smem:[#allocation19_spill]] %s13106_s18  ;;  %s9926_s20 = sadd.s32 4294967295, %s13110_s19   ;;  %s13110_s19 = sphi %s13154_s19, %s18_s19   ;;  %s13106_s18 = sphi %s13152_s18, %s13658_s18   ;;  %s13102_s17 = sphi %s13150_s17, %s13663_s17   ;;  %s13098_s16 = sphi %s13148_s16, %s13656_s16   ;;  %s13094_s15 = sphi %s13146_s15, %s13662_s15   ;;  %s13090_s14 = sphi %s13144_s14, %s13661_s14   ;;  %s13086_s13 = sphi %s13142_s13, %s13660_s13   ;;  %s13082_s12 = sphi %s13140_s12, %s13659_s12  }
   0x8   : > { %s9927_s21 = sadd.s32 4294967294, %s13110_s19   ;;  %s33_s22 = sadd.s32 1, %s13102_s17 }
   0x9   : > { %s37_s23 = sadd.s32 1, %s13106_s18  ;;  %p35_p0 = scmp.ge.s32.totalorder %s33_s22, 2 }
   0xa   : > { %s100_s24 = sadd.s32 1, %s13090_s14  ;;  %p110_p1 = scmp.ne.s32.totalorder %s13090_s14, %s13086_s13 }
   0xb   : > { %p111_p2 = scmp.eq.s32.totalorder %s9926_s20, 3  ;;  %s13665_s22 = smov (%p35_p0, %s33_s22), 0 }
   0xc   : > { %13645 = sst [smem:[#allocation20_spill]] %s13665_s22  ;;  %s13667_s23 = smov (!%p35_p0, %s37_s23), %s13106_s18 }
   0xd   : > { %s94_s25 = ssub.s32 %s13102_s17, %s13665_s22  ;;  %p13192_p3 = por %p111_p2, %p110_p1 }
   0xe   : > { %p39_p4 = scmp.ge.s32.totalorder %s13667_s23, 2  ;;  %p116_p5 = scmp.ne.s32.totalorder %s13086_s13, %s13082_s12 }
   0xf   : > { %s13646_s26 = scalar_select %p13192_p3, 1, 0 }
  0x10   : > { %p117_p6 = scmp.eq.s32.totalorder %s9927_s21, 3  ;;  %p9928_p7 = scmp.ge.s32.totalorder %s13110_s19, 1 }
  0x11   : > { %s13669_s23 = smov (%p39_p4, %s13667_s23), 0  ;;  %p124_p9 = scmp.lt.s32.totalorder %s13110_s19, 5 }
  0x12   : > { %13647 = sst [smem:[#allocation21_spill]] %s13669_s23  ;;  %p13201_p8 = por %p117_p6, %p116_p5 }
  0x13   : > { %s93_s28 = ssub.s32 %s13106_s18, %s13669_s23  ;;  %p13208_p10 = pnand %p9928_p7, %p124_p9 }
  0x14   : > { %s13648_s27 = scalar_select %p13201_p8, 1, 0 }
  0x15   : > { %s95_s29 = sor.u32 %s94_s25, %s93_s28  ;;  %p13212_p12 = scmp.eq.s32.totalorder %s9926_s20, 0 }
  0x16   : > { %s13649_s30 = scalar_select %p13208_p10, 1, 0 }
  0x17   : > { %p98_p11 = scmp.eq.s32.totalorder %s95_s29, 0  ;;  %p12551_p13 = pneg %p13208_p10 }
  0x18   : > { %s13650_s4 = scalar_select %p13212_p12, 1, 0 }
  0x19   : > { %s13219_s5 = scalar_select %p98_p11, %s13090_s14, %s100_s24  }
  0x1a   : > { %s13112_s6 = smov [#allocation4]   ;;  %p13223_p0 = pnand %p13212_p12, %p12551_p13 }
  0x1b   : > { %s138_s7 = sshll.u32 %s13112_s6, 4  ;;  %s12926_s11 = scalar_lea.hbm %s13634_s1, 36864  ;;  %s139_s7 = int_to_ptr.vmem [resolvable:$true] %s138_s7 }
  0x1c   : > { %p12927_p1 = scmp.ne.s32.totalorder %s13634_s1, %s12926_s11  ;;  %p12928_p2 = pneg %p13223_p0 }
  0x1d   : > { %p12933_p6 = scmp.lt.u32.totalorder %s12926_s11, %s13634_s1 }
  0x1e   : > { %p12929_p4 = pnand %p12928_p2, %p12927_p1 }
  0x20   : > { %p12930_p5 = pneg %p12929_p4 }
  0x22   : > { %p12935_p7 = pnand %p12933_p6, %p12930_p5 }
  0x24   : > { %12938 = shalt.err (!%p12935_p7)
}
  0x25   : > { %s12939_s28 = scalar_lea.vmem %s139_s7, 36864  ;;  %p12947_p8 = scmp.lt.s32.totalorder %s139_s7, %s139_s7 }
  0x26   : > { %p12940_p9 = scmp.ne.s32.totalorder %s139_s7, %s12939_s28  ;;  %p12948_p3 = scmp.lt.s32.totalorder %s12939_s28, %s12939_s28 }
  0x28   : > { %p12942_p11 = pnand %p12940_p9, %p12928_p2  ;;  %p12949_p12 = por %p12948_p3, %p12947_p8 }
  0x2a   : > { %p12943_p13 = pneg %p12942_p11 }
  0x2c   : > { %p12950_p10 = pnand %p12949_p12, %p12943_p13 }
  0x2e   : > { %12953 = shalt.err (!%p12950_p10)
}
  0x2f   : > { %s13113_s29 = smov 64   ;;  %s13114_s6 = smov 4  }
  0x30   : > { %12554 = dma.hbm_to_vmem [thread:$0]  (!%p13223_p0), %s13634_s1, 36864, %s139_s7, [#allocation5], %s13113_s29, %s13113_s29, %s13114_s6  }
  0x31   : > { %s13115_s11 = smov [#allocation7]   ;;  %s12954_s25 = scalar_lea.hbm %s13635_s2, 16 }
  0x32   : > { %s154_s20 = sshll.u32 %s13115_s11, 4  ;;  %p12955_p3 = scmp.ne.s32.totalorder %s13635_s2, %s12954_s25  ;;  %s155_s20 = int_to_ptr.vmem [resolvable:$true] %s154_s20 }
  0x33   : > { %p12961_p12 = scmp.lt.u32.totalorder %s12954_s25, %s13635_s2 }
  0x34   : > { %p12957_p8 = pnand %p12955_p3, %p12928_p2 }
  0x36   : > { %p12958_p10 = pneg %p12957_p8 }
  0x38   : > { %p12963_p1 = pnand %p12961_p12, %p12958_p10 }
  0x3a   : > { %12966 = shalt.err (!%p12963_p1)
}
  0x3b   : > { %s12967_s7 = scalar_lea.vmem %s155_s20, 16  ;;  %s12974_s29 = scalar_lea.vmem %s155_s20, 32 }
  0x3c   : > { %p12968_p4 = scmp.ne.s32.totalorder %s155_s20, %s12967_s7  ;;  %p12975_p7 = scmp.lt.s32.totalorder %s155_s20, %s155_s20 }
  0x3d   : > { %p12976_p9 = scmp.lt.s32.totalorder %s12974_s29, %s12967_s7 }
  0x3e   : > { %p12970_p5 = pnand %p12968_p4, %p12928_p2 }
  0x3f   : > { %p12977_p11 = por %p12976_p9, %p12975_p7 }
  0x40   : > { %p12971_p6 = pneg %p12970_p5 }
  0x42   : > { %p12978_p13 = pnand %p12977_p11, %p12971_p6 }
  0x44   : > { %12981 = shalt.err (!%p12978_p13)
}
  0x45   : > { %12557 = dma.hbm_to_vmem [thread:$0]  (!%p13223_p0), %s13635_s2, 16, %s155_s20, [#allocation8]  }
  0x46   : > { %p13652_p3 = scmp.ne.s32.totalorder %s13649_s30, 0 }
  0x47   : > { %p13653_p8 = scmp.ne.s32.totalorder (!%p13652_p3), %s13650_s4, 0 }
  0x48   : > { %167 = sbr.rel (%p13652_p3) target bundleno = 944 (0x3b0), region = 28 }
  0x4f   : > { %13067 = dma.done.wait (%p13653_p8), [#allocation5], 36864  }
  0x50   : > { %13069 = vsyncadd (%p13653_p8), [#allocation5], 4294930432 }
  0x51   : > { %13071 = dma.done.wait (%p13653_p8), [#allocation8], 16  }
  0x52   : > { %13073 = vsyncadd (%p13653_p8), [#allocation8], 4294967280  ;;  %s185_s22 = sand.u32 1, %s13086_s13  }
  0x53   : > { %s9934_s8 = sshll.u32 %s185_s22, 7 }
  0x54   : > { %s13282_s6 = scalar_lea.vmem [#allocation9], %s9934_s8 }
  0x55   : > { %s10235_s30 = sshll.u32 %s13094_s15, 6  ;;  %s9937_s9 = sshll.u32 %s13098_s16, 9 }
  0x56   : > { %s193_s10 = sadd.s32 %s10235_s30, %s9937_s9  ;;  %s13116_s20 = smov [#allocation2]  }
  0x57   : > { %s9938_s11 = sshll.u32 %s193_s10, 6  ;;  %s203_s21 = sshll.u32 %s13116_s20, 4  ;;  %s204_s21 = int_to_ptr.vmem [resolvable:$true] %s203_s21 }
  0x58   : > { %s195_s4 = scalar_lea.hbm %s13633_s0, %s9938_s11  ;;  %s12984_s23 = scalar_lea.hbm %s13633_s0, 65536 }
  0x59   : > { %s12982_s28 = scalar_lea.hbm %s195_s4, 28672  ;;  %p12985_p2 = scmp.lt.u32.totalorder %s195_s4, %s13633_s0 }
  0x5a   : > { %p12983_p0 = scmp.ne.s32.totalorder %s195_s4, %s12982_s28  ;;  %p12986_p10 = scmp.lt.u32.totalorder %s12984_s23, %s12982_s28 }
  0x5b   : > { %p12988_p1 = scmp.lt.u32.totalorder %s12982_s28, %s195_s4 }
  0x5c   : > { %p12987_p12 = por %p12986_p10, %p12985_p2 }
  0x5e   : > { %p12989_p4 = por %p12988_p1, %p12987_p12 }
  0x60   : > { %p12990_p5 = pnand %p12989_p4, %p12983_p0 }
  0x62   : > { %12993 = shalt.err (!%p12990_p5)  }
  0x63   : > { %s12994_s30 = scalar_lea.vmem %s204_s21, 28672  ;;  %p12999_p7 = scmp.lt.s32.totalorder %s204_s21, %s204_s21 }
  0x64   : > { %p12995_p6 = scmp.ne.s32.totalorder %s204_s21, %s12994_s30  ;;  %p13000_p9 = scmp.lt.s32.totalorder %s12994_s30, %s12994_s30 }
  0x66   : > { %p13001_p11 = por %p13000_p9, %p12999_p7 }
  0x68   : > { %p13002_p13 = pnand %p13001_p11, %p12995_p6 }
  0x6a   : > { %13005 = shalt.err (!%p13002_p13)  }
  0x6b   : > { %206 = dma.hbm_to_vmem [thread:$0]  %s195_s4, 28672, %s204_s21, [#allocation10] }
  0x6c   : > { %13074 = dma.done.wait [#allocation10], 28672 }
  0x6d   : > { %13075 = vsyncadd [#allocation10], 4294938624  ;;  %v12638_v0 = vld [vmem:[#allocation4] sm:$0xff]   ;;  %v12640_v2 = vld [vmem:[#allocation4 + $0x8] sm:$0xff]   ;;  %vm268_vm0 = vcmask 1046528   ;;  %vm5209_vm1 = vcmask 1044480  }
  0x6e   : > { %v12639_v1 = vld [vmem:[#allocation4 + $0x480] sm:$0xff]   ;;  %10813 = vmatprep.subr.bf16.mxu1 %v12638_v0  ;;  %v12641_v3 = vld [vmem:[#allocation4 + $0x488] sm:$0xff]   ;;  %v12642_v4 = vld [vmem:[#allocation4 + $0x10] sm:$0xff]   ;;  %vm542_vm2 = vcmask 1043456   ;;  %vm817_vm3 = vcmask 1040384   ;;  %vm5758_vm4 = vcmask 1042432  }
  0x6f   : > { %11389 = vmatprep.subr.bf16.mxu0 %v12639_v1  ;;  %10814 = vmatpush3.bf16.msra.mxu1 %v12638_v0  ;;  %v12643_v5 = vld [vmem:[#allocation4 + $0x490] sm:$0xff]   ;;  %v12644_v6 = vld [vmem:[#allocation4 + $0x18] sm:$0xff]   ;;  %v12646_v8 = vld [vmem:[#allocation4 + $0x20] sm:$0xff]   ;;  %vm2739_vm5 = vcmask 1041408   ;;  %vm3288_vm6 = vcmask 1045504   ;;  %s10236_s9 = sshll.u32 %s13094_s15, 4 }
  0x70   : > { %11390 = vmatpush3.bf16.msra.mxu0 %v12639_v1  ;;  %10815 = vmatprep.subr.bf16.mxu1 %v12640_v2  ;;  %v12645_v7 = vld [vmem:[#allocation4 + $0x498] sm:$0xff]   ;;  %v12647_v9 = vld [vmem:[#allocation4 + $0x4a0] sm:$0xff]   ;;  %v12648_v10 = vld [vmem:[#allocation4 + $0x28] sm:$0xff]   ;;  %s10231_s10 = sshll.u32 %s13098_s16, 5  ;;  %s9827_s16 = sshll.u32 %s13282_s6, 4  ;;  %s13574_s16 = int_to_ptr.vmem [resolvable:$true] %s9827_s16 }
  0x71   : > { %11391 = vmatprep.subr.bf16.mxu0 %v12641_v3  ;;  %v236_v11 = vld [vmem:[#allocation2 + $0x248] sm:$0xfe]  ;;  %v237_v12 = vld [vmem:[#allocation2 + $0x250] sm:$0x1]  ;;  %v5177_v13 = vld [vmem:[#allocation2 + $0xc0] sm:$0xf8]  ;;  %s9824_s11 = sadd.s32 %s10236_s9, %s10231_s10 }
  0x72   : > { %v12649_v14 = vld [vmem:[#allocation4 + $0x4a8] sm:$0xff]   ;;  %v269_v15 = vrot.slane %v236_v11, 1  ;;  %v270_v16 = vrot.slane %v237_v12, 1  ;;  %v5210_v18 = vrot.slane %v5177_v13, 3  ;;  %v12650_v19 = vld [vmem:[#allocation4 + $0x30] sm:$0xff]   ;;  %v12652_v29 = vld [vmem:[#allocation4 + $0x38] sm:$0xff]  }
  0x73   : > { %10816 = vmatpush3.bf16.msra.mxu1 %v12640_v2  ;;  %v5178_v17 = vld [vmem:[#allocation2 + $0xc8] sm:$0x7]  ;;  %v12651_v21 = vld [vmem:[#allocation4 + $0x4b0] sm:$0xff]   ;;  %v5179_v26 = vld [vmem:[#allocation2 + $0xe0] sm:$0xf8]  ;;  %s10232_s15 = sshll.u32 %s9824_s11, 7 }
  0x74   : > { %11392 = vmatpush3.bf16.msra.mxu0 %v12641_v3  ;;  %10817 = vmatprep.subr.bf16.mxu1 %v12642_v4  ;;  %v5211_v20 = vrot.slane %v5178_v17, 3  ;;  %v271_v22 = vsel %vm268_vm0, %v269_v15, %v270_v16  ;;  %v238_v24 = vld [vmem:[#allocation2 + $0x268] sm:$0xfe]  ;;  %v239_v25 = vld [vmem:[#allocation2 + $0x270] sm:$0x1]  ;;  %v12653_v31 = vld [vmem:[#allocation4 + $0x4b8] sm:$0xff]   ;;  %s13572_s24 = scalar_lea.hbm %s13636_s3, %s10232_s15 }
  0x75   : > { %11393 = vmatprep.subr.bf16.mxu0 %v12643_v5  ;;  %10829 = vmatprep.mubr.bf16.mxu1 %v271_v22  ;;  %v5180_v27 = vld [vmem:[#allocation2 + $0xe8] sm:$0x7]  ;;  %v241_v30 = vld [vmem:[#allocation2 + $0x290] sm:$0x1]  ;;  %v272_v32 = vrot.slane %v238_v24, 1  ;;  %v273_v33 = vrot.slane %v239_v25, 1 }
  0x76   : > { %v5212_v23 = vsel %vm5209_vm1, %v5210_v18, %v5211_v20  ;;  %v240_v28 = vld [vmem:[#allocation2 + $0x288] sm:$0xfe]  ;;  %v5213_v34 = vrot.slane %v5179_v26, 3  ;;  %v5214_v35 = vrot.slane %v5180_v27, 3  ;;  %v12654_v36 = vld [vmem:[#allocation4 + $0x40] sm:$0xff]   ;;  %v276_v38 = vrot.slane %v241_v30, 1 }
  0x77   : > { %10818 = vmatpush3.bf16.msra.mxu1 %v12642_v4  ;;  %11405 = vmatprep.mubr.bf16.mxu0 %v5212_v23  ;;  %v275_v37 = vrot.slane %v240_v28, 1  ;;  %v5181_v39 = vld [vmem:[#allocation2 + $0x100] sm:$0xf8]  ;;  %v5182_v41 = vld [vmem:[#allocation2 + $0x108] sm:$0x7]  ;;  %v274_v46 = vsel %vm268_vm0, %v272_v32, %v273_v33  ;;  %v12658_v59 = vld [vmem:[#allocation4 + $0x50] sm:$0xff]  }
  0x78   : > { %11394 = vmatpush3.bf16.msra.mxu0 %v12643_v5  ;;  %10819 = vmatprep.subr.bf16.mxu1 %v12644_v6  ;;  %v12655_v40 = vld [vmem:[#allocation4 + $0x4c0] sm:$0xff]   ;;  %v242_v42 = vld [vmem:[#allocation2 + $0x2a8] sm:$0xfe]  ;;  %v243_v43 = vld [vmem:[#allocation2 + $0x2b0] sm:$0x1]  ;;  %v5216_v47 = vrot.slane %v5181_v39, 3  ;;  %v5215_v49 = vsel %vm5209_vm1, %v5213_v34, %v5214_v35 }
  0x79   : > { %11395 = vmatprep.subr.bf16.mxu0 %v12645_v7  ;;  %v5183_v44 = vld [vmem:[#allocation2 + $0x120] sm:$0xf8]  ;;  %v5184_v45 = vld [vmem:[#allocation2 + $0x128] sm:$0x7]  ;;  %v5217_v48 = vrot.slane %v5182_v41, 3  ;;  %v278_v52 = vrot.slane %v242_v42, 1  ;;  %v277_v58 = vsel %vm268_vm0, %v275_v37, %v276_v38 }
  0x7a   : > { %v12656_v50 = vld [vmem:[#allocation4 + $0x48] sm:$0xff]   ;;  %v279_v53 = vrot.slane %v243_v43, 1  ;;  %v5219_v54 = vrot.slane %v5183_v44, 3  ;;  %v5220_v55 = vrot.slane %v5184_v45, 3  ;;  %v245_v57 = vld [vmem:[#allocation2 + $0x2d0] sm:$0x1] }
  0x7b   : > { %10820 = vmatpush3.bf16.msra.mxu1 %v12644_v6  ;;  %v12657_v51 = vld [vmem:[#allocation4 + $0x4c8] sm:$0xff]   ;;  %v5185_v60 = vld [vmem:[#allocation2 + $0x140] sm:$0xf8]  ;;  %v5218_v62 = vsel %vm5209_vm1, %v5216_v47, %v5217_v48  ;;  %v12659_v63 = vld [vmem:[#allocation4 + $0x4d0] sm:$0xff]   ;;  %v282_v5 = vrot.slane %v245_v57, 1  ;;  %s13581_s25 = scalar_lea.sflag [#allocation6], %s185_s22 }
  0x7c   : > { %11396 = vmatpush3.bf16.msra.mxu0 %v12645_v7  ;;  %10821 = vmatprep.subr.bf16.mxu1 %v12646_v8  ;;  %v244_v56 = vld [vmem:[#allocation2 + $0x2c8] sm:$0xfe]  ;;  %v247_v1 = vld [vmem:[#allocation2 + $0x2f0] sm:$0x1]  ;;  %v5187_v2 = vld [vmem:[#allocation2 + $0x160] sm:$0xf8]  ;;  %v280_v6 = vsel %vm268_vm0, %v278_v52, %v279_v53  ;;  %v5221_v7 = vsel %vm5209_vm1, %v5219_v54, %v5220_v55 }
  0x7d   : > { %11397 = vmatprep.subr.bf16.mxu0 %v12647_v9  ;;  %v5186_v61 = vld [vmem:[#allocation2 + $0x148] sm:$0x7]  ;;  %v281_v4 = vrot.slane %v244_v56, 1  ;;  %v12661_v11 = vld [vmem:[#allocation4 + $0x4d8] sm:$0xff]   ;;  %v285_v13 = vrot.slane %v247_v1, 1  ;;  %v12663_v23 = vld [vmem:[#allocation4 + $0x4e0] sm:$0xff]  }
  0x7e   : > { %v246_v0 = vld [vmem:[#allocation2 + $0x2e8] sm:$0xfe]  ;;  %v249_v17 = vld [vmem:[#allocation2 + $0x310] sm:$0x1]  ;;  %v5189_v20 = vld [vmem:[#allocation2 + $0x180] sm:$0xf8] }
  0x7f   : > { %10822 = vmatpush3.bf16.msra.mxu1 %v12646_v8  ;;  %v5188_v3 = vld [vmem:[#allocation2 + $0x168] sm:$0x7]  ;;  %v5222_v8 = vrot.slane %v5185_v60, 3  ;;  %v284_v12 = vrot.slane %v246_v0, 1  ;;  %v283_v18 = vsel %vm268_vm0, %v281_v4, %v282_v5  ;;  %v251_v25 = vld [vmem:[#allocation2 + $0x330] sm:$0x1] }
  0x80   : > { %11398 = vmatpush3.bf16.msra.mxu0 %v12647_v9  ;;  %10823 = vmatprep.subr.bf16.mxu1 %v12648_v10  ;;  %v5223_v9 = vrot.slane %v5186_v61, 3  ;;  %v5226_v15 = vrot.slane %v5188_v3, 3  ;;  %v248_v16 = vld [vmem:[#allocation2 + $0x308] sm:$0xfe]  ;;  %v5191_v26 = vld [vmem:[#allocation2 + $0x1a0] sm:$0xf8] }
  0x81   : > { %11399 = vmatprep.subr.bf16.mxu0 %v12649_v14  ;;  %v250_v24 = vld [vmem:[#allocation2 + $0x328] sm:$0xfe]  ;;  %v287_v28 = vrot.slane %v248_v16, 1  ;;  %v286_v30 = vsel %vm268_vm0, %v284_v12, %v285_v13  ;;  %v5228_v32 = vrot.slane %v5189_v20, 3  ;;  %v291_v37 = vrot.slane %v251_v25, 1  ;;  %v12666_v43 = vld [vmem:[#allocation4 + $0x70] sm:$0xff]  }
  0x82   : > { %v5224_v22 = vsel %vm5209_vm1, %v5222_v8, %v5223_v9  ;;  %v5192_v27 = vld [vmem:[#allocation2 + $0x1a8] sm:$0x7]  ;;  %v5231_v38 = vrot.slane %v5191_v26, 3  ;;  %v511_v41 = vld [vmem:[#allocation2 + $0x250] sm:$0xf]  ;;  %v12668_v56 = vld [vmem:[#allocation4 + $0x78] sm:$0xff]  }
  0x83   : > { %10824 = vmatpush3.bf16.msra.mxu1 %v12648_v10  ;;  %v12660_v10 = vld [vmem:[#allocation4 + $0x58] sm:$0xff]   ;;  %v12664_v34 = vld [vmem:[#allocation4 + $0x68] sm:$0xff]   ;;  %v5232_v39 = vrot.slane %v5192_v27, 3  ;;  %v5453_v45 = vld [vmem:[#allocation2 + $0xd0] sm:$0xf]  ;;  %v544_v53 = vrot.slane %v511_v41, 4 }
  0x84   : > { %11400 = vmatpush3.bf16.msra.mxu0 %v12649_v14  ;;  %10825 = vmatprep.subr.bf16.mxu1 %v12650_v19  ;;  %v5225_v14 = vrot.slane %v5187_v2, 3  ;;  %v12665_v35 = vld [vmem:[#allocation4 + $0x4e8] sm:$0xff]   ;;  %v12667_v47 = vld [vmem:[#allocation4 + $0x4f0] sm:$0xff]   ;;  %v12669_v57 = vld [vmem:[#allocation4 + $0x4f8] sm:$0xff]   ;;  %s13006_s4 = scalar_lea.vmem %s13574_s16, 2048  ;;  %p13654_p8 = scmp.ne.s32.totalorder %s13646_s26, 0 }
  0x85   : > { %11401 = vmatprep.subr.bf16.mxu0 %v12651_v21  ;;  %v5452_v44 = vld [vmem:[#allocation2 + $0xc8] sm:$0xf0]  ;;  %v5233_v55 = vsel %vm5209_vm1, %v5231_v38, %v5232_v39  ;;  %v515_v1 = vld [vmem:[#allocation2 + $0x290] sm:$0xf]  ;;  %v12670_v3 = vld [vmem:[#allocation4 + $0x80] sm:$0xff]   ;;  %p13007_p3 = scmp.ne.s32.totalorder %s13574_s16, %s13006_s4  ;;  %s13117_s28 = smov [#allocation9]  }
  0x86   : > { %v512_v48 = vld [vmem:[#allocation2 + $0x268] sm:$0xf0]  ;;  %v5457_v5 = vld [vmem:[#allocation2 + $0x110] sm:$0xf]  ;;  %v12671_v9 = vld [vmem:[#allocation4 + $0x500] sm:$0xff]   ;;  %s13010_s7 = sshll.u32 %s13117_s28, 4  ;;  %s13011_s7 = int_to_ptr.vmem [resolvable:$false] %s13010_s7 }
  0x87   : > { %10826 = vmatpush3.bf16.msra.mxu1 %v12650_v19  ;;  %v12662_v19 = vld [vmem:[#allocation4 + $0x60] sm:$0xff]   ;;  %v546_v60 = vrot.slane %v512_v48, 4  ;;  %v514_v0 = vld [vmem:[#allocation2 + $0x288] sm:$0xf0]  ;;  %v517_v8 = vld [vmem:[#allocation2 + $0x2b0] sm:$0xf]  ;;  %p13008_p0 = pnand %p13007_p3, %p13654_p8  ;;  %p13013_p10 = scmp.lt.s32.totalorder %s13574_s16, %s13011_s7 }
  0x88   : > { %11402 = vmatpush3.bf16.msra.mxu0 %v12651_v21  ;;  %10827 = vmatprep.subr.bf16.mxu1 %v12652_v29  ;;  %v5190_v21 = vld [vmem:[#allocation2 + $0x188] sm:$0x7]  ;;  %v5456_v4 = vld [vmem:[#allocation2 + $0x108] sm:$0xf0]  ;;  %v549_v13 = vrot.slane %v514_v0, 4  ;;  %v553_v20 = vrot.slane %v517_v8, 4 }
  0x89   : > { %11403 = vmatprep.subr.bf16.mxu0 %v12653_v31  ;;  %v5229_v33 = vrot.slane %v5190_v21, 3  ;;  %v12673_v16 = vld [vmem:[#allocation4 + $0x508] sm:$0xff]   ;;  %v519_v25 = vld [vmem:[#allocation2 + $0x2d0] sm:$0xf]  ;;  %v12677_v38 = vld [vmem:[#allocation4 + $0x518] sm:$0xff]   ;;  %p13009_p2 = pneg %p13008_p0  ;;  %s13012_s29 = scalar_lea.vmem %s13011_s7, 4096 }
  0x8a   : > { %v12674_v27 = vld [vmem:[#allocation4 + $0x90] sm:$0xff]   ;;  %v5464_v48 = vld [vmem:[#allocation2 + $0x188] sm:$0xf0]  ;;  %p13014_p12 = scmp.lt.s32.totalorder %s13012_s29, %s13006_s4 }
  0x8b   : > { %10828 = vmatpush3.bf16.msra.mxu1 %v12652_v29  ;;  %v288_v29 = vrot.slane %v249_v17, 1  ;;  %v5490_v17 = vrot.slane %v5456_v4, 4  ;;  %v12681_v0 = vld [vmem:[#allocation4 + $0x528] sm:$0xff]   ;;  %v786_v8 = vld [vmem:[#allocation2 + $0x250] sm:$0x7f] }
  0x8c   : > { %11404 = vmatpush3.bf16.msra.mxu0 %v12653_v31  ;;  %10845 = vmatprep.subr.bf16.mxu1 %v12654_v36  ;;  %v5227_v31 = vsel %vm5209_vm1, %v5225_v14, %v5226_v15  ;;  %v550_v14 = vrot.slane %v515_v1, 4  ;;  %v12672_v15 = vld [vmem:[#allocation4 + $0x88] sm:$0xff]   ;;  %p13015_p1 = por %p13014_p12, %p13013_p10 }
  0x8d   : > { %11421 = vmatprep.subr.bf16.mxu0 %v12655_v40  ;;  %v289_v42 = vsel %vm268_vm0, %v287_v28, %v288_v29  ;;  %v5460_v28 = vld [vmem:[#allocation2 + $0x148] sm:$0xf0] }
  0x8e   : > { %10830 = vmatmul.mubr.bf16.vlgmr.msra.gmra.mrb[0].mxu1 %v274_v46  ;;  %v5230_v46 = vsel %vm5209_vm1, %v5228_v32, %v5229_v33  ;;  %v551_v26 = vsel %vm542_vm2, %v549_v13, %v550_v14  ;;  %v521_v32 = vld [vmem:[#allocation2 + $0x2f0] sm:$0xf]  ;;  %v5496_v39 = vrot.slane %v5460_v28, 4  ;;  %v5466_v4 = vld [vmem:[#allocation2 + $0x1a8] sm:$0xf0]  ;;  %p13016_p4 = pnand %p13015_p1, %p13009_p2 }
  0x8f   : > { %11406 = vmatmul.mubr.bf16.vlgmr.msra.gmra.mrb[0].mxu0 %v5215_v49  ;;  %10846 = vmatpush3.bf16.msra.mxu1 %v12654_v36  ;;  %v290_v36 = vrot.slane %v250_v24, 1  ;;  %v513_v49 = vld [vmem:[#allocation2 + $0x270] sm:$0xf]  ;;  %v518_v24 = vld [vmem:[#allocation2 + $0x2c8] sm:$0xf0]  ;;  %v5505_v13 = vrot.slane %v5466_v4, 4 }
  0x90   : > { %11422 = vmatpush3.bf16.msra.mxu0 %v12655_v40  ;;  %10847 = vmatprep.subr.bf16.mxu1 %v12656_v50  ;;  %v510_v40 = vld [vmem:[#allocation2 + $0x248] sm:$0xf0]  ;;  %v547_v61 = vrot.slane %v513_v49, 4  ;;  %v12675_v33 = vld [vmem:[#allocation4 + $0x510] sm:$0xff]  }
  0x91   : > { %11423 = vmatprep.subr.bf16.mxu0 %v12657_v51  ;;  %10833 = vmatprep.mubr.bf16.mxu1 %v277_v58  ;;  %v543_v52 = vrot.slane %v510_v40, 4  ;;  %v292_v54 = vsel %vm268_vm0, %v290_v36, %v291_v37  ;;  %v5484_v58 = vrot.slane %v5452_v44, 4  ;;  %v555_v36 = vrot.slane %v518_v24, 4  ;;  %v5462_v44 = vld [vmem:[#allocation2 + $0x168] sm:$0xf0] }
  0x92   : > { %11409 = vmatprep.mubr.bf16.mxu0 %v5218_v62  ;;  %v548_v12 = vsel %vm542_vm2, %v546_v60, %v547_v61  ;;  %v556_v37 = vrot.slane %v519_v25, 4  ;;  %v5502_v61 = vrot.slane %v5464_v48, 4  ;;  %v788_v24 = vld [vmem:[#allocation2 + $0x270] sm:$0x7f]  ;;  %v789_v28 = vld [vmem:[#allocation2 + $0x288] sm:$0x80] }
  0x93   : > { %10848 = vmatpush3.bf16.msra.mxu1 %v12656_v50  ;;  %v5454_v50 = vld [vmem:[#allocation2 + $0xe8] sm:$0xf0]  ;;  %v545_v2 = vsel %vm542_vm2, %v543_v52, %v544_v53  ;;  %v5499_v53 = vrot.slane %v5462_v44, 4  ;;  %v5728_v25 = vld [vmem:[#allocation2 + $0xf0] sm:$0xe0] }
  0x94   : > { %11424 = vmatpush3.bf16.msra.mxu0 %v12657_v51  ;;  %10849 = vmatprep.subr.bf16.mxu1 %v12658_v59  ;;  %v5455_v51 = vld [vmem:[#allocation2 + $0xf0] sm:$0xf]  ;;  %v5487_v62 = vrot.slane %v5454_v50, 4  ;;  %v557_v49 = vsel %vm542_vm2, %v555_v36, %v556_v37  ;;  %v12678_v50 = vld [vmem:[#allocation4 + $0xa0] sm:$0xff]   ;;  %v5730_v37 = vld [vmem:[#allocation2 + $0x110] sm:$0xe0] }
  0x95   : > { %11425 = vmatprep.subr.bf16.mxu0 %v12659_v63  ;;  %v792_v48 = vld [vmem:[#allocation2 + $0x2b0] sm:$0x7f] }
  0x96   : > { %10834 = vmatmul.mubr.bf16.gmra.mrb[4].mxu1 %v280_v6  ;;  %v516_v6 = vld [vmem:[#allocation2 + $0x2a8] sm:$0xf0] }
  0x97   : > { %11410 = vmatmul.mubr.bf16.gmra.mrb[4].mxu0 %v5221_v7  ;;  %10850 = vmatpush3.bf16.msra.mxu1 %v12658_v59  ;;  %v5485_v59 = vrot.slane %v5453_v45, 4  ;;  %v5463_v45 = vld [vmem:[#allocation2 + $0x170] sm:$0xf] }
  0x98   : > { %11426 = vmatpush3.bf16.msra.mxu0 %v12659_v63  ;;  %10851 = vmatprep.subr.bf16.mxu1 %v12660_v10  ;;  %v5488_v63 = vrot.slane %v5455_v51, 4  ;;  %v5465_v51 = vld [vmem:[#allocation2 + $0x190] sm:$0xf] }
  0x99   : > { %11427 = vmatprep.subr.bf16.mxu0 %v12661_v11  ;;  %10837 = vmatprep.mubr.bf16.mxu1 %v283_v18  ;;  %v5486_v7 = vsel %vm542_vm2, %v5484_v58, %v5485_v59  ;;  %v5491_v18 = vrot.slane %v5457_v5, 4  ;;  %v12680_v58 = vld [vmem:[#allocation4 + $0xa8] sm:$0xff]   ;;  %v5467_v5 = vld [vmem:[#allocation2 + $0x1b0] sm:$0xf] }
  0x9a   : > { %11413 = vmatprep.mubr.bf16.mxu0 %v5224_v22  ;;  %v5489_v21 = vsel %vm542_vm2, %v5487_v62, %v5488_v63  ;;  %v5503_v62 = vrot.slane %v5465_v51, 4  ;;  %v5506_v14 = vrot.slane %v5467_v5, 4  ;;  %v5733_v51 = vld [vmem:[#allocation2 + $0x138] sm:$0x1f]  ;;  %v795_v5 = vld [vmem:[#allocation2 + $0x2e8] sm:$0x80] }
  0x9b   : > { %10852 = vmatpush3.bf16.msra.mxu1 %v12660_v10  ;;  %v5458_v10 = vld [vmem:[#allocation2 + $0x128] sm:$0xf0]  ;;  %v5492_v29 = vsel %vm542_vm2, %v5490_v17, %v5491_v18  ;;  %v819_v17 = vrot.slane %v786_v8, 7  ;;  %v12684_v18 = vld [vmem:[#allocation4 + $0xb8] sm:$0xff]   ;;  %v796_v8 = vld [vmem:[#allocation2 + $0x2f0] sm:$0x7f] }
  0x9c   : > { %11428 = vmatpush3.bf16.msra.mxu0 %v12661_v11  ;;  %10853 = vmatprep.subr.bf16.mxu1 %v12662_v19  ;;  %v5459_v11 = vld [vmem:[#allocation2 + $0x130] sm:$0xf]  ;;  %v5493_v22 = vrot.slane %v5458_v10, 4  ;;  %v5726_v10 = vld [vmem:[#allocation2 + $0xd0] sm:$0xe0] }
  0x9d   : > { %11429 = vmatprep.subr.bf16.mxu0 %v12663_v23 }
  0x9e   : > { %10838 = vmatmul.mubr.bf16.gmra.mrb[8].mxu1 %v286_v30  ;;  %v5461_v30 = vld [vmem:[#allocation2 + $0x150] sm:$0xf] }
  0x9f   : > { %11414 = vmatmul.mubr.bf16.gmra.mrb[8].mxu0 %v5227_v31  ;;  %10854 = vmatpush3.bf16.msra.mxu1 %v12662_v19  ;;  %v552_v19 = vrot.slane %v516_v6, 4  ;;  %v520_v31 = vld [vmem:[#allocation2 + $0x2e8] sm:$0xf0]  ;;  %v5497_v40 = vrot.slane %v5461_v30, 4 }
  0xa0   : > { %11430 = vmatpush3.bf16.msra.mxu0 %v12663_v23  ;;  %10855 = vmatprep.subr.bf16.mxu1 %v12664_v34  ;;  %v5494_v23 = vrot.slane %v5459_v11, 4  ;;  %v558_v41 = vrot.slane %v520_v31, 4  ;;  %v785_v6 = vld [vmem:[#allocation2 + $0x248] sm:$0x80]  ;;  %v5727_v11 = vld [vmem:[#allocation2 + $0xd8] sm:$0x1f] }
  0xa1   : > { %11431 = vmatprep.subr.bf16.mxu0 %v12665_v35  ;;  %10841 = vmatprep.mubr.bf16.mxu1 %v289_v42  ;;  %v559_v42 = vrot.slane %v521_v32, 4  ;;  %v5498_v52 = vsel %vm542_vm2, %v5496_v39, %v5497_v40  ;;  %v12687_v39 = vld [vmem:[#allocation4 + $0x540] sm:$0xff]   ;;  %v824_v40 = vrot.slane %v789_v28, 7 }
  0xa2   : > { %11417 = vmatprep.mubr.bf16.mxu0 %v5230_v46  ;;  %v522_v46 = vld [vmem:[#allocation2 + $0x308] sm:$0xf0] }
  0xa3   : > { %10856 = vmatpush3.bf16.msra.mxu1 %v12664_v34  ;;  %v554_v34 = vsel %vm542_vm2, %v552_v19, %v553_v20  ;;  %v561_v59 = vrot.slane %v522_v46, 4  ;;  %v560_v63 = vsel %vm542_vm2, %v558_v41, %v559_v42  ;;  %v5759_v19 = vrot.slane %v5726_v10, 5  ;;  %v12688_v42 = vld [vmem:[#allocation4 + $0xc8] sm:$0xff]  }
  0xa4   : > { %11432 = vmatpush3.bf16.msra.mxu0 %v12665_v35  ;;  %10857 = vmatprep.subr.bf16.mxu1 %v12666_v43  ;;  %v12676_v35 = vld [vmem:[#allocation4 + $0x98] sm:$0xff]   ;;  %v5760_v20 = vrot.slane %v5727_v11, 5  ;;  %v5765_v46 = vrot.slane %v5730_v37, 5  ;;  %v1062_v37 = vld [vmem:[#allocation2 + $0x310] sm:$0x1] }
  0xa5   : > { %11433 = vmatprep.subr.bf16.mxu0 %v12667_v47  ;;  %v5737_v11 = vld [vmem:[#allocation2 + $0x178] sm:$0x1f] }
  0xa6   : > { %10842 = vmatmul.mubr.bf16.gmra.mrb[12].mxu1 %v292_v54  ;;  %v5500_v54 = vrot.slane %v5463_v45, 4  ;;  %v5761_v31 = vsel %vm5758_vm4, %v5759_v19, %v5760_v20  ;;  %v12689_v45 = vld [vmem:[#allocation4 + $0x548] sm:$0xff]   ;;  %v5739_v19 = vld [vmem:[#allocation2 + $0x198] sm:$0x1f]  ;;  %v12694_v20 = vld [vmem:[#allocation4 + $0xe0] sm:$0xff]  }
  0xa7   : > { %11418 = vmatmul.mubr.bf16.gmra.mrb[12].mxu0 %v5233_v55  ;;  %10858 = vmatpush3.bf16.msra.mxu1 %v12666_v43  ;;  %v5495_v43 = vsel %vm542_vm2, %v5493_v22, %v5494_v23  ;;  %v524_v55 = vld [vmem:[#allocation2 + $0x328] sm:$0xf0]  ;;  %v12685_v23 = vld [vmem:[#allocation4 + $0x538] sm:$0xff]   ;;  %v5778_v28 = vrot.slane %v5739_v19, 5  ;;  %v6008_v19 = vld [vmem:[#allocation2 + $0x368] sm:$0x7] }
  0xa8   : > { %11434 = vmatpush3.bf16.msra.mxu0 %v12667_v47  ;;  %10859 = vmatprep.subr.bf16.mxu1 %v12668_v56  ;;  %v523_v47 = vld [vmem:[#allocation2 + $0x310] sm:$0xf]  ;;  %v564_v1 = vrot.slane %v524_v55, 4 }
  0xa9   : > { %11435 = vmatprep.subr.bf16.mxu0 %v12669_v57  ;;  %10861 = vmatprep.mubr.bf16.mxu1 %v545_v2  ;;  %v562_v60 = vrot.slane %v523_v47, 4 }
  0xaa   : > { %11437 = vmatprep.mubr.bf16.mxu0 %v5486_v7 }
  0xab   : > { %10860 = vmatpush3.bf16.msra.mxu1 %v12668_v56  ;;  %v525_v56 = vld [vmem:[#allocation2 + $0x330] sm:$0xf]  ;;  %v563_v7 = vsel %vm542_vm2, %v561_v59, %v562_v60  ;;  %v5735_v59 = vld [vmem:[#allocation2 + $0x158] sm:$0x1f] }
  0xac   : > { %11436 = vmatpush3.bf16.msra.mxu0 %v12669_v57  ;;  %10877 = vmatprep.subr.bf16.mxu1 %v12670_v3  ;;  %v12679_v57 = vld [vmem:[#allocation4 + $0x520] sm:$0xff]   ;;  %v565_v2 = vrot.slane %v525_v56, 4  ;;  %v12690_v60 = vld [vmem:[#allocation4 + $0xd0] sm:$0xff]   ;;  %v5772_v4 = vrot.slane %v5735_v59, 5  ;;  %v12701_v59 = vld [vmem:[#allocation4 + $0x578] sm:$0xff]  }
  0xad   : > { %11453 = vmatprep.subr.bf16.mxu0 %v12671_v9 }
  0xae   : > { %10862 = vmatmul.mubr.bf16.vlgmr.msra.gmra.mrb[0].mxu1 %v548_v12  ;;  %v12682_v12 = vld [vmem:[#allocation4 + $0xb0] sm:$0xff]   ;;  %v566_v22 = vsel %vm542_vm2, %v564_v1, %v565_v2  ;;  %v12692_v2 = vld [vmem:[#allocation4 + $0xd8] sm:$0xff]  }
  0xaf   : > { %11438 = vmatmul.mubr.bf16.vlgmr.msra.gmra.mrb[0].mxu0 %v5489_v21  ;;  %10878 = vmatpush3.bf16.msra.mxu1 %v12670_v3  ;;  %v5501_v3 = vsel %vm542_vm2, %v5499_v53, %v5500_v54  ;;  %v787_v21 = vld [vmem:[#allocation2 + $0x268] sm:$0x80]  ;;  %v794_v54 = vld [vmem:[#allocation2 + $0x2d0] sm:$0x7f] }
  0xb0   : > { %11454 = vmatpush3.bf16.msra.mxu0 %v12671_v9  ;;  %10879 = vmatprep.subr.bf16.mxu1 %v12672_v15  ;;  %v5504_v9 = vsel %vm542_vm2, %v5502_v61, %v5503_v62  ;;  %v821_v32 = vrot.slane %v787_v21, 7  ;;  %v793_v53 = vld [vmem:[#allocation2 + $0x2c8] sm:$0x80]  ;;  %v5769_v62 = vrot.slane %v5733_v51, 5  ;;  %v831_v1 = vrot.slane %v794_v54, 7 }
  0xb1   : > { %11455 = vmatprep.subr.bf16.mxu0 %v12673_v16  ;;  %10865 = vmatprep.mubr.bf16.mxu1 %v551_v26  ;;  %v5507_v26 = vsel %vm542_vm2, %v5505_v13, %v5506_v14  ;;  %v797_v13 = vld [vmem:[#allocation2 + $0x308] sm:$0x80]  ;;  %v798_v14 = vld [vmem:[#allocation2 + $0x310] sm:$0x7f] }
  0xb2   : > { %11441 = vmatprep.mubr.bf16.mxu0 %v5492_v29  ;;  %v790_v29 = vld [vmem:[#allocation2 + $0x290] sm:$0x7f] }
  0xb3   : > { %10880 = vmatpush3.bf16.msra.mxu1 %v12672_v15  ;;  %v12683_v15 = vld [vmem:[#allocation4 + $0x530] sm:$0xff]   ;;  %v825_v41 = vrot.slane %v790_v29, 7  ;;  %v799_v29 = vld [vmem:[#allocation2 + $0x328] sm:$0x80] }
  0xb4   : > { %11456 = vmatpush3.bf16.msra.mxu0 %v12673_v16  ;;  %10881 = vmatprep.subr.bf16.mxu1 %v12674_v27  ;;  %v818_v16 = vrot.slane %v785_v6, 7  ;;  %v1064_v54 = vld [vmem:[#allocation2 + $0x330] sm:$0x1] }
  0xb5   : > { %11457 = vmatprep.subr.bf16.mxu0 %v12675_v33 }
  0xb6   : > { %10866 = vmatmul.mubr.bf16.gmra.mrb[4].mxu1 %v554_v34  ;;  %v820_v30 = vsel %vm817_vm3, %v818_v16, %v819_v17  ;;  %v12686_v34 = vld [vmem:[#allocation4 + $0xc0] sm:$0xff]   ;;  %v833_v16 = vrot.slane %v795_v5, 7  ;;  %v834_v17 = vrot.slane %v796_v8, 7 }
  0xb7   : > { %11442 = vmatmul.mubr.bf16.gmra.mrb[4].mxu0 %v5495_v43  ;;  %10882 = vmatpush3.bf16.msra.mxu1 %v12674_v27  ;;  %v5729_v27 = vld [vmem:[#allocation2 + $0xf8] sm:$0x1f]  ;;  %v791_v43 = vld [vmem:[#allocation2 + $0x2a8] sm:$0x80] }
  0xb8   : > { %11458 = vmatpush3.bf16.msra.mxu0 %v12675_v33  ;;  %10883 = vmatprep.subr.bf16.mxu1 %v12676_v35  ;;  %v822_v33 = vrot.slane %v788_v24, 7  ;;  %v5763_v36 = vrot.slane %v5729_v27, 5  ;;  %v827_v56 = vrot.slane %v791_v43, 7  ;;  %v836_v24 = vrot.slane %v797_v13, 7  ;;  %v12704_v13 = vld [vmem:[#allocation4 + $0x108] sm:$0xff]  }
  0xb9   : > { %11459 = vmatprep.subr.bf16.mxu0 %v12677_v38  ;;  %10869 = vmatprep.mubr.bf16.mxu1 %v557_v49 }
  0xba   : > { %11445 = vmatprep.mubr.bf16.mxu0 %v5498_v52  ;;  %v823_v44 = vsel %vm817_vm3, %v821_v32, %v822_v33  ;;  %v826_v52 = vsel %vm817_vm3, %v824_v40, %v825_v41  ;;  %v12697_v32 = vld [vmem:[#allocation4 + $0x568] sm:$0xff]   ;;  %v5740_v33 = vld [vmem:[#allocation2 + $0x1b0] sm:$0xe0] }
  0xbb   : > { %10884 = vmatpush3.bf16.msra.mxu1 %v12676_v35  ;;  %v5762_v35 = vrot.slane %v5728_v25, 5  ;;  %v837_v25 = vrot.slane %v798_v14, 7  ;;  %v6002_v40 = vld [vmem:[#allocation2 + $0x308] sm:$0x7]  ;;  %v1068_v14 = vld [vmem:[#allocation2 + $0x370] sm:$0x1] }
  0xbc   : > { %11460 = vmatpush3.bf16.msra.mxu0 %v12677_v38  ;;  %10885 = vmatprep.subr.bf16.mxu1 %v12678_v50  ;;  %v5731_v38 = vld [vmem:[#allocation2 + $0x118] sm:$0x1f]  ;;  %v6034_v51 = vrot.slane %v6002_v40, 3 }
  0xbd   : > { %11461 = vmatprep.subr.bf16.mxu0 %v12679_v57  ;;  %v5766_v47 = vrot.slane %v5731_v38, 5  ;;  %v5764_v49 = vsel %vm5758_vm4, %v5762_v35, %v5763_v36  ;;  %v5741_v35 = vld [vmem:[#allocation2 + $0x1b8] sm:$0x1f]  ;;  %v1061_v36 = vld [vmem:[#allocation2 + $0x308] sm:$0xfe]  ;;  %v838_v38 = vsel %vm817_vm3, %v836_v24, %v837_v25 }
  0xbe   : > { %10870 = vmatmul.mubr.bf16.gmra.mrb[8].mxu1 %v560_v63  ;;  %v12691_v63 = vld [vmem:[#allocation4 + $0x550] sm:$0xff]  }
  0xbf   : > { %11446 = vmatmul.mubr.bf16.gmra.mrb[8].mxu0 %v5501_v3  ;;  %10886 = vmatpush3.bf16.msra.mxu1 %v12678_v50  ;;  %v5732_v50 = vld [vmem:[#allocation2 + $0x130] sm:$0xe0]  ;;  %v5767_v55 = vsel %vm5758_vm4, %v5765_v46, %v5766_v47  ;;  %v5780_v46 = vrot.slane %v5740_v33, 5  ;;  %v5781_v47 = vrot.slane %v5741_v35, 5 }
  0xc0   : > { %11462 = vmatpush3.bf16.msra.mxu0 %v12679_v57  ;;  %10887 = vmatprep.subr.bf16.mxu1 %v12680_v58  ;;  %v828_v57 = vrot.slane %v792_v48, 7  ;;  %v5768_v61 = vrot.slane %v5732_v50, 5  ;;  %v1093_v48 = vrot.slane %v1061_v36, 1  ;;  %v1071_v36 = vld [vmem:[#allocation2 + $0x3a8] sm:$0xfe] }
  0xc1   : > { %11463 = vmatprep.subr.bf16.mxu0 %v12681_v0  ;;  %10873 = vmatprep.mubr.bf16.mxu1 %v563_v7  ;;  %v12693_v7 = vld [vmem:[#allocation4 + $0x558] sm:$0xff]  }
  0xc2   : > { %11449 = vmatprep.mubr.bf16.mxu0 %v5504_v9  ;;  %v829_v6 = vsel %vm817_vm3, %v827_v56, %v828_v57  ;;  %v5736_v9 = vld [vmem:[#allocation2 + $0x170] sm:$0xe0]  ;;  %v5770_v10 = vsel %vm5758_vm4, %v5768_v61, %v5769_v62  ;;  %v6004_v57 = vld [vmem:[#allocation2 + $0x328] sm:$0x7]  ;;  %v1066_v61 = vld [vmem:[#allocation2 + $0x350] sm:$0x1] }
  0xc3   : > { %10888 = vmatpush3.bf16.msra.mxu1 %v12680_v58  ;;  %v5734_v58 = vld [vmem:[#allocation2 + $0x150] sm:$0xe0]  ;;  %v5774_v21 = vrot.slane %v5736_v9, 5  ;;  %v1100_v9 = vrot.slane %v1066_v61, 1  ;;  %v1076_v61 = vld [vmem:[#allocation2 + $0x3f0] sm:$0x1] }
  0xc4   : > { %11464 = vmatpush3.bf16.msra.mxu0 %v12681_v0  ;;  %10889 = vmatprep.subr.bf16.mxu1 %v12682_v12  ;;  %v830_v0 = vrot.slane %v793_v53, 7  ;;  %v5771_v3 = vrot.slane %v5734_v58, 5  ;;  %v12700_v53 = vld [vmem:[#allocation4 + $0xf8] sm:$0xff]   ;;  %v5782_v58 = vsel %vm5758_vm4, %v5780_v46, %v5781_v47  ;;  %v6013_v47 = vld [vmem:[#allocation2 + $0x3c0] sm:$0xf8] }
  0xc5   : > { %11465 = vmatprep.subr.bf16.mxu0 %v12683_v15 }
  0xc6   : > { %10874 = vmatmul.mubr.bf16.gmra.mrb[12].mxu1 %v566_v22  ;;  %v5775_v22 = vrot.slane %v5737_v11, 5 }
  0xc7   : > { %11450 = vmatmul.mubr.bf16.gmra.mrb[12].mxu0 %v5507_v26  ;;  %10890 = vmatpush3.bf16.msra.mxu1 %v12682_v12  ;;  %v832_v12 = vsel %vm817_vm3, %v830_v0, %v831_v1  ;;  %v12696_v26 = vld [vmem:[#allocation4 + $0xe8] sm:$0xff]   ;;  %v6005_v0 = vld [vmem:[#allocation2 + $0x340] sm:$0xf8] }
  0xc8   : > { %11466 = vmatpush3.bf16.msra.mxu0 %v12683_v15  ;;  %10891 = vmatprep.subr.bf16.mxu1 %v12684_v18  ;;  %v5773_v15 = vsel %vm5758_vm4, %v5771_v3, %v5772_v4  ;;  %v6006_v1 = vld [vmem:[#allocation2 + $0x348] sm:$0x7]  ;;  %v1097_v3 = vrot.slane %v1064_v54, 1  ;;  %v12702_v4 = vld [vmem:[#allocation4 + $0x100] sm:$0xff]  }
  0xc9   : > { %11467 = vmatprep.subr.bf16.mxu0 %v12685_v23  ;;  %10893 = vmatprep.mubr.bf16.mxu1 %v820_v30  ;;  %v800_v30 = vld [vmem:[#allocation2 + $0x330] sm:$0x7f]  ;;  %v6040_v11 = vrot.slane %v6006_v1, 3  ;;  %v1335_v1 = vld [vmem:[#allocation2 + $0x308] sm:$0xf0] }
  0xca   : > { %11469 = vmatprep.mubr.bf16.mxu0 %v5761_v31  ;;  %v835_v31 = vsel %vm817_vm3, %v833_v16, %v834_v17  ;;  %v840_v43 = vrot.slane %v800_v30, 7  ;;  %v12705_v16 = vld [vmem:[#allocation4 + $0x588] sm:$0xff]   ;;  %v6007_v17 = vld [vmem:[#allocation2 + $0x360] sm:$0xf8]  ;;  %v6043_v30 = vrot.slane %v6008_v19, 3 }
  0xcb   : > { %10892 = vmatpush3.bf16.msra.mxu1 %v12684_v18  ;;  %v5738_v18 = vld [vmem:[#allocation2 + $0x190] sm:$0xe0]  ;;  %v1338_v19 = vld [vmem:[#allocation2 + $0x330] sm:$0xf] }
  0xcc   : > { %11468 = vmatpush3.bf16.msra.mxu0 %v12685_v23  ;;  %10909 = vmatprep.subr.bf16.mxu1 %v12686_v34  ;;  %v12695_v23 = vld [vmem:[#allocation4 + $0x560] sm:$0xff]   ;;  %v5777_v27 = vrot.slane %v5738_v18, 5 }
  0xcd   : > { %11485 = vmatprep.subr.bf16.mxu0 %v12687_v39 }
  0xce   : > { %10894 = vmatmul.mubr.bf16.vlgmr.msra.gmra.mrb[0].mxu1 %v823_v44  ;;  %v5779_v41 = vsel %vm5758_vm4, %v5777_v27, %v5778_v28  ;;  %v12698_v44 = vld [vmem:[#allocation4 + $0xf0] sm:$0xff]   ;;  %v1103_v28 = vrot.slane %v1068_v14, 1  ;;  %v6275_v14 = vld [vmem:[#allocation2 + $0x308] sm:$0xf0] }
  0xcf   : > { %11470 = vmatmul.mubr.bf16.vlgmr.msra.gmra.mrb[0].mxu0 %v5764_v49  ;;  %10910 = vmatpush3.bf16.msra.mxu1 %v12686_v34  ;;  %v5776_v34 = vsel %vm5758_vm4, %v5774_v21, %v5775_v22  ;;  %v1094_v49 = vrot.slane %v1062_v37, 1  ;;  %v1070_v21 = vld [vmem:[#allocation2 + $0x390] sm:$0x1]  ;;  %v6009_v22 = vld [vmem:[#allocation2 + $0x380] sm:$0xf8] }
  0xd0   : > { %11486 = vmatpush3.bf16.msra.mxu0 %v12687_v39  ;;  %10911 = vmatprep.subr.bf16.mxu1 %v12688_v42  ;;  %v6001_v39 = vld [vmem:[#allocation2 + $0x300] sm:$0xf8]  ;;  %v1106_v33 = vrot.slane %v1070_v21, 1  ;;  %v1072_v37 = vld [vmem:[#allocation2 + $0x3b0] sm:$0x1] }
  0xd1   : > { %11487 = vmatprep.subr.bf16.mxu0 %v12689_v45  ;;  %10897 = vmatprep.mubr.bf16.mxu1 %v826_v52  ;;  %v6033_v50 = vrot.slane %v6001_v39, 3  ;;  %v1063_v52 = vld [vmem:[#allocation2 + $0x328] sm:$0xfe]  ;;  %v1095_v62 = vsel %vm268_vm0, %v1093_v48, %v1094_v49  ;;  %v1108_v49 = vrot.slane %v1071_v36, 1  ;;  %v6278_v21 = vld [vmem:[#allocation2 + $0x330] sm:$0xf] }
  0xd2   : > { %11473 = vmatprep.mubr.bf16.mxu0 %v5767_v55  ;;  %v6003_v55 = vld [vmem:[#allocation2 + $0x320] sm:$0xf8]  ;;  %v6012_v39 = vld [vmem:[#allocation2 + $0x3a8] sm:$0x7]  ;;  %v6279_v36 = vld [vmem:[#allocation2 + $0x348] sm:$0xf0] }
  0xd3   : > { %10912 = vmatpush3.bf16.msra.mxu1 %v12688_v42  ;;  %v839_v42 = vrot.slane %v799_v29, 7  ;;  %v6036_v5 = vrot.slane %v6003_v55, 3  ;;  %v6042_v29 = vrot.slane %v6007_v17, 3  ;;  %v6014_v48 = vld [vmem:[#allocation2 + $0x3c8] sm:$0x7]  ;;  %v12711_v55 = vld [vmem:[#allocation4 + $0x5a0] sm:$0xff]  }
  0xd4   : > { %11488 = vmatpush3.bf16.msra.mxu0 %v12689_v45  ;;  %10913 = vmatprep.subr.bf16.mxu1 %v12690_v60  ;;  %v12699_v45 = vld [vmem:[#allocation4 + $0x570] sm:$0xff]  }
  0xd5   : > { %11489 = vmatprep.subr.bf16.mxu0 %v12691_v63  ;;  %v841_v56 = vsel %vm817_vm3, %v839_v42, %v840_v43  ;;  %v12708_v42 = vld [vmem:[#allocation4 + $0x118] sm:$0xff]   ;;  %v1073_v43 = vld [vmem:[#allocation2 + $0x3c8] sm:$0xfe]  ;;  %v6276_v17 = vld [vmem:[#allocation2 + $0x310] sm:$0xf] }
  0xd6   : > { %10898 = vmatmul.mubr.bf16.gmra.mrb[4].mxu1 %v829_v6  ;;  %v6037_v6 = vrot.slane %v6004_v57, 3 }
  0xd7   : > { %11474 = vmatmul.mubr.bf16.gmra.mrb[4].mxu0 %v5770_v10  ;;  %10914 = vmatpush3.bf16.msra.mxu1 %v12690_v60  ;;  %v1065_v60 = vld [vmem:[#allocation2 + $0x348] sm:$0xfe]  ;;  %v6039_v10 = vrot.slane %v6005_v0, 3 }
  0xd8   : > { %11490 = vmatpush3.bf16.msra.mxu0 %v12691_v63  ;;  %10915 = vmatprep.subr.bf16.mxu1 %v12692_v2  ;;  %v1096_v63 = vrot.slane %v1063_v52, 1  ;;  %v1099_v8 = vrot.slane %v1065_v60, 1  ;;  %v6038_v18 = vsel %vm5209_vm1, %v6036_v5, %v6037_v6  ;;  %v1075_v60 = vld [vmem:[#allocation2 + $0x3e8] sm:$0xfe] }
  0xd9   : > { %11491 = vmatprep.subr.bf16.mxu0 %v12693_v7  ;;  %10901 = vmatprep.mubr.bf16.mxu1 %v832_v12  ;;  %v1067_v12 = vld [vmem:[#allocation2 + $0x368] sm:$0xfe]  ;;  %v6041_v27 = vsel %vm5209_vm1, %v6039_v10, %v6040_v11  ;;  %v1114_v6 = vrot.slane %v1075_v60, 1  ;;  %v12714_v11 = vld [vmem:[#allocation4 + $0x130] sm:$0xff]  }
  0xda   : > { %11477 = vmatprep.mubr.bf16.mxu0 %v5773_v15  ;;  %v1098_v15 = vsel %vm268_vm0, %v1096_v63, %v1097_v3  ;;  %v1101_v24 = vsel %vm268_vm0, %v1099_v8, %v1100_v9  ;;  %v1102_v25 = vrot.slane %v1067_v12, 1  ;;  %v6016_v63 = vld [vmem:[#allocation2 + $0x3e8] sm:$0x7]  ;;  %v1367_v12 = vrot.slane %v1335_v1, 4  ;;  %v6283_v60 = vld [vmem:[#allocation2 + $0x388] sm:$0xf0] }
  0xdb   : > { %10916 = vmatpush3.bf16.msra.mxu1 %v12692_v2  ;;  %v6035_v2 = vsel %vm5209_vm1, %v6033_v50, %v6034_v51  ;;  %v1109_v50 = vrot.slane %v1072_v37, 1  ;;  %v12710_v51 = vld [vmem:[#allocation4 + $0x120] sm:$0xff]   ;;  %v12713_v5 = vld [vmem:[#allocation4 + $0x5a8] sm:$0xff]   ;;  %v6055_v9 = vrot.slane %v6016_v63, 3  ;;  %v6280_v37 = vld [vmem:[#allocation2 + $0x350] sm:$0xf] }
  0xdc   : > { %11492 = vmatpush3.bf16.msra.mxu0 %v12693_v7  ;;  %10917 = vmatprep.subr.bf16.mxu1 %v12694_v20  ;;  %v12703_v7 = vld [vmem:[#allocation4 + $0x580] sm:$0xff]   ;;  %v1104_v40 = vsel %vm268_vm0, %v1102_v25, %v1103_v28  ;;  %v12723_v63 = vld [vmem:[#allocation4 + $0x5d0] sm:$0xff]  }
  0xdd   : > { %11493 = vmatprep.subr.bf16.mxu0 %v12695_v23  ;;  %v1110_v0 = vsel %vm268_vm0, %v1108_v49, %v1109_v50  ;;  %v6314_v49 = vrot.slane %v6280_v37, 4  ;;  %v12720_v50 = vld [vmem:[#allocation4 + $0x148] sm:$0xff]   ;;  %v1346_v1 = vld [vmem:[#allocation2 + $0x3b0] sm:$0xf] }
  0xde   : > { %10902 = vmatmul.mubr.bf16.gmra.mrb[8].mxu1 %v835_v31  ;;  %v12707_v31 = vld [vmem:[#allocation4 + $0x590] sm:$0xff]  }
  0xdf   : > { %11478 = vmatmul.mubr.bf16.gmra.mrb[8].mxu0 %v5776_v34  ;;  %10918 = vmatpush3.bf16.msra.mxu1 %v12694_v20  ;;  %v1069_v20 = vld [vmem:[#allocation2 + $0x388] sm:$0xfe]  ;;  %v6045_v34 = vrot.slane %v6009_v22, 3 }
  0xe0   : > { %11494 = vmatpush3.bf16.msra.mxu0 %v12695_v23  ;;  %10919 = vmatprep.subr.bf16.mxu1 %v12696_v26  ;;  %v6010_v23 = vld [vmem:[#allocation2 + $0x388] sm:$0x7] }
  0xe1   : > { %11495 = vmatprep.subr.bf16.mxu0 %v12697_v32  ;;  %10905 = vmatprep.mubr.bf16.mxu1 %v838_v38  ;;  %v6046_v35 = vrot.slane %v6010_v23, 3  ;;  %v6011_v38 = vld [vmem:[#allocation2 + $0x3a0] sm:$0xf8]  ;;  %v6307_v23 = vrot.slane %v6275_v14, 4 }
  0xe2   : > { %11481 = vmatprep.mubr.bf16.mxu0 %v5779_v41  ;;  %v6044_v41 = vsel %vm5209_vm1, %v6042_v29, %v6043_v30  ;;  %v6048_v52 = vrot.slane %v6011_v38, 3  ;;  %v1371_v29 = vrot.slane %v1338_v19, 4  ;;  %v12726_v19 = vld [vmem:[#allocation4 + $0x160] sm:$0xff]  }
  0xe3   : > { %10920 = vmatpush3.bf16.msra.mxu1 %v12696_v26  ;;  %v12706_v26 = vld [vmem:[#allocation4 + $0x110] sm:$0xff]   ;;  %v6047_v54 = vsel %vm5209_vm1, %v6045_v34, %v6046_v35  ;;  %v12718_v35 = vld [vmem:[#allocation4 + $0x140] sm:$0xff]  }
  0xe4   : > { %11496 = vmatpush3.bf16.msra.mxu0 %v12697_v32  ;;  %10921 = vmatprep.subr.bf16.mxu1 %v12698_v44  ;;  %v1105_v32 = vrot.slane %v1069_v20, 1  ;;  %v6277_v20 = vld [vmem:[#allocation2 + $0x328] sm:$0xf0] }
  0xe5   : > { %11497 = vmatprep.subr.bf16.mxu0 %v12699_v45  ;;  %v6310_v30 = vrot.slane %v6277_v20, 4  ;;  %v6287_v20 = vld [vmem:[#allocation2 + $0x3c8] sm:$0xf0] }
  0xe6   : > { %10906 = vmatmul.mubr.bf16.gmra.mrb[12].mxu1 %v841_v56  ;;  %v1107_v46 = vsel %vm268_vm0, %v1105_v32, %v1106_v33  ;;  %v1111_v56 = vrot.slane %v1073_v43, 1  ;;  %v1339_v32 = vld [vmem:[#allocation2 + $0x348] sm:$0xf0]  ;;  %v1340_v33 = vld [vmem:[#allocation2 + $0x350] sm:$0xf] }
  0xe7   : > { %11482 = vmatmul.mubr.bf16.gmra.mrb[12].mxu0 %v5782_v58  ;;  %10922 = vmatpush3.bf16.msra.mxu1 %v12698_v44  ;;  %v1074_v44 = vld [vmem:[#allocation2 + $0x3d0] sm:$0x1]  ;;  %v6051_v58 = vrot.slane %v6013_v47, 3 }
  0xe8   : > { %11498 = vmatpush3.bf16.msra.mxu0 %v12699_v45  ;;  %10923 = vmatprep.subr.bf16.mxu1 %v12700_v53  ;;  %v12709_v45 = vld [vmem:[#allocation4 + $0x598] sm:$0xff]   ;;  %v1112_v57 = vrot.slane %v1074_v44, 1  ;;  %v6282_v43 = vld [vmem:[#allocation2 + $0x370] sm:$0xf]  ;;  %v1373_v44 = vrot.slane %v1339_v32, 4  ;;  %v12728_v32 = vld [vmem:[#allocation4 + $0x168] sm:$0xff]  }
  0xe9   : > { %11499 = vmatprep.subr.bf16.mxu0 %v12701_v59  ;;  %10925 = vmatprep.mubr.bf16.mxu1 %v1095_v62  ;;  %v6015_v62 = vld [vmem:[#allocation2 + $0x3e0] sm:$0xf8] }
  0xea   : > { %11501 = vmatprep.mubr.bf16.mxu0 %v6035_v2  ;;  %v1336_v2 = vld [vmem:[#allocation2 + $0x310] sm:$0xf]  ;;  %v6054_v8 = vrot.slane %v6015_v62, 3  ;;  %v1113_v10 = vsel %vm268_vm0, %v1111_v56, %v1112_v57  ;;  %v1343_v56 = vld [vmem:[#allocation2 + $0x388] sm:$0xf0] }
  0xeb   : > { %10924 = vmatpush3.bf16.msra.mxu1 %v12700_v53  ;;  %v6049_v53 = vrot.slane %v6012_v39, 3  ;;  %v12719_v39 = vld [vmem:[#allocation4 + $0x5c0] sm:$0xff]   ;;  %v1344_v57 = vld [vmem:[#allocation2 + $0x390] sm:$0xf] }
  0xec   : > { %11500 = vmatpush3.bf16.msra.mxu0 %v12701_v59  ;;  %10941 = vmatprep.subr.bf16.mxu1 %v12702_v4  ;;  %v6052_v59 = vrot.slane %v6014_v48, 3  ;;  %v6056_v25 = vsel %vm5209_vm1, %v6054_v8, %v6055_v9  ;;  %v6313_v48 = vrot.slane %v6279_v36, 4  ;;  %v6319_v8 = vrot.slane %v6283_v60, 4 }
  0xed   : > { %11517 = vmatprep.subr.bf16.mxu0 %v12703_v7  ;;  %v6050_v3 = vsel %vm5209_vm1, %v6048_v52, %v6049_v53 }
  0xee   : > { %10926 = vmatmul.mubr.bf16.vlgmr.msra.gmra.mrb[0].mxu1 %v1098_v15  ;;  %v6053_v15 = vsel %vm5209_vm1, %v6051_v58, %v6052_v59  ;;  %v12722_v59 = vld [vmem:[#allocation4 + $0x150] sm:$0xff]   ;;  %v6315_v62 = vsel %vm542_vm2, %v6313_v48, %v6314_v49 }
  0xef   : > { %11502 = vmatmul.mubr.bf16.vlgmr.msra.gmra.mrb[0].mxu0 %v6038_v18  ;;  %10942 = vmatpush3.bf16.msra.mxu1 %v12702_v4  ;;  %v12712_v4 = vld [vmem:[#allocation4 + $0x128] sm:$0xff]   ;;  %v1612_v48 = vld [vmem:[#allocation2 + $0x330] sm:$0x7f] }
  0xf0   : > { %11518 = vmatpush3.bf16.msra.mxu0 %v12703_v7  ;;  %10943 = vmatprep.subr.bf16.mxu1 %v12704_v13  ;;  %v1115_v7 = vrot.slane %v1076_v61, 1  ;;  %v1337_v18 = vld [vmem:[#allocation2 + $0x328] sm:$0xf0]  ;;  %v6284_v61 = vld [vmem:[#allocation2 + $0x390] sm:$0xf]  ;;  %v1645_v60 = vrot.slane %v1612_v48, 7 }
  0xf1   : > { %11519 = vmatprep.subr.bf16.mxu0 %v12705_v16  ;;  %10929 = vmatprep.mubr.bf16.mxu1 %v1101_v24  ;;  %v6308_v24 = vrot.slane %v6276_v17, 4  ;;  %v1370_v28 = vrot.slane %v1337_v18, 4  ;;  %v6320_v9 = vrot.slane %v6284_v61, 4  ;;  %v1348_v17 = vld [vmem:[#allocation2 + $0x3d0] sm:$0xf] }
  0xf2   : > { %11505 = vmatprep.mubr.bf16.mxu0 %v6041_v27  ;;  %v1116_v22 = vsel %vm268_vm0, %v1114_v6, %v1115_v7  ;;  %v12717_v27 = vld [vmem:[#allocation4 + $0x5b8] sm:$0xff]   ;;  %v12731_v49 = vld [vmem:[#allocation4 + $0x5f0] sm:$0xff]  }
  0xf3   : > { %10944 = vmatpush3.bf16.msra.mxu1 %v12704_v13  ;;  %v1368_v13 = vrot.slane %v1336_v2, 4  ;;  %v6309_v38 = vsel %vm542_vm2, %v6307_v23, %v6308_v24  ;;  %v6285_v2 = vld [vmem:[#allocation2 + $0x3a8] sm:$0xf0]  ;;  %v12727_v23 = vld [vmem:[#allocation4 + $0x5e0] sm:$0xff]   ;;  %v1622_v48 = vld [vmem:[#allocation2 + $0x3d0] sm:$0x7f] }
  0xf4   : > { %11520 = vmatpush3.bf16.msra.mxu0 %v12705_v16  ;;  %10945 = vmatprep.subr.bf16.mxu1 %v12706_v26  ;;  %v12715_v16 = vld [vmem:[#allocation4 + $0x5b0] sm:$0xff]   ;;  %v6322_v14 = vrot.slane %v6285_v2, 4  ;;  %v1349_v24 = vld [vmem:[#allocation2 + $0x3e8] sm:$0xf0] }
  0xf5   : > { %11521 = vmatprep.subr.bf16.mxu0 %v12707_v31  ;;  %v1369_v34 = vsel %vm542_vm2, %v1367_v12, %v1368_v13  ;;  %v1383_v13 = vrot.slane %v1346_v1, 4  ;;  %v1388_v36 = vrot.slane %v1349_v24, 4  ;;  %v1614_v1 = vld [vmem:[#allocation2 + $0x350] sm:$0x7f] }
  0xf6   : > { %10930 = vmatmul.mubr.bf16.gmra.mrb[4].mxu1 %v1104_v40  ;;  %v1341_v40 = vld [vmem:[#allocation2 + $0x368] sm:$0xf0]  ;;  %v6557_v24 = vld [vmem:[#allocation2 + $0x390] sm:$0xe0] }
  0xf7   : > { %11506 = vmatmul.mubr.bf16.gmra.mrb[4].mxu0 %v6044_v41  ;;  %10946 = vmatpush3.bf16.msra.mxu1 %v12706_v26  ;;  %v12716_v26 = vld [vmem:[#allocation4 + $0x138] sm:$0xff]   ;;  %v1342_v41 = vld [vmem:[#allocation2 + $0x370] sm:$0xf]  ;;  %v1376_v52 = vrot.slane %v1341_v40, 4  ;;  %v1609_v40 = vld [vmem:[#allocation2 + $0x308] sm:$0x80] }
  0xf8   : > { %11522 = vmatpush3.bf16.msra.mxu0 %v12707_v31  ;;  %10947 = vmatprep.subr.bf16.mxu1 %v12708_v42  ;;  %v6311_v31 = vrot.slane %v6278_v21, 4  ;;  %v1377_v53 = vrot.slane %v1342_v41, 4  ;;  %v6288_v21 = vld [vmem:[#allocation2 + $0x3d0] sm:$0xf] }
  0xf9   : > { %11523 = vmatprep.subr.bf16.mxu0 %v12709_v45  ;;  %10933 = vmatprep.mubr.bf16.mxu1 %v1107_v46  ;;  %v1372_v46 = vsel %vm542_vm2, %v1370_v28, %v1371_v29  ;;  %v1386_v29 = vrot.slane %v1348_v17, 4  ;;  %v1610_v41 = vld [vmem:[#allocation2 + $0x310] sm:$0x7f] }
  0xfa   : > { %11509 = vmatprep.mubr.bf16.mxu0 %v6047_v54  ;;  %v6312_v47 = vsel %vm542_vm2, %v6310_v30, %v6311_v31  ;;  %v1378_v6 = vsel %vm542_vm2, %v1376_v52, %v1377_v53  ;;  %v1641_v53 = vrot.slane %v1609_v40, 7  ;;  %v12741_v40 = vld [vmem:[#allocation4 + $0x618] sm:$0xff]  }
  0xfb   : > { %10948 = vmatpush3.bf16.msra.mxu1 %v12708_v42  ;;  %v6281_v42 = vld [vmem:[#allocation2 + $0x368] sm:$0xf0] }
  0xfc   : > { %11524 = vmatpush3.bf16.msra.mxu0 %v12709_v45  ;;  %10949 = vmatprep.subr.bf16.mxu1 %v12710_v51  ;;  %v1374_v45 = vrot.slane %v1340_v33, 4  ;;  %v6316_v54 = vrot.slane %v6281_v42, 4  ;;  %v12729_v33 = vld [vmem:[#allocation4 + $0x5e8] sm:$0xff]  }
  0xfd   : > { %11525 = vmatprep.subr.bf16.mxu0 %v12711_v55 }
  0xfe   : > { %10934 = vmatmul.mubr.bf16.gmra.mrb[8].mxu1 %v1110_v0  ;;  %v1375_v58 = vsel %vm542_vm2, %v1373_v44, %v1374_v45  ;;  %v1345_v0 = vld [vmem:[#allocation2 + $0x3a8] sm:$0xf0]  ;;  %v6549_v44 = vld [vmem:[#allocation2 + $0x310] sm:$0xe0]  ;;  %v6550_v45 = vld [vmem:[#allocation2 + $0x318] sm:$0x1f] }
  0xff   : > { %11510 = vmatmul.mubr.bf16.gmra.mrb[8].mxu0 %v6050_v3  ;;  %10950 = vmatpush3.bf16.msra.mxu1 %v12710_v51  ;;  %v12721_v51 = vld [vmem:[#allocation4 + $0x5c8] sm:$0xff]   ;;  %v6286_v3 = vld [vmem:[#allocation2 + $0x3b0] sm:$0xf]  ;;  %v1382_v12 = vrot.slane %v1345_v0, 4 }
 0x100   : > { %11526 = vmatpush3.bf16.msra.mxu0 %v12711_v55  ;;  %10951 = vmatprep.subr.bf16.mxu1 %v12712_v4  ;;  %v6317_v55 = vrot.slane %v6282_v43, 4  ;;  %v12730_v43 = vld [vmem:[#allocation4 + $0x170] sm:$0xff]   ;;  %v1613_v0 = vld [vmem:[#allocation2 + $0x348] sm:$0x80] }
 0x101   : > { %11527 = vmatprep.subr.bf16.mxu0 %v12713_v5  ;;  %10937 = vmatprep.mubr.bf16.mxu1 %v1113_v10  ;;  %v12724_v10 = vld [vmem:[#allocation4 + $0x158] sm:$0xff]   ;;  %v1384_v30 = vsel %vm542_vm2, %v1382_v12, %v1383_v13  ;;  %v1647_v12 = vrot.slane %v1613_v0, 7  ;;  %v1648_v13 = vrot.slane %v1614_v1, 7  ;;  %v1624_v0 = vld [vmem:[#allocation2 + $0x3f0] sm:$0x7f] }
 0x102   : > { %11513 = vmatprep.mubr.bf16.mxu0 %v6053_v15  ;;  %v6318_v7 = vsel %vm542_vm2, %v6316_v54, %v6317_v55  ;;  %v6323_v15 = vrot.slane %v6286_v3, 4  ;;  %v1642_v54 = vrot.slane %v1610_v41, 7  ;;  %v12732_v55 = vld [vmem:[#allocation4 + $0x178] sm:$0xff]   ;;  %v12734_v3 = vld [vmem:[#allocation4 + $0x180] sm:$0xff]   ;;  %v6563_v1 = vld [vmem:[#allocation2 + $0x3f0] sm:$0xe0] }
 0x103   : > { %10952 = vmatpush3.bf16.msra.mxu1 %v12712_v4  ;;  %v1379_v4 = vrot.slane %v1343_v56, 4  ;;  %v12733_v56 = vld [vmem:[#allocation4 + $0x5f8] sm:$0xff]  }
 0x104   : > { %11528 = vmatpush3.bf16.msra.mxu0 %v12713_v5  ;;  %10953 = vmatprep.subr.bf16.mxu1 %v12714_v11  ;;  %v1380_v5 = vrot.slane %v1344_v57, 4  ;;  %v6324_v31 = vsel %vm542_vm2, %v6322_v14, %v6323_v15  ;;  %v6581_v57 = vrot.slane %v6549_v44, 5  ;;  %v1643_v2 = vsel %vm817_vm3, %v1641_v53, %v1642_v54  ;;  %v12737_v14 = vld [vmem:[#allocation4 + $0x608] sm:$0xff]   ;;  %v6559_v44 = vld [vmem:[#allocation2 + $0x3b0] sm:$0xe0] }
 0x105   : > { %11529 = vmatprep.subr.bf16.mxu0 %v12715_v16  ;;  %v6596_v53 = vrot.slane %v6559_v44, 5 }
 0x106   : > { %10938 = vmatmul.mubr.bf16.gmra.mrb[12].mxu1 %v1116_v22  ;;  %v1381_v18 = vsel %vm542_vm2, %v1379_v4, %v1380_v5  ;;  %v6321_v22 = vsel %vm542_vm2, %v6319_v8, %v6320_v9  ;;  %v6553_v4 = vld [vmem:[#allocation2 + $0x350] sm:$0xe0]  ;;  %v12735_v9 = vld [vmem:[#allocation4 + $0x600] sm:$0xff]  }
 0x107   : > { %11514 = vmatmul.mubr.bf16.gmra.mrb[12].mxu0 %v6056_v25  ;;  %10954 = vmatpush3.bf16.msra.mxu1 %v12714_v11  ;;  %v12725_v11 = vld [vmem:[#allocation4 + $0x5d8] sm:$0xff]   ;;  %v1350_v25 = vld [vmem:[#allocation2 + $0x3f0] sm:$0xf]  ;;  %v6587_v15 = vrot.slane %v6553_v4, 5  ;;  %v1884_v4 = vld [vmem:[#allocation2 + $0x3c8] sm:$0xfe] }
 0x108   : > { %11530 = vmatpush3.bf16.msra.mxu0 %v12715_v16  ;;  %10955 = vmatprep.subr.bf16.mxu1 %v12716_v26  ;;  %v1347_v16 = vld [vmem:[#allocation2 + $0x3c8] sm:$0xf0]  ;;  %v1389_v37 = vrot.slane %v1350_v25, 4  ;;  %v1616_v8 = vld [vmem:[#allocation2 + $0x370] sm:$0x7f]  ;;  %v1649_v25 = vsel %vm817_vm3, %v1647_v12, %v1648_v13  ;;  %v6602_v13 = vrot.slane %v6563_v1, 5 }
 0x109   : > { %11531 = vmatprep.subr.bf16.mxu0 %v12717_v27  ;;  %10957 = vmatprep.mubr.bf16.mxu1 %v1369_v34  ;;  %v1385_v28 = vrot.slane %v1347_v16, 4  ;;  %v6325_v34 = vrot.slane %v6287_v20, 4  ;;  %v6555_v20 = vld [vmem:[#allocation2 + $0x370] sm:$0xe0] }
 0x10a   : > { %11533 = vmatprep.mubr.bf16.mxu0 %v6309_v38  ;;  %v1390_v52 = vsel %vm542_vm2, %v1388_v36, %v1389_v37  ;;  %v6593_v37 = vrot.slane %v6557_v24, 5  ;;  %v12746_v12 = vld [vmem:[#allocation4 + $0x1b0] sm:$0xff]  }
 0x10b   : > { %10956 = vmatpush3.bf16.msra.mxu1 %v12716_v26  ;;  %v6289_v26 = vld [vmem:[#allocation2 + $0x3e8] sm:$0xf0]  ;;  %v1387_v42 = vsel %vm542_vm2, %v1385_v28, %v1386_v29  ;;  %v6590_v29 = vrot.slane %v6555_v20, 5  ;;  %v1887_v24 = vld [vmem:[#allocation2 + $0x3f0] sm:$0x1] }
 0x10c   : > { %11532 = vmatpush3.bf16.msra.mxu0 %v12717_v27  ;;  %10973 = vmatprep.subr.bf16.mxu1 %v12718_v35  ;;  %v6290_v27 = vld [vmem:[#allocation2 + $0x3f0] sm:$0xf]  ;;  %v6328_v38 = vrot.slane %v6289_v26, 4 }
 0x10d   : > { %11549 = vmatprep.subr.bf16.mxu0 %v12719_v39  ;;  %v12738_v26 = vld [vmem:[#allocation4 + $0x190] sm:$0xff]  }
 0x10e   : > { %10958 = vmatmul.mubr.bf16.vlgmr.msra.gmra.mrb[0].mxu1 %v1372_v46  ;;  %v1611_v46 = vld [vmem:[#allocation2 + $0x328] sm:$0x80] }
 0x10f   : > { %11534 = vmatmul.mubr.bf16.vlgmr.msra.gmra.mrb[0].mxu0 %v6312_v47  ;;  %10974 = vmatpush3.bf16.msra.mxu1 %v12718_v35  ;;  %v6326_v35 = vrot.slane %v6288_v21, 4  ;;  %v6556_v21 = vld [vmem:[#allocation2 + $0x378] sm:$0x1f] }
 0x110   : > { %11550 = vmatpush3.bf16.msra.mxu0 %v12719_v39  ;;  %10975 = vmatprep.subr.bf16.mxu1 %v12720_v50  ;;  %v6329_v39 = vrot.slane %v6290_v27, 4  ;;  %v6558_v27 = vld [vmem:[#allocation2 + $0x398] sm:$0x1f] }
 0x111   : > { %11551 = vmatprep.subr.bf16.mxu0 %v12721_v51  ;;  %10961 = vmatprep.mubr.bf16.mxu1 %v1375_v58  ;;  %v6327_v47 = vsel %vm542_vm2, %v6325_v34, %v6326_v35  ;;  %v6582_v58 = vrot.slane %v6550_v45, 5  ;;  %v12740_v34 = vld [vmem:[#allocation4 + $0x198] sm:$0xff]  }
 0x112   : > { %11537 = vmatprep.mubr.bf16.mxu0 %v6315_v62  ;;  %v6330_v61 = vsel %vm542_vm2, %v6328_v38, %v6329_v39  ;;  %v6594_v38 = vrot.slane %v6558_v27, 5  ;;  %v6560_v45 = vld [vmem:[#allocation2 + $0x3b8] sm:$0x1f]  ;;  %v6827_v27 = vld [vmem:[#allocation2 + $0x568] sm:$0x7] }
 0x113   : > { %10976 = vmatpush3.bf16.msra.mxu1 %v12720_v50  ;;  %v6551_v50 = vld [vmem:[#allocation2 + $0x330] sm:$0xe0]  ;;  %v6583_v5 = vsel %vm5758_vm4, %v6581_v57, %v6582_v58  ;;  %v6597_v54 = vrot.slane %v6560_v45, 5  ;;  %v1660_v57 = vrot.slane %v1622_v48, 7  ;;  %v12744_v58 = vld [vmem:[#allocation4 + $0x1a8] sm:$0xff]  }
 0x114   : > { %11552 = vmatpush3.bf16.msra.mxu0 %v12721_v51  ;;  %10977 = vmatprep.subr.bf16.mxu1 %v12722_v59  ;;  %v6552_v51 = vld [vmem:[#allocation2 + $0x338] sm:$0x1f]  ;;  %v6584_v62 = vrot.slane %v6551_v50, 5  ;;  %v6561_v50 = vld [vmem:[#allocation2 + $0x3d0] sm:$0xe0] }
 0x115   : > { %11553 = vmatprep.subr.bf16.mxu0 %v12723_v63  ;;  %v1890_v45 = vld [vmem:[#allocation2 + $0x428] sm:$0xfe]  ;;  %v1891_v48 = vld [vmem:[#allocation2 + $0x430] sm:$0x1] }
 0x116   : > { %10962 = vmatmul.mubr.bf16.gmra.mrb[4].mxu1 %v1378_v6  ;;  %v6554_v6 = vld [vmem:[#allocation2 + $0x358] sm:$0x1f] }
 0x117   : > { %11538 = vmatmul.mubr.bf16.gmra.mrb[4].mxu0 %v6318_v7  ;;  %10978 = vmatpush3.bf16.msra.mxu1 %v12722_v59  ;;  %v1644_v59 = vrot.slane %v1611_v46, 7  ;;  %v1615_v7 = vld [vmem:[#allocation2 + $0x368] sm:$0x80]  ;;  %v6588_v16 = vrot.slane %v6554_v6, 5 }
 0x118   : > { %11554 = vmatpush3.bf16.msra.mxu0 %v12723_v63  ;;  %10979 = vmatprep.subr.bf16.mxu1 %v12724_v10  ;;  %v6585_v63 = vrot.slane %v6552_v51, 5  ;;  %v1650_v17 = vrot.slane %v1615_v7, 7  ;;  %v1621_v46 = vld [vmem:[#allocation2 + $0x3c8] sm:$0x80]  ;;  %v6562_v51 = vld [vmem:[#allocation2 + $0x3d8] sm:$0x1f] }
 0x119   : > { %11555 = vmatprep.subr.bf16.mxu0 %v12725_v11  ;;  %10965 = vmatprep.mubr.bf16.mxu1 %v1381_v18  ;;  %v1651_v18 = vrot.slane %v1616_v8, 7  ;;  %v6589_v28 = vsel %vm5758_vm4, %v6587_v15, %v6588_v16  ;;  %v12747_v15 = vld [vmem:[#allocation4 + $0x630] sm:$0xff]   ;;  %v1916_v16 = vrot.slane %v1884_v4, 1 }
 0x11a   : > { %11541 = vmatprep.mubr.bf16.mxu0 %v6321_v22  ;;  %v1617_v22 = vld [vmem:[#allocation2 + $0x388] sm:$0x80] }
 0x11b   : > { %10980 = vmatpush3.bf16.msra.mxu1 %v12724_v10  ;;  %v1646_v10 = vsel %vm817_vm3, %v1644_v59, %v1645_v60  ;;  %v1653_v35 = vrot.slane %v1617_v22, 7  ;;  %v1652_v39 = vsel %vm817_vm3, %v1650_v17, %v1651_v18  ;;  %v6599_v59 = vrot.slane %v6561_v50, 5  ;;  %v12748_v18 = vld [vmem:[#allocation4 + $0x1b8] sm:$0xff]  }
 0x11c   : > { %11556 = vmatpush3.bf16.msra.mxu0 %v12725_v11  ;;  %10981 = vmatprep.subr.bf16.mxu1 %v12726_v19  ;;  %v12736_v11 = vld [vmem:[#allocation4 + $0x188] sm:$0xff]   ;;  %v6600_v60 = vrot.slane %v6562_v51, 5  ;;  %v12749_v22 = vld [vmem:[#allocation4 + $0x638] sm:$0xff]  }
 0x11d   : > { %11557 = vmatprep.subr.bf16.mxu0 %v12727_v23  ;;  %v6831_v51 = vld [vmem:[#allocation2 + $0x5a8] sm:$0x7] }
 0x11e   : > { %10966 = vmatmul.mubr.bf16.gmra.mrb[8].mxu1 %v1384_v30  ;;  %v6591_v30 = vrot.slane %v6556_v21, 5  ;;  %v6601_v7 = vsel %vm5758_vm4, %v6599_v59, %v6600_v60  ;;  %v6833_v59 = vld [vmem:[#allocation2 + $0x5c8] sm:$0x7]  ;;  %v12754_v60 = vld [vmem:[#allocation4 + $0x1d0] sm:$0xff]  }
 0x11f   : > { %11542 = vmatmul.mubr.bf16.gmra.mrb[8].mxu0 %v6324_v31  ;;  %10982 = vmatpush3.bf16.msra.mxu1 %v12726_v19  ;;  %v6586_v19 = vsel %vm5758_vm4, %v6584_v62, %v6585_v63  ;;  %v1619_v31 = vld [vmem:[#allocation2 + $0x3a8] sm:$0x80]  ;;  %v6869_v4 = vrot.slane %v6833_v59, 3  ;;  %v7101_v59 = vld [vmem:[#allocation2 + $0x570] sm:$0xf] }
 0x120   : > { %11558 = vmatpush3.bf16.msra.mxu0 %v12727_v23  ;;  %10983 = vmatprep.subr.bf16.mxu1 %v12728_v32  ;;  %v1618_v23 = vld [vmem:[#allocation2 + $0x390] sm:$0x7f]  ;;  %v1656_v41 = vrot.slane %v1619_v31, 7  ;;  %v12745_v63 = vld [vmem:[#allocation4 + $0x628] sm:$0xff]  }
 0x121   : > { %11559 = vmatprep.subr.bf16.mxu0 %v12729_v33  ;;  %10969 = vmatprep.mubr.bf16.mxu1 %v1387_v42  ;;  %v1654_v36 = vrot.slane %v1618_v23, 7  ;;  %v1886_v23 = vld [vmem:[#allocation2 + $0x3e8] sm:$0xfe] }
 0x122   : > { %11545 = vmatprep.mubr.bf16.mxu0 %v6327_v47 }
 0x123   : > { %10984 = vmatpush3.bf16.msra.mxu1 %v12728_v32  ;;  %v1620_v32 = vld [vmem:[#allocation2 + $0x3b0] sm:$0x7f]  ;;  %v1655_v47 = vsel %vm817_vm3, %v1653_v35, %v1654_v36  ;;  %v6829_v35 = vld [vmem:[#allocation2 + $0x588] sm:$0x7]  ;;  %v12750_v36 = vld [vmem:[#allocation4 + $0x1c0] sm:$0xff]  }
 0x124   : > { %11560 = vmatpush3.bf16.msra.mxu0 %v12729_v33  ;;  %10985 = vmatprep.subr.bf16.mxu1 %v12730_v43  ;;  %v12739_v33 = vld [vmem:[#allocation4 + $0x610] sm:$0xff]   ;;  %v1657_v42 = vrot.slane %v1620_v32, 7  ;;  %v1919_v32 = vrot.slane %v1886_v23, 1  ;;  %v6863_v44 = vrot.slane %v6829_v35, 3  ;;  %v12759_v23 = vld [vmem:[#allocation4 + $0x660] sm:$0xff]  }
 0x125   : > { %11561 = vmatprep.subr.bf16.mxu0 %v12731_v49  ;;  %v6839_v35 = vld [vmem:[#allocation2 + $0x628] sm:$0x7] }
 0x126   : > { %10970 = vmatmul.mubr.bf16.gmra.mrb[12].mxu1 %v1390_v52  ;;  %v12742_v52 = vld [vmem:[#allocation4 + $0x1a0] sm:$0xff]   ;;  %v1658_v62 = vsel %vm817_vm3, %v1656_v41, %v1657_v42  ;;  %v12752_v42 = vld [vmem:[#allocation4 + $0x1c8] sm:$0xff]  }
 0x127   : > { %11546 = vmatmul.mubr.bf16.gmra.mrb[12].mxu0 %v6330_v61  ;;  %10986 = vmatpush3.bf16.msra.mxu1 %v12730_v43  ;;  %v6592_v43 = vsel %vm5758_vm4, %v6590_v29, %v6591_v30  ;;  %v1623_v61 = vld [vmem:[#allocation2 + $0x3e8] sm:$0x80]  ;;  %v1889_v30 = vld [vmem:[#allocation2 + $0x410] sm:$0x1] }
 0x128   : > { %11562 = vmatpush3.bf16.msra.mxu0 %v12731_v49  ;;  %10987 = vmatprep.subr.bf16.mxu1 %v12732_v55  ;;  %v6595_v49 = vsel %vm5758_vm4, %v6593_v37, %v6594_v38  ;;  %v1662_v8 = vrot.slane %v1623_v61, 7  ;;  %v1888_v29 = vld [vmem:[#allocation2 + $0x408] sm:$0xfe]  ;;  %v6860_v38 = vrot.slane %v6827_v27, 3  ;;  %v1923_v41 = vrot.slane %v1889_v30, 1 }
 0x129   : > { %11563 = vmatprep.subr.bf16.mxu0 %v12733_v56  ;;  %10989 = vmatprep.mubr.bf16.mxu1 %v1643_v2  ;;  %v6598_v2 = vsel %vm5758_vm4, %v6596_v53, %v6597_v54  ;;  %v1925_v53 = vrot.slane %v1890_v45, 1  ;;  %v1926_v54 = vrot.slane %v1891_v48, 1 }
 0x12a   : > { %11565 = vmatprep.mubr.bf16.mxu0 %v6583_v5  ;;  %v1885_v5 = vld [vmem:[#allocation2 + $0x3d0] sm:$0x1] }
 0x12b   : > { %10988 = vmatpush3.bf16.msra.mxu1 %v12732_v55  ;;  %v12743_v55 = vld [vmem:[#allocation4 + $0x620] sm:$0xff]   ;;  %v1917_v17 = vrot.slane %v1885_v5, 1  ;;  %v1927_v5 = vsel %vm268_vm0, %v1925_v53, %v1926_v54  ;;  %v12765_v54 = vld [vmem:[#allocation4 + $0x678] sm:$0xff]  }
 0x12c   : > { %11564 = vmatpush3.bf16.msra.mxu0 %v12733_v56  ;;  %11005 = vmatprep.subr.bf16.mxu1 %v12734_v3  ;;  %v1659_v56 = vrot.slane %v1621_v46, 7 }
 0x12d   : > { %11581 = vmatprep.subr.bf16.mxu0 %v12735_v9 }
 0x12e   : > { %10990 = vmatmul.mubr.bf16.vlgmr.msra.gmra.mrb[0].mxu1 %v1646_v10  ;;  %v1661_v6 = vsel %vm817_vm3, %v1659_v56, %v1660_v57  ;;  %v6824_v10 = vld [vmem:[#allocation2 + $0x540] sm:$0xf8]  ;;  %v1893_v57 = vld [vmem:[#allocation2 + $0x450] sm:$0x1] }
 0x12f   : > { %11566 = vmatmul.mubr.bf16.vlgmr.msra.gmra.mrb[0].mxu0 %v6586_v19  ;;  %11006 = vmatpush3.bf16.msra.mxu1 %v12734_v3  ;;  %v6564_v3 = vld [vmem:[#allocation2 + $0x3f8] sm:$0x1f]  ;;  %v6856_v19 = vrot.slane %v6824_v10, 3  ;;  %v6834_v10 = vld [vmem:[#allocation2 + $0x5e0] sm:$0xf8] }
 0x130   : > { %11582 = vmatpush3.bf16.msra.mxu0 %v12735_v9  ;;  %11007 = vmatprep.subr.bf16.mxu1 %v12736_v11  ;;  %v1663_v9 = vrot.slane %v1624_v0, 7  ;;  %v12756_v0 = vld [vmem:[#allocation4 + $0x1d8] sm:$0xff]  }
 0x131   : > { %11583 = vmatprep.subr.bf16.mxu0 %v12737_v14  ;;  %10993 = vmatprep.mubr.bf16.mxu1 %v1649_v25 }
 0x132   : > { %11569 = vmatprep.mubr.bf16.mxu0 %v6589_v28  ;;  %v1664_v21 = vsel %vm817_vm3, %v1662_v8, %v1663_v9  ;;  %v1918_v28 = vsel %vm268_vm0, %v1916_v16, %v1917_v17  ;;  %v1895_v9 = vld [vmem:[#allocation2 + $0x470] sm:$0x1] }
 0x133   : > { %11008 = vmatpush3.bf16.msra.mxu1 %v12736_v11  ;;  %v6825_v11 = vld [vmem:[#allocation2 + $0x548] sm:$0x7]  ;;  %v1932_v17 = vrot.slane %v1895_v9, 1 }
 0x134   : > { %11584 = vmatpush3.bf16.msra.mxu0 %v12737_v14  ;;  %11009 = vmatprep.subr.bf16.mxu1 %v12738_v26  ;;  %v6603_v14 = vrot.slane %v6564_v3, 5  ;;  %v6857_v20 = vrot.slane %v6825_v11, 3  ;;  %v6835_v11 = vld [vmem:[#allocation2 + $0x5e8] sm:$0x7] }
 0x135   : > { %11585 = vmatprep.subr.bf16.mxu0 %v12739_v33 }
 0x136   : > { %10994 = vmatmul.mubr.bf16.gmra.mrb[4].mxu1 %v1652_v39  ;;  %v6604_v25 = vsel %vm5758_vm4, %v6602_v13, %v6603_v14  ;;  %v6858_v31 = vsel %vm5209_vm1, %v6856_v19, %v6857_v20  ;;  %v12751_v39 = vld [vmem:[#allocation4 + $0x640] sm:$0xff]   ;;  %v1896_v13 = vld [vmem:[#allocation2 + $0x488] sm:$0xfe]  ;;  %v1897_v14 = vld [vmem:[#allocation2 + $0x490] sm:$0x1] }
 0x137   : > { %11570 = vmatmul.mubr.bf16.gmra.mrb[4].mxu0 %v6592_v43  ;;  %11010 = vmatpush3.bf16.msra.mxu1 %v12738_v26  ;;  %v6826_v26 = vld [vmem:[#allocation2 + $0x560] sm:$0xf8]  ;;  %v6837_v19 = vld [vmem:[#allocation2 + $0x608] sm:$0x7] }
 0x138   : > { %11586 = vmatpush3.bf16.msra.mxu0 %v12739_v33  ;;  %11011 = vmatprep.subr.bf16.mxu1 %v12740_v34  ;;  %v1920_v33 = vrot.slane %v1887_v24, 1  ;;  %v6859_v37 = vrot.slane %v6826_v26, 3  ;;  %v12758_v20 = vld [vmem:[#allocation4 + $0x1e0] sm:$0xff]   ;;  %v1934_v24 = vrot.slane %v1896_v13, 1  ;;  %v12760_v26 = vld [vmem:[#allocation4 + $0x1e8] sm:$0xff]  }
 0x139   : > { %11587 = vmatprep.subr.bf16.mxu0 %v12741_v40  ;;  %10997 = vmatprep.mubr.bf16.mxu1 %v1655_v47  ;;  %v12753_v47 = vld [vmem:[#allocation4 + $0x648] sm:$0xff]  }
 0x13a   : > { %11573 = vmatprep.mubr.bf16.mxu0 %v6595_v49  ;;  %v1921_v46 = vsel %vm268_vm0, %v1919_v32, %v1920_v33  ;;  %v6830_v49 = vld [vmem:[#allocation2 + $0x5a0] sm:$0xf8]  ;;  %v6861_v50 = vsel %vm5209_vm1, %v6859_v37, %v6860_v38  ;;  %v12761_v33 = vld [vmem:[#allocation4 + $0x668] sm:$0xff]   ;;  %v12762_v37 = vld [vmem:[#allocation4 + $0x1f0] sm:$0xff]  }
 0x13b   : > { %11012 = vmatpush3.bf16.msra.mxu1 %v12740_v34  ;;  %v6828_v34 = vld [vmem:[#allocation2 + $0x580] sm:$0xf8]  ;;  %v6865_v61 = vrot.slane %v6830_v49, 3  ;;  %v2158_v38 = vld [vmem:[#allocation2 + $0x3c8] sm:$0xf0] }
 0x13c   : > { %11588 = vmatpush3.bf16.msra.mxu0 %v12741_v40  ;;  %11013 = vmatprep.subr.bf16.mxu1 %v12742_v52  ;;  %v1922_v40 = vrot.slane %v1888_v29, 1  ;;  %v6862_v43 = vrot.slane %v6828_v34, 3  ;;  %v1898_v29 = vld [vmem:[#allocation2 + $0x4a8] sm:$0xfe]  ;;  %v6838_v34 = vld [vmem:[#allocation2 + $0x620] sm:$0xf8] }
 0x13d   : > { %11589 = vmatprep.subr.bf16.mxu0 %v12743_v55  ;;  %v6877_v45 = vrot.slane %v6838_v34, 3  ;;  %v2190_v48 = vrot.slane %v2158_v38, 4  ;;  %v12768_v13 = vld [vmem:[#allocation4 + $0x208] sm:$0xff]  }
 0x13e   : > { %10998 = vmatmul.mubr.bf16.gmra.mrb[8].mxu1 %v1658_v62  ;;  %v6864_v56 = vsel %vm5209_vm1, %v6862_v43, %v6863_v44  ;;  %v6866_v62 = vrot.slane %v6831_v51, 3  ;;  %v7098_v43 = vld [vmem:[#allocation2 + $0x548] sm:$0xf0]  ;;  %v7099_v44 = vld [vmem:[#allocation2 + $0x550] sm:$0xf] }
 0x13f   : > { %11574 = vmatmul.mubr.bf16.gmra.mrb[8].mxu0 %v6598_v2  ;;  %11014 = vmatpush3.bf16.msra.mxu1 %v12742_v52  ;;  %v1924_v52 = vsel %vm268_vm0, %v1922_v40, %v1923_v41  ;;  %v1929_v2 = vrot.slane %v1893_v57, 1  ;;  %v1937_v41 = vrot.slane %v1898_v29, 1  ;;  %v7130_v51 = vrot.slane %v7098_v43, 4  ;;  %v2161_v57 = vld [vmem:[#allocation2 + $0x3f0] sm:$0xf] }
 0x140   : > { %11590 = vmatpush3.bf16.msra.mxu0 %v12743_v55  ;;  %11015 = vmatprep.subr.bf16.mxu1 %v12744_v58  ;;  %v1892_v55 = vld [vmem:[#allocation2 + $0x448] sm:$0xfe]  ;;  %v6867_v8 = vsel %vm5209_vm1, %v6865_v61, %v6866_v62  ;;  %v2163_v61 = vld [vmem:[#allocation2 + $0x410] sm:$0xf] }
 0x141   : > { %11591 = vmatprep.subr.bf16.mxu0 %v12745_v63  ;;  %11001 = vmatprep.mubr.bf16.mxu1 %v1661_v6  ;;  %v1928_v1 = vrot.slane %v1892_v55, 1  ;;  %v12757_v6 = vld [vmem:[#allocation4 + $0x658] sm:$0xff]   ;;  %v2160_v55 = vld [vmem:[#allocation2 + $0x3e8] sm:$0xf0]  ;;  %v2197_v9 = vrot.slane %v2163_v61, 4 }
 0x142   : > { %11577 = vmatprep.mubr.bf16.mxu0 %v6601_v7  ;;  %v1894_v7 = vld [vmem:[#allocation2 + $0x468] sm:$0xfe]  ;;  %v7113_v61 = vld [vmem:[#allocation2 + $0x630] sm:$0xf] }
 0x143   : > { %11016 = vmatpush3.bf16.msra.mxu1 %v12744_v58  ;;  %v6832_v58 = vld [vmem:[#allocation2 + $0x5c0] sm:$0xf8]  ;;  %v1931_v16 = vrot.slane %v1894_v7, 1  ;;  %v7134_v7 = vrot.slane %v7101_v59, 4  ;;  %v2170_v43 = vld [vmem:[#allocation2 + $0x488] sm:$0xf0] }
 0x144   : > { %11592 = vmatpush3.bf16.msra.mxu0 %v12745_v63  ;;  %11017 = vmatprep.subr.bf16.mxu1 %v12746_v12  ;;  %v12755_v63 = vld [vmem:[#allocation4 + $0x650] sm:$0xff]   ;;  %v6868_v3 = vrot.slane %v6832_v58, 3  ;;  %v7100_v58 = vld [vmem:[#allocation2 + $0x568] sm:$0xf0] }
 0x145   : > { %11593 = vmatprep.subr.bf16.mxu0 %v12747_v15  ;;  %v1933_v30 = vsel %vm268_vm0, %v1931_v16, %v1932_v17  ;;  %v12769_v16 = vld [vmem:[#allocation4 + $0x688] sm:$0xff]   ;;  %v2173_v59 = vld [vmem:[#allocation2 + $0x4b0] sm:$0xf] }
 0x146   : > { %11002 = vmatmul.mubr.bf16.gmra.mrb[12].mxu1 %v1664_v21  ;;  %v6871_v21 = vrot.slane %v6834_v10, 3 }
 0x147   : > { %11578 = vmatmul.mubr.bf16.gmra.mrb[12].mxu0 %v6604_v25  ;;  %11018 = vmatpush3.bf16.msra.mxu1 %v12746_v12  ;;  %v1930_v12 = vsel %vm268_vm0, %v1928_v1, %v1929_v2  ;;  %v1935_v25 = vrot.slane %v1897_v14, 1  ;;  %v2193_v2 = vrot.slane %v2160_v55, 4  ;;  %v2165_v14 = vld [vmem:[#allocation2 + $0x430] sm:$0xf]  ;;  %v2208_v55 = vrot.slane %v2170_v43, 4  ;;  %v12784_v43 = vld [vmem:[#allocation4 + $0x248] sm:$0xff]  }
 0x148   : > { %11594 = vmatpush3.bf16.msra.mxu0 %v12747_v15  ;;  %11019 = vmatprep.subr.bf16.mxu1 %v12748_v18  ;;  %v6870_v15 = vsel %vm5209_vm1, %v6868_v3, %v6869_v4  ;;  %v2194_v3 = vrot.slane %v2161_v57, 4  ;;  %v12766_v4 = vld [vmem:[#allocation4 + $0x200] sm:$0xff]   ;;  %v7111_v57 = vld [vmem:[#allocation2 + $0x610] sm:$0xf] }
 0x149   : > { %11595 = vmatprep.subr.bf16.mxu0 %v12749_v22  ;;  %11021 = vmatprep.mubr.bf16.mxu1 %v1918_v28  ;;  %v6875_v28 = vrot.slane %v6837_v19, 3  ;;  %v7105_v19 = vld [vmem:[#allocation2 + $0x5b0] sm:$0xf] }
 0x14a   : > { %11597 = vmatprep.mubr.bf16.mxu0 %v6858_v31  ;;  %v1899_v31 = vld [vmem:[#allocation2 + $0x4b0] sm:$0x1] }
 0x14b   : > { %11020 = vmatpush3.bf16.msra.mxu1 %v12748_v18  ;;  %v6836_v18 = vld [vmem:[#allocation2 + $0x600] sm:$0xf8] }
 0x14c   : > { %11596 = vmatpush3.bf16.msra.mxu0 %v12749_v22  ;;  %11037 = vmatprep.subr.bf16.mxu1 %v12750_v36  ;;  %v6872_v22 = vrot.slane %v6835_v11, 3  ;;  %v6874_v27 = vrot.slane %v6836_v18, 3  ;;  %v7104_v18 = vld [vmem:[#allocation2 + $0x5a8] sm:$0xf0] }
 0x14d   : > { %11613 = vmatprep.subr.bf16.mxu0 %v12751_v39  ;;  %v7139_v29 = vrot.slane %v7104_v18, 4  ;;  %v2434_v18 = vld [vmem:[#allocation2 + $0x3e8] sm:$0x80] }
 0x14e   : > { %11022 = vmatmul.mubr.bf16.vlgmr.msra.gmra.mrb[0].mxu1 %v1921_v46  ;;  %v6873_v32 = vsel %vm5209_vm1, %v6871_v21, %v6872_v22  ;;  %v6876_v40 = vsel %vm5209_vm1, %v6874_v27, %v6875_v28  ;;  %v6878_v46 = vrot.slane %v6839_v35, 3  ;;  %v2167_v21 = vld [vmem:[#allocation2 + $0x450] sm:$0xf]  ;;  %v7106_v22 = vld [vmem:[#allocation2 + $0x5c8] sm:$0xf0] }
 0x14f   : > { %11598 = vmatmul.mubr.bf16.vlgmr.msra.gmra.mrb[0].mxu0 %v6861_v50  ;;  %11038 = vmatpush3.bf16.msra.mxu1 %v12750_v36  ;;  %v1936_v36 = vsel %vm268_vm0, %v1934_v24, %v1935_v25  ;;  %v12764_v50 = vld [vmem:[#allocation4 + $0x1f8] sm:$0xff]   ;;  %v12770_v27 = vld [vmem:[#allocation4 + $0x210] sm:$0xff]   ;;  %v7142_v34 = vrot.slane %v7106_v22, 4 }
 0x150   : > { %11614 = vmatpush3.bf16.msra.mxu0 %v12751_v39  ;;  %11039 = vmatprep.subr.bf16.mxu1 %v12752_v42  ;;  %v2159_v39 = vld [vmem:[#allocation2 + $0x3d0] sm:$0xf] }
 0x151   : > { %11615 = vmatprep.subr.bf16.mxu0 %v12753_v47  ;;  %11025 = vmatprep.mubr.bf16.mxu1 %v1924_v52  ;;  %v2191_v49 = vrot.slane %v2159_v39, 4  ;;  %v7131_v52 = vrot.slane %v7099_v44, 4  ;;  %v7108_v39 = vld [vmem:[#allocation2 + $0x5e8] sm:$0xf0]  ;;  %v2171_v44 = vld [vmem:[#allocation2 + $0x490] sm:$0xf] }
 0x152   : > { %11601 = vmatprep.mubr.bf16.mxu0 %v6864_v56  ;;  %v6879_v56 = vsel %vm5209_vm1, %v6877_v45, %v6878_v46  ;;  %v12773_v45 = vld [vmem:[#allocation4 + $0x698] sm:$0xff]  }
 0x153   : > { %11040 = vmatpush3.bf16.msra.mxu1 %v12752_v42  ;;  %v1938_v42 = vrot.slane %v1899_v31, 1  ;;  %v2192_v62 = vsel %vm542_vm2, %v2190_v48, %v2191_v49  ;;  %v7132_v1 = vsel %vm542_vm2, %v7130_v51, %v7131_v52  ;;  %v12771_v31 = vld [vmem:[#allocation4 + $0x690] sm:$0xff]   ;;  %v12774_v49 = vld [vmem:[#allocation4 + $0x220] sm:$0xff]   ;;  %v7110_v52 = vld [vmem:[#allocation2 + $0x608] sm:$0xf0] }
 0x154   : > { %11616 = vmatpush3.bf16.msra.mxu0 %v12753_v47  ;;  %11041 = vmatprep.subr.bf16.mxu1 %v12754_v60  ;;  %v12763_v47 = vld [vmem:[#allocation4 + $0x670] sm:$0xff]  }
 0x155   : > { %11617 = vmatprep.subr.bf16.mxu0 %v12755_v63  ;;  %v1939_v53 = vsel %vm268_vm0, %v1937_v41, %v1938_v42  ;;  %v12772_v42 = vld [vmem:[#allocation4 + $0x218] sm:$0xff]  }
 0x156   : > { %11026 = vmatmul.mubr.bf16.gmra.mrb[4].mxu1 %v1927_v5  ;;  %v12767_v5 = vld [vmem:[#allocation4 + $0x680] sm:$0xff]  }
 0x157   : > { %11602 = vmatmul.mubr.bf16.gmra.mrb[4].mxu0 %v6867_v8  ;;  %11042 = vmatpush3.bf16.msra.mxu1 %v12754_v60  ;;  %v2162_v60 = vld [vmem:[#allocation2 + $0x408] sm:$0xf0] }
 0x158   : > { %11618 = vmatpush3.bf16.msra.mxu0 %v12755_v63  ;;  %11043 = vmatprep.subr.bf16.mxu1 %v12756_v0  ;;  %v7102_v63 = vld [vmem:[#allocation2 + $0x588] sm:$0xf0]  ;;  %v2196_v8 = vrot.slane %v2162_v60, 4 }
 0x159   : > { %11619 = vmatprep.subr.bf16.mxu0 %v12757_v6  ;;  %11029 = vmatprep.mubr.bf16.mxu1 %v1930_v12  ;;  %v7136_v10 = vrot.slane %v7102_v63, 4  ;;  %v2164_v12 = vld [vmem:[#allocation2 + $0x428] sm:$0xf0]  ;;  %v7148_v63 = vrot.slane %v7110_v52, 4 }
 0x15a   : > { %11605 = vmatprep.mubr.bf16.mxu0 %v6870_v15  ;;  %v2195_v15 = vsel %vm542_vm2, %v2193_v2, %v2194_v3  ;;  %v2198_v24 = vsel %vm542_vm2, %v2196_v8, %v2197_v9  ;;  %v2199_v25 = vrot.slane %v2164_v12, 4  ;;  %v7112_v60 = vld [vmem:[#allocation2 + $0x628] sm:$0xf0]  ;;  %v7152_v9 = vrot.slane %v7113_v61, 4  ;;  %v7372_v12 = vld [vmem:[#allocation2 + $0x550] sm:$0xe0] }
 0x15b   : > { %11044 = vmatpush3.bf16.msra.mxu1 %v12756_v0  ;;  %v7103_v0 = vld [vmem:[#allocation2 + $0x590] sm:$0xf]  ;;  %v12776_v2 = vld [vmem:[#allocation4 + $0x228] sm:$0xff]   ;;  %v7151_v8 = vrot.slane %v7112_v60, 4 }
 0x15c   : > { %11620 = vmatpush3.bf16.msra.mxu0 %v12757_v6  ;;  %11045 = vmatprep.subr.bf16.mxu1 %v12758_v20  ;;  %v7133_v6 = vrot.slane %v7100_v58, 4  ;;  %v7137_v11 = vrot.slane %v7103_v0, 4  ;;  %v2172_v58 = vld [vmem:[#allocation2 + $0x4a8] sm:$0xf0]  ;;  %v7149_v0 = vrot.slane %v7111_v57, 4  ;;  %v12786_v60 = vld [vmem:[#allocation4 + $0x250] sm:$0xff]  }
 0x15d   : > { %11621 = vmatprep.subr.bf16.mxu0 %v12759_v23  ;;  %v2432_v3 = vld [vmem:[#allocation2 + $0x3c8] sm:$0x80]  ;;  %v7380_v57 = vld [vmem:[#allocation2 + $0x5d0] sm:$0xe0] }
 0x15e   : > { %11030 = vmatmul.mubr.bf16.gmra.mrb[8].mxu1 %v1933_v30  ;;  %v7135_v17 = vsel %vm542_vm2, %v7133_v6, %v7134_v7  ;;  %v7138_v28 = vsel %vm542_vm2, %v7136_v10, %v7137_v11  ;;  %v7140_v30 = vrot.slane %v7105_v19, 4  ;;  %v2211_v6 = vrot.slane %v2172_v58, 4  ;;  %v12778_v11 = vld [vmem:[#allocation4 + $0x230] sm:$0xff]  }
 0x15f   : > { %11606 = vmatmul.mubr.bf16.gmra.mrb[8].mxu0 %v6873_v32  ;;  %11046 = vmatpush3.bf16.msra.mxu1 %v12758_v20  ;;  %v2166_v20 = vld [vmem:[#allocation2 + $0x448] sm:$0xf0]  ;;  %v2212_v7 = vrot.slane %v2173_v59, 4  ;;  %v2435_v19 = vld [vmem:[#allocation2 + $0x3f0] sm:$0x7f] }
 0x160   : > { %11622 = vmatpush3.bf16.msra.mxu0 %v12759_v23  ;;  %11047 = vmatprep.subr.bf16.mxu1 %v12760_v26  ;;  %v7107_v23 = vld [vmem:[#allocation2 + $0x5d0] sm:$0xf]  ;;  %v2202_v32 = vrot.slane %v2166_v20, 4  ;;  %v7141_v41 = vsel %vm542_vm2, %v7139_v29, %v7140_v30  ;;  %v7374_v20 = vld [vmem:[#allocation2 + $0x570] sm:$0xe0]  ;;  %v2468_v29 = vrot.slane %v2435_v19, 7 }
 0x161   : > { %11623 = vmatprep.subr.bf16.mxu0 %v12761_v33  ;;  %11033 = vmatprep.mubr.bf16.mxu1 %v1936_v36  ;;  %v7143_v35 = vrot.slane %v7107_v23, 4  ;;  %v2168_v36 = vld [vmem:[#allocation2 + $0x468] sm:$0xf0]  ;;  %v2213_v22 = vsel %vm542_vm2, %v2211_v6, %v2212_v7  ;;  %v7404_v23 = vrot.slane %v7372_v12, 5  ;;  %v7407_v30 = vrot.slane %v7374_v20, 5  ;;  %v12789_v6 = vld [vmem:[#allocation4 + $0x6d8] sm:$0xff]  }
 0x162   : > { %11609 = vmatprep.mubr.bf16.mxu0 %v6876_v40  ;;  %v7109_v40 = vld [vmem:[#allocation2 + $0x5f0] sm:$0xf]  ;;  %v2205_v46 = vrot.slane %v2168_v36, 4  ;;  %v7376_v36 = vld [vmem:[#allocation2 + $0x590] sm:$0xe0] }
 0x163   : > { %11048 = vmatpush3.bf16.msra.mxu1 %v12760_v26  ;;  %v2200_v26 = vrot.slane %v2165_v14, 4  ;;  %v7146_v51 = vrot.slane %v7109_v40, 4  ;;  %v12779_v14 = vld [vmem:[#allocation4 + $0x6b0] sm:$0xff]   ;;  %v2438_v40 = vld [vmem:[#allocation2 + $0x428] sm:$0x80] }
 0x164   : > { %11624 = vmatpush3.bf16.msra.mxu0 %v12761_v33  ;;  %11049 = vmatprep.subr.bf16.mxu1 %v12762_v37  ;;  %v2203_v33 = vrot.slane %v2167_v21, 4  ;;  %v7375_v21 = vld [vmem:[#allocation2 + $0x578] sm:$0x1f]  ;;  %v2442_v7 = vld [vmem:[#allocation2 + $0x468] sm:$0x80] }
 0x165   : > { %11625 = vmatprep.subr.bf16.mxu0 %v12763_v47  ;;  %v2201_v38 = vsel %vm542_vm2, %v2199_v25, %v2200_v26  ;;  %v7153_v25 = vsel %vm542_vm2, %v7151_v8, %v7152_v9  ;;  %v12780_v26 = vld [vmem:[#allocation4 + $0x238] sm:$0xff]   ;;  %v2443_v8 = vld [vmem:[#allocation2 + $0x470] sm:$0x7f] }
 0x166   : > { %11034 = vmatmul.mubr.bf16.gmra.mrb[12].mxu1 %v1939_v53  ;;  %v2204_v48 = vsel %vm542_vm2, %v2202_v32, %v2203_v33  ;;  %v7144_v53 = vsel %vm542_vm2, %v7142_v34, %v7143_v35  ;;  %v2436_v32 = vld [vmem:[#allocation2 + $0x408] sm:$0x80]  ;;  %v12782_v34 = vld [vmem:[#allocation4 + $0x240] sm:$0xff]   ;;  %v2437_v35 = vld [vmem:[#allocation2 + $0x410] sm:$0x7f] }
 0x167   : > { %11610 = vmatmul.mubr.bf16.gmra.mrb[12].mxu0 %v6879_v56  ;;  %11050 = vmatpush3.bf16.msra.mxu1 %v12762_v37  ;;  %v2169_v37 = vld [vmem:[#allocation2 + $0x470] sm:$0xf]  ;;  %v2209_v56 = vrot.slane %v2171_v44, 4  ;;  %v2470_v44 = vrot.slane %v2436_v32, 7  ;;  %v7381_v59 = vld [vmem:[#allocation2 + $0x5d8] sm:$0x1f] }
 0x168   : > { %11626 = vmatpush3.bf16.msra.mxu0 %v12763_v47  ;;  %11051 = vmatprep.subr.bf16.mxu1 %v12764_v50  ;;  %v2206_v47 = vrot.slane %v2169_v37, 4 }
 0x169   : > { %11627 = vmatprep.subr.bf16.mxu0 %v12765_v54  ;;  %11053 = vmatprep.mubr.bf16.mxu1 %v2192_v62  ;;  %v2210_v10 = vsel %vm542_vm2, %v2208_v55, %v2209_v56  ;;  %v2441_v55 = vld [vmem:[#allocation2 + $0x450] sm:$0x7f] }
 0x16a   : > { %11629 = vmatprep.mubr.bf16.mxu0 %v7132_v1  ;;  %v2207_v62 = vsel %vm542_vm2, %v2205_v46, %v2206_v47  ;;  %v12785_v46 = vld [vmem:[#allocation4 + $0x6c8] sm:$0xff]   ;;  %v7410_v47 = vrot.slane %v7376_v36, 5 }
 0x16b   : > { %11052 = vmatpush3.bf16.msra.mxu1 %v12764_v50  ;;  %v7145_v50 = vrot.slane %v7108_v39, 4  ;;  %v7377_v39 = vld [vmem:[#allocation2 + $0x598] sm:$0x1f] }
 0x16c   : > { %11628 = vmatpush3.bf16.msra.mxu0 %v12765_v54  ;;  %11069 = vmatprep.subr.bf16.mxu1 %v12766_v4  ;;  %v12775_v54 = vld [vmem:[#allocation4 + $0x6a0] sm:$0xff]  }
 0x16d   : > { %11645 = vmatprep.subr.bf16.mxu0 %v12767_v5  ;;  %v7147_v1 = vsel %vm542_vm2, %v7145_v50, %v7146_v51  ;;  %v7378_v51 = vld [vmem:[#allocation2 + $0x5b0] sm:$0xe0] }
 0x16e   : > { %11054 = vmatmul.mubr.bf16.vlgmr.msra.gmra.mrb[0].mxu1 %v2195_v15  ;;  %v2464_v15 = vrot.slane %v2432_v3, 7  ;;  %v7413_v61 = vrot.slane %v7378_v51, 5  ;;  %v7416_v3 = vrot.slane %v7380_v57, 5 }
 0x16f   : > { %11630 = vmatmul.mubr.bf16.vlgmr.msra.gmra.mrb[0].mxu0 %v7135_v17  ;;  %11070 = vmatpush3.bf16.msra.mxu1 %v12766_v4  ;;  %v2433_v4 = vld [vmem:[#allocation2 + $0x3d0] sm:$0x7f]  ;;  %v7373_v17 = vld [vmem:[#allocation2 + $0x558] sm:$0x1f] }
 0x170   : > { %11646 = vmatpush3.bf16.msra.mxu0 %v12767_v5  ;;  %11071 = vmatprep.subr.bf16.mxu1 %v12768_v13  ;;  %v12777_v5 = vld [vmem:[#allocation4 + $0x6a8] sm:$0xff]  }
 0x171   : > { %11647 = vmatprep.subr.bf16.mxu0 %v12769_v16  ;;  %11057 = vmatprep.mubr.bf16.mxu1 %v2198_v24  ;;  %v7405_v24 = vrot.slane %v7373_v17, 5  ;;  %v2444_v17 = vld [vmem:[#allocation2 + $0x488] sm:$0x80] }
 0x172   : > { %11633 = vmatprep.mubr.bf16.mxu0 %v7138_v28  ;;  %v2467_v28 = vrot.slane %v2434_v18, 7  ;;  %v2445_v18 = vld [vmem:[#allocation2 + $0x490] sm:$0x7f] }
 0x173   : > { %11072 = vmatpush3.bf16.msra.mxu1 %v12768_v13  ;;  %v7150_v13 = vsel %vm542_vm2, %v7148_v63, %v7149_v0  ;;  %v7406_v37 = vsel %vm5758_vm4, %v7404_v23, %v7405_v24  ;;  %v12787_v63 = vld [vmem:[#allocation4 + $0x6d0] sm:$0xff]   ;;  %v12788_v0 = vld [vmem:[#allocation4 + $0x258] sm:$0xff]   ;;  %v12791_v23 = vld [vmem:[#allocation4 + $0x6e0] sm:$0xff]  }
 0x174   : > { %11648 = vmatpush3.bf16.msra.mxu0 %v12769_v16  ;;  %11073 = vmatprep.subr.bf16.mxu1 %v12770_v27  ;;  %v2465_v16 = vrot.slane %v2433_v4, 7  ;;  %v7417_v4 = vrot.slane %v7381_v59, 5  ;;  %v12792_v24 = vld [vmem:[#allocation4 + $0x268] sm:$0xff]  }
 0x175   : > { %11649 = vmatprep.subr.bf16.mxu0 %v12771_v31  ;;  %v2712_v59 = vld [vmem:[#allocation2 + $0x1c8] sm:$0x3f] }
 0x176   : > { %11058 = vmatmul.mubr.bf16.gmra.mrb[4].mxu1 %v2201_v38  ;;  %v2466_v33 = vsel %vm817_vm3, %v2464_v15, %v2465_v16  ;;  %v12783_v38 = vld [vmem:[#allocation4 + $0x6c0] sm:$0xff]   ;;  %v2479_v15 = vrot.slane %v2442_v7, 7  ;;  %v2480_v16 = vrot.slane %v2443_v8, 7  ;;  %v2716_v7 = vld [vmem:[#allocation2 + $0x208] sm:$0x3f] }
 0x177   : > { %11634 = vmatmul.mubr.bf16.gmra.mrb[4].mxu0 %v7141_v41  ;;  %11074 = vmatpush3.bf16.msra.mxu1 %v12770_v27  ;;  %v12781_v27 = vld [vmem:[#allocation4 + $0x6b8] sm:$0xff]   ;;  %v2439_v41 = vld [vmem:[#allocation2 + $0x430] sm:$0x7f] }
 0x178   : > { %11650 = vmatpush3.bf16.msra.mxu0 %v12771_v31  ;;  %11075 = vmatprep.subr.bf16.mxu1 %v12772_v42  ;;  %v7408_v31 = vrot.slane %v7375_v21, 5  ;;  %v2474_v50 = vrot.slane %v2439_v41, 7  ;;  %v7384_v21 = vld [vmem:[#allocation2 + $0x610] sm:$0xe0] }
 0x179   : > { %11651 = vmatprep.subr.bf16.mxu0 %v12773_v45  ;;  %11061 = vmatprep.mubr.bf16.mxu1 %v2204_v48  ;;  %v7411_v48 = vrot.slane %v7377_v39, 5 }
 0x17a   : > { %11637 = vmatprep.mubr.bf16.mxu0 %v7144_v53  ;;  %v7409_v52 = vsel %vm5758_vm4, %v7407_v30, %v7408_v31  ;;  %v7379_v53 = vld [vmem:[#allocation2 + $0x5b8] sm:$0x1f]  ;;  %v7422_v30 = vrot.slane %v7384_v21, 5 }
 0x17b   : > { %11076 = vmatpush3.bf16.msra.mxu1 %v12772_v42  ;;  %v2469_v42 = vsel %vm817_vm3, %v2467_v28, %v2468_v29  ;;  %v7412_v58 = vsel %vm5758_vm4, %v7410_v47, %v7411_v48  ;;  %v2481_v28 = vsel %vm817_vm3, %v2479_v15, %v2480_v16  ;;  %v12793_v29 = vld [vmem:[#allocation4 + $0x6e8] sm:$0xff]   ;;  %v2709_v48 = vld [vmem:[#allocation2 + $0x1a0] sm:$0xc0]  ;;  %v2753_v15 = vrot.slane %v2716_v7, 6  ;;  %v12805_v21 = vld [vmem:[#allocation4 + $0x718] sm:$0xff]  }
 0x17c   : > { %11652 = vmatpush3.bf16.msra.mxu0 %v12773_v45  ;;  %11077 = vmatprep.subr.bf16.mxu1 %v12774_v49  ;;  %v2471_v45 = vrot.slane %v2437_v35, 7  ;;  %v7387_v35 = vld [vmem:[#allocation2 + $0x638] sm:$0x1f]  ;;  %v2717_v16 = vld [vmem:[#allocation2 + $0x220] sm:$0xc0] }
 0x17d   : > { %11653 = vmatprep.subr.bf16.mxu0 %v12775_v54  ;;  %v12815_v7 = vld [vmem:[#allocation4 + $0x740] sm:$0xff]  }
 0x17e   : > { %11062 = vmatmul.mubr.bf16.gmra.mrb[8].mxu1 %v2207_v62  ;;  %v2472_v56 = vsel %vm817_vm3, %v2470_v44, %v2471_v45  ;;  %v7414_v62 = vrot.slane %v7379_v53, 5  ;;  %v7426_v44 = vrot.slane %v7387_v35, 5  ;;  %v12795_v45 = vld [vmem:[#allocation4 + $0x6f0] sm:$0xff]   ;;  %v12797_v53 = vld [vmem:[#allocation4 + $0x6f8] sm:$0xff]   ;;  %v7651_v35 = vld [vmem:[#allocation2 + $0xa0] sm:$0xff] }
 0x17f   : > { %11638 = vmatmul.mubr.bf16.gmra.mrb[8].mxu0 %v7147_v1  ;;  %11078 = vmatpush3.bf16.msra.mxu1 %v12774_v49  ;;  %v2473_v49 = vrot.slane %v2438_v40, 7 }
 0x180   : > { %11654 = vmatpush3.bf16.msra.mxu0 %v12775_v54  ;;  %11079 = vmatprep.subr.bf16.mxu1 %v12776_v2  ;;  %v2440_v54 = vld [vmem:[#allocation2 + $0x448] sm:$0x80]  ;;  %v7415_v9 = vsel %vm5758_vm4, %v7413_v61, %v7414_v62  ;;  %v12799_v61 = vld [vmem:[#allocation4 + $0x700] sm:$0xff]  }
 0x181   : > { %11655 = vmatprep.subr.bf16.mxu0 %v12777_v5  ;;  %11065 = vmatprep.mubr.bf16.mxu1 %v2210_v10  ;;  %v2476_v1 = vrot.slane %v2440_v54, 7  ;;  %v7382_v10 = vld [vmem:[#allocation2 + $0x5f0] sm:$0xe0] }
 0x182   : > { %11641 = vmatprep.mubr.bf16.mxu0 %v7150_v13  ;;  %v12790_v13 = vld [vmem:[#allocation4 + $0x260] sm:$0xff]   ;;  %v7419_v19 = vrot.slane %v7382_v10, 5 }
 0x183   : > { %11080 = vmatpush3.bf16.msra.mxu1 %v12776_v2  ;;  %v2477_v2 = vrot.slane %v2441_v55, 7  ;;  %v7646_v55 = vld [vmem:[#allocation2] sm:$0xff] }
 0x184   : > { %11656 = vmatpush3.bf16.msra.mxu0 %v12777_v5  ;;  %11081 = vmatprep.subr.bf16.mxu1 %v12778_v11  ;;  %v2475_v5 = vsel %vm817_vm3, %v2473_v49, %v2474_v50  ;;  %v2710_v50 = vld [vmem:[#allocation2 + $0x1a8] sm:$0x3f] }
 0x185   : > { %11657 = vmatprep.subr.bf16.mxu0 %v12779_v14  ;;  %v2478_v12 = vsel %vm817_vm3, %v2476_v1, %v2477_v2  ;;  %v2744_v57 = vrot.slane %v2710_v50, 6  ;;  %v7647_v1 = vld [vmem:[#allocation2 + $0x20] sm:$0xff]  ;;  %v12800_v2 = vld [vmem:[#allocation4 + $0x288] sm:$0xff]  }
 0x186   : > { %11066 = vmatmul.mubr.bf16.gmra.mrb[12].mxu1 %v2213_v22  ;;  %v7385_v22 = vld [vmem:[#allocation2 + $0x618] sm:$0x1f] }
 0x187   : > { %11642 = vmatmul.mubr.bf16.gmra.mrb[12].mxu0 %v7153_v25  ;;  %11082 = vmatpush3.bf16.msra.mxu1 %v12778_v11  ;;  %v7383_v11 = vld [vmem:[#allocation2 + $0x5f8] sm:$0x1f]  ;;  %v2482_v25 = vrot.slane %v2444_v17, 7  ;;  %v7423_v31 = vrot.slane %v7385_v22, 5  ;;  %v7650_v22 = vld [vmem:[#allocation2 + $0x80] sm:$0xff] }
 0x188   : > { %11658 = vmatpush3.bf16.msra.mxu0 %v12779_v14  ;;  %11083 = vmatprep.subr.bf16.mxu1 %v12780_v26  ;;  %v7418_v14 = vsel %vm5758_vm4, %v7416_v3, %v7417_v4  ;;  %v7420_v20 = vrot.slane %v7383_v11, 5  ;;  %v2713_v3 = vld [vmem:[#allocation2 + $0x1e0] sm:$0xc0]  ;;  %v2714_v4 = vld [vmem:[#allocation2 + $0x1e8] sm:$0x3f] }
 0x189   : > { %11659 = vmatprep.subr.bf16.mxu0 %v12781_v27  ;;  %11085 = vmatprep.mubr.bf16.mxu1 %v2466_v33  ;;  %v2447_v33 = vld [vmem:[#allocation2 + $0x4b0] sm:$0x7f]  ;;  %v7424_v39 = vsel %vm5758_vm4, %v7422_v30, %v7423_v31  ;;  %v2749_v10 = vrot.slane %v2713_v3, 6  ;;  %v2750_v11 = vrot.slane %v2714_v4, 6  ;;  %v2721_v30 = vld [vmem:[#allocation2 + $0x260] sm:$0xc0] }
 0x18a   : > { %11661 = vmatprep.mubr.bf16.mxu0 %v7406_v37  ;;  %v7421_v32 = vsel %vm5758_vm4, %v7419_v19, %v7420_v20  ;;  %v2707_v37 = vld [vmem:[#allocation2 + $0x180] sm:$0xc0]  ;;  %v2486_v41 = vrot.slane %v2447_v33, 7  ;;  %v12804_v20 = vld [vmem:[#allocation4 + $0x298] sm:$0xff]   ;;  %v2722_v33 = vld [vmem:[#allocation2 + $0x268] sm:$0x3f] }
 0x18b   : > { %11084 = vmatpush3.bf16.msra.mxu1 %v12780_v26  ;;  %v2483_v26 = vrot.slane %v2445_v18, 7  ;;  %v2751_v17 = vsel %vm2739_vm5, %v2749_v10, %v2750_v11  ;;  %v2718_v18 = vld [vmem:[#allocation2 + $0x228] sm:$0x3f]  ;;  %v7649_v19 = vld [vmem:[#allocation2 + $0x60] sm:$0xff] }
 0x18c   : > { %11660 = vmatpush3.bf16.msra.mxu0 %v12781_v27  ;;  %11101 = vmatprep.subr.bf16.mxu1 %v12782_v34  ;;  %v2446_v27 = vld [vmem:[#allocation2 + $0x4a8] sm:$0x80]  ;;  %v12814_v4 = vld [vmem:[#allocation4 + $0x2c0] sm:$0xff]  }
 0x18d   : > { %11677 = vmatprep.subr.bf16.mxu0 %v12783_v38  ;;  %v2484_v36 = vsel %vm817_vm3, %v2482_v25, %v2483_v26  ;;  %v2485_v40 = vrot.slane %v2446_v27, 7  ;;  %v2756_v25 = vrot.slane %v2718_v18, 6  ;;  %v12806_v26 = vld [vmem:[#allocation4 + $0x2a0] sm:$0xff]   ;;  %v12817_v18 = vld [vmem:[#allocation4 + $0x748] sm:$0xff]  }
 0x18e   : > { %11086 = vmatmul.mubr.bf16.vlgmr.msra.gmra.mrb[0].mxu1 %v2469_v42  ;;  %v12794_v42 = vld [vmem:[#allocation4 + $0x270] sm:$0xff]   ;;  %v2719_v27 = vld [vmem:[#allocation2 + $0x240] sm:$0xc0] }
 0x18f   : > { %11662 = vmatmul.mubr.bf16.vlgmr.msra.gmra.mrb[0].mxu0 %v7409_v52  ;;  %11102 = vmatpush3.bf16.msra.mxu1 %v12782_v34  ;;  %v7386_v34 = vld [vmem:[#allocation2 + $0x630] sm:$0xe0]  ;;  %v2487_v49 = vsel %vm817_vm3, %v2485_v40, %v2486_v41  ;;  %v12796_v52 = vld [vmem:[#allocation4 + $0x278] sm:$0xff]   ;;  %v2758_v31 = vrot.slane %v2719_v27, 6  ;;  %v2762_v40 = vrot.slane %v2722_v33, 6 }
 0x190   : > { %11678 = vmatpush3.bf16.msra.mxu0 %v12783_v38  ;;  %11103 = vmatprep.subr.bf16.mxu1 %v12784_v43  ;;  %v2708_v38 = vld [vmem:[#allocation2 + $0x188] sm:$0x3f] }
 0x191   : > { %11679 = vmatprep.subr.bf16.mxu0 %v12785_v46  ;;  %11089 = vmatprep.mubr.bf16.mxu1 %v2472_v56  ;;  %v2741_v47 = vrot.slane %v2708_v38, 6  ;;  %v2743_v56 = vrot.slane %v2709_v48, 6  ;;  %v7652_v38 = vld [vmem:[#allocation2 + $0xc0] sm:$0xff] }
 0x192   : > { %11665 = vmatprep.mubr.bf16.mxu0 %v7412_v58  ;;  %v2711_v58 = vld [vmem:[#allocation2 + $0x1c0] sm:$0xc0] }
 0x193   : > { %11104 = vmatpush3.bf16.msra.mxu1 %v12784_v43  ;;  %v7425_v43 = vrot.slane %v7386_v34, 5  ;;  %v2746_v62 = vrot.slane %v2711_v58, 6  ;;  %v7653_v48 = vld [vmem:[#allocation2 + $0xe0] sm:$0xff]  ;;  %v7866_v58 = vld [vmem:[#allocation2 + $0x28] sm:$0xf0] }
 0x194   : > { %11680 = vmatpush3.bf16.msra.mxu0 %v12785_v46  ;;  %11105 = vmatprep.subr.bf16.mxu1 %v12786_v60  ;;  %v2740_v46 = vrot.slane %v2707_v37, 6  ;;  %v12809_v37 = vld [vmem:[#allocation4 + $0x728] sm:$0xff]  }
 0x195   : > { %11681 = vmatprep.subr.bf16.mxu0 %v12787_v63  ;;  %v7427_v51 = vsel %vm5758_vm4, %v7425_v43, %v7426_v44  ;;  %v2982_v43 = vld [vmem:[#allocation2 + $0x188] sm:$0xf0]  ;;  %v2983_v44 = vld [vmem:[#allocation2 + $0x190] sm:$0xf] }
 0x196   : > { %11090 = vmatmul.mubr.bf16.gmra.mrb[4].mxu1 %v2475_v5  ;;  %v2742_v54 = vsel %vm2739_vm5, %v2740_v46, %v2741_v47  ;;  %v12801_v5 = vld [vmem:[#allocation4 + $0x708] sm:$0xff]   ;;  %v7865_v46 = vld [vmem:[#allocation2 + $0x10] sm:$0xf]  ;;  %v3014_v50 = vrot.slane %v2982_v43, 4  ;;  %v12821_v43 = vld [vmem:[#allocation4 + $0x758] sm:$0xff]  }
 0x197   : > { %11666 = vmatmul.mubr.bf16.gmra.mrb[4].mxu0 %v7415_v9  ;;  %11106 = vmatpush3.bf16.msra.mxu1 %v12786_v60  ;;  %v12798_v60 = vld [vmem:[#allocation4 + $0x280] sm:$0xff]   ;;  %v12811_v47 = vld [vmem:[#allocation4 + $0x730] sm:$0xff]  }
 0x198   : > { %11682 = vmatpush3.bf16.msra.mxu0 %v12787_v63  ;;  %11107 = vmatprep.subr.bf16.mxu1 %v12788_v0  ;;  %v2747_v63 = vrot.slane %v2712_v59, 6  ;;  %v7648_v9 = vld [vmem:[#allocation2 + $0x40] sm:$0xff]  ;;  %v7867_v59 = vld [vmem:[#allocation2 + $0x30] sm:$0xf] }
 0x199   : > { %11683 = vmatprep.subr.bf16.mxu0 %v12789_v6  ;;  %11093 = vmatprep.mubr.bf16.mxu1 %v2478_v12  ;;  %v12802_v12 = vld [vmem:[#allocation4 + $0x290] sm:$0xff]  }
 0x19a   : > { %11669 = vmatprep.mubr.bf16.mxu0 %v7418_v14  ;;  %v2748_v8 = vsel %vm2739_vm5, %v2746_v62, %v2747_v63  ;;  %v7868_v62 = vld [vmem:[#allocation2 + $0x48] sm:$0xf0] }
 0x19b   : > { %11108 = vmatpush3.bf16.msra.mxu1 %v12788_v0  ;;  %v2745_v0 = vsel %vm2739_vm5, %v2743_v56, %v2744_v57  ;;  %v12813_v56 = vld [vmem:[#allocation4 + $0x738] sm:$0xff]   ;;  %v2985_v57 = vld [vmem:[#allocation2 + $0x1b0] sm:$0xf]  ;;  %v7902_v10 = vrot.slane %v7868_v62, 4 }
 0x19c   : > { %11684 = vmatpush3.bf16.msra.mxu0 %v12789_v6  ;;  %11109 = vmatprep.subr.bf16.mxu1 %v12790_v13  ;;  %v2715_v6 = vld [vmem:[#allocation2 + $0x200] sm:$0xc0]  ;;  %v3018_v3 = vrot.slane %v2985_v57, 4 }
 0x19d   : > { %11685 = vmatprep.subr.bf16.mxu0 %v12791_v23  ;;  %v2752_v14 = vrot.slane %v2715_v6, 6  ;;  %v7900_v6 = vrot.slane %v7867_v59, 4 }
 0x19e   : > { %11094 = vmatmul.mubr.bf16.gmra.mrb[8].mxu1 %v2481_v28  ;;  %v2720_v28 = vld [vmem:[#allocation2 + $0x248] sm:$0x3f] }
 0x19f   : > { %11670 = vmatmul.mubr.bf16.gmra.mrb[8].mxu0 %v7421_v32  ;;  %11110 = vmatpush3.bf16.msra.mxu1 %v12790_v13  ;;  %v12803_v13 = vld [vmem:[#allocation4 + $0x710] sm:$0xff]   ;;  %v2759_v32 = vrot.slane %v2720_v28, 6 }
 0x1a0   : > { %11686 = vmatpush3.bf16.msra.mxu0 %v12791_v23  ;;  %11111 = vmatprep.subr.bf16.mxu1 %v12792_v24  ;;  %v2755_v23 = vrot.slane %v2717_v16, 6  ;;  %v7871_v16 = vld [vmem:[#allocation2 + $0x70] sm:$0xf] }
 0x1a1   : > { %11687 = vmatprep.subr.bf16.mxu0 %v12793_v29  ;;  %11097 = vmatprep.mubr.bf16.mxu1 %v2484_v36  ;;  %v12808_v36 = vld [vmem:[#allocation4 + $0x2a8] sm:$0xff]   ;;  %v2760_v41 = vsel %vm2739_vm5, %v2758_v31, %v2759_v32  ;;  %v12819_v31 = vld [vmem:[#allocation4 + $0x750] sm:$0xff]  }
 0x1a2   : > { %11673 = vmatprep.mubr.bf16.mxu0 %v7424_v39  ;;  %v2757_v34 = vsel %vm2739_vm5, %v2755_v23, %v2756_v25  ;;  %v2761_v39 = vrot.slane %v2721_v30, 6  ;;  %v7873_v23 = vld [vmem:[#allocation2 + $0x90] sm:$0xf] }
 0x1a3   : > { %11112 = vmatpush3.bf16.msra.mxu1 %v12792_v24  ;;  %v2754_v24 = vsel %vm2739_vm5, %v2752_v14, %v2753_v15  ;;  %v2989_v14 = vld [vmem:[#allocation2 + $0x1f0] sm:$0xf]  ;;  %v7870_v15 = vld [vmem:[#allocation2 + $0x68] sm:$0xf0] }
 0x1a4   : > { %11688 = vmatpush3.bf16.msra.mxu0 %v12793_v29  ;;  %11113 = vmatprep.subr.bf16.mxu1 %v12794_v42  ;;  %v12807_v29 = vld [vmem:[#allocation4 + $0x720] sm:$0xff]   ;;  %v3024_v27 = vrot.slane %v2989_v14, 4  ;;  %v7905_v28 = vrot.slane %v7870_v15, 4  ;;  %v12818_v30 = vld [vmem:[#allocation4 + $0x2d0] sm:$0xff]  }
 0x1a5   : > { %11689 = vmatprep.subr.bf16.mxu0 %v12795_v45 }
 0x1a6   : > { %11098 = vmatmul.mubr.bf16.gmra.mrb[12].mxu1 %v2487_v49  ;;  %v12812_v49 = vld [vmem:[#allocation4 + $0x2b8] sm:$0xff]  }
 0x1a7   : > { %11674 = vmatmul.mubr.bf16.gmra.mrb[12].mxu0 %v7427_v51  ;;  %11114 = vmatpush3.bf16.msra.mxu1 %v12794_v42  ;;  %v12810_v42 = vld [vmem:[#allocation4 + $0x2b0] sm:$0xff]   ;;  %v3015_v51 = vrot.slane %v2983_v44, 4 }
 0x1a8   : > { %11690 = vmatpush3.bf16.msra.mxu0 %v12795_v45  ;;  %11115 = vmatprep.subr.bf16.mxu1 %v12796_v52  ;;  %v7864_v45 = vld [vmem:[#allocation2 + $0x8] sm:$0xf0] }
 0x1a9   : > { %11691 = vmatprep.subr.bf16.mxu0 %v12797_v53  ;;  %11117 = vmatprep.mubr.bf16.mxu1 %v2742_v54  ;;  %v2984_v54 = vld [vmem:[#allocation2 + $0x1a8] sm:$0xf0]  ;;  %v3016_v63 = vsel %vm542_vm2, %v3014_v50, %v3015_v51 }
 0x1aa   : > { %11693 = vmatprep.mubr.bf16.mxu0 %v7646_v55  ;;  %v2763_v55 = vsel %vm2739_vm5, %v2761_v39, %v2762_v40  ;;  %v7875_v40 = vld [vmem:[#allocation2 + $0xb0] sm:$0xf]  ;;  %v2994_v51 = vld [vmem:[#allocation2 + $0x248] sm:$0xf0] }
 0x1ab   : > { %11116 = vmatpush3.bf16.msra.mxu1 %v12796_v52  ;;  %v7896_v52 = vrot.slane %v7864_v45, 4  ;;  %v3032_v57 = vrot.slane %v2994_v51, 4  ;;  %v3266_v51 = vld [vmem:[#allocation2 + $0x230] sm:$0xfc] }
 0x1ac   : > { %11692 = vmatpush3.bf16.msra.mxu0 %v12797_v53  ;;  %11133 = vmatprep.subr.bf16.mxu1 %v12798_v60  ;;  %v7897_v53 = vrot.slane %v7865_v46, 4 }
 0x1ad   : > { %11709 = vmatprep.subr.bf16.mxu0 %v12799_v61 }
 0x1ae   : > { %11118 = vmatmul.mubr.bf16.vlgmr.msra.gmra.mrb[0].mxu1 %v2745_v0  ;;  %v7869_v0 = vld [vmem:[#allocation2 + $0x50] sm:$0xf] }
 0x1af   : > { %11694 = vmatmul.mubr.bf16.vlgmr.msra.gmra.mrb[0].mxu0 %v7647_v1  ;;  %11134 = vmatpush3.bf16.msra.mxu1 %v12798_v60  ;;  %v2986_v60 = vld [vmem:[#allocation2 + $0x1c8] sm:$0xf0]  ;;  %v7898_v1 = vsel %vm542_vm2, %v7896_v52, %v7897_v53  ;;  %v7903_v11 = vrot.slane %v7869_v0, 4  ;;  %v2995_v52 = vld [vmem:[#allocation2 + $0x250] sm:$0xf] }
 0x1b0   : > { %11710 = vmatpush3.bf16.msra.mxu0 %v12799_v61  ;;  %11135 = vmatprep.subr.bf16.mxu1 %v12800_v2  ;;  %v2987_v61 = vld [vmem:[#allocation2 + $0x1d0] sm:$0xf]  ;;  %v7876_v53 = vld [vmem:[#allocation2 + $0xc8] sm:$0xf0] }
 0x1b1   : > { %11711 = vmatprep.subr.bf16.mxu0 %v12801_v5  ;;  %11121 = vmatprep.mubr.bf16.mxu1 %v2748_v8  ;;  %v3020_v8 = vrot.slane %v2986_v60, 4  ;;  %v7914_v60 = vrot.slane %v7876_v53, 4  ;;  %v2996_v0 = vld [vmem:[#allocation2 + $0x268] sm:$0xf0]  ;;  %v12837_v53 = vld [vmem:[#allocation4 + $0x798] sm:$0xff]  }
 0x1b2   : > { %11697 = vmatprep.mubr.bf16.mxu0 %v7648_v9  ;;  %v3021_v9 = vrot.slane %v2987_v61, 4 }
 0x1b3   : > { %11136 = vmatpush3.bf16.msra.mxu1 %v12800_v2  ;;  %v3017_v2 = vrot.slane %v2984_v54, 4  ;;  %v7877_v54 = vld [vmem:[#allocation2 + $0xd0] sm:$0xf] }
 0x1b4   : > { %11712 = vmatpush3.bf16.msra.mxu0 %v12801_v5  ;;  %11137 = vmatprep.subr.bf16.mxu1 %v12802_v12  ;;  %v7899_v5 = vrot.slane %v7866_v58, 4  ;;  %v3033_v58 = vrot.slane %v2995_v52, 4  ;;  %v7915_v61 = vrot.slane %v7877_v54, 4  ;;  %v3267_v52 = vld [vmem:[#allocation2 + $0x238] sm:$0x3] }
 0x1b5   : > { %11713 = vmatprep.subr.bf16.mxu0 %v12803_v13 }
 0x1b6   : > { %11122 = vmatmul.mubr.bf16.gmra.mrb[4].mxu1 %v2751_v17  ;;  %v3019_v17 = vsel %vm542_vm2, %v3017_v2, %v3018_v3  ;;  %v7878_v2 = vld [vmem:[#allocation2 + $0xe8] sm:$0xf0]  ;;  %v7879_v3 = vld [vmem:[#allocation2 + $0xf0] sm:$0xf] }
 0x1b7   : > { %11698 = vmatmul.mubr.bf16.gmra.mrb[4].mxu0 %v7649_v19  ;;  %11138 = vmatpush3.bf16.msra.mxu1 %v12802_v12  ;;  %v2988_v12 = vld [vmem:[#allocation2 + $0x1e8] sm:$0xf0] }
 0x1b8   : > { %11714 = vmatpush3.bf16.msra.mxu0 %v12803_v13  ;;  %11139 = vmatprep.subr.bf16.mxu1 %v12804_v20  ;;  %v12816_v13 = vld [vmem:[#allocation4 + $0x2c8] sm:$0xff]   ;;  %v3023_v25 = vrot.slane %v2988_v12, 4  ;;  %v7917_v12 = vrot.slane %v7878_v2, 4 }
 0x1b9   : > { %11715 = vmatprep.subr.bf16.mxu0 %v12805_v21  ;;  %11125 = vmatprep.mubr.bf16.mxu1 %v2754_v24  ;;  %v2990_v19 = vld [vmem:[#allocation2 + $0x208] sm:$0xf0]  ;;  %v3022_v24 = vsel %vm542_vm2, %v3020_v8, %v3021_v9  ;;  %v3035_v8 = vrot.slane %v2996_v0, 4 }
 0x1ba   : > { %11701 = vmatprep.mubr.bf16.mxu0 %v7650_v22  ;;  %v7872_v22 = vld [vmem:[#allocation2 + $0x88] sm:$0xf0]  ;;  %v3026_v32 = vrot.slane %v2990_v19, 4  ;;  %v3025_v39 = vsel %vm542_vm2, %v3023_v25, %v3024_v27  ;;  %v3261_v27 = vld [vmem:[#allocation2 + $0x1d8] sm:$0x3] }
 0x1bb   : > { %11140 = vmatpush3.bf16.msra.mxu1 %v12804_v20  ;;  %v2991_v20 = vld [vmem:[#allocation2 + $0x210] sm:$0xf] }
 0x1bc   : > { %11716 = vmatpush3.bf16.msra.mxu0 %v12805_v21  ;;  %11141 = vmatprep.subr.bf16.mxu1 %v12806_v26  ;;  %v7901_v21 = vsel %vm542_vm2, %v7899_v5, %v7900_v6  ;;  %v3027_v33 = vrot.slane %v2991_v20, 4  ;;  %v3034_v5 = vsel %vm542_vm2, %v3032_v57, %v3033_v58  ;;  %v3257_v6 = vld [vmem:[#allocation2 + $0x198] sm:$0x3]  ;;  %v3305_v57 = vrot.slane %v3267_v52, 2  ;;  %v3268_v58 = vld [vmem:[#allocation2 + $0x250] sm:$0xfc] }
 0x1bd   : > { %11717 = vmatprep.subr.bf16.mxu0 %v12807_v29  ;;  %v3290_v15 = vrot.slane %v3257_v6, 2  ;;  %v12828_v20 = vld [vmem:[#allocation4 + $0x2f8] sm:$0xff]   ;;  %v3307_v0 = vrot.slane %v3268_v58, 2  ;;  %v12854_v58 = vld [vmem:[#allocation4 + $0x360] sm:$0xff]  }
 0x1be   : > { %11126 = vmatmul.mubr.bf16.gmra.mrb[8].mxu1 %v2757_v34  ;;  %v7908_v34 = vrot.slane %v7872_v22, 4  ;;  %v3028_v44 = vsel %vm542_vm2, %v3026_v32, %v3027_v33  ;;  %v8138_v22 = vld [vmem:[#allocation2 + $0x18] sm:$0xff]  ;;  %v3296_v32 = vrot.slane %v3261_v27, 2  ;;  %v3262_v33 = vld [vmem:[#allocation2 + $0x1f0] sm:$0xfc] }
 0x1bf   : > { %11702 = vmatmul.mubr.bf16.gmra.mrb[8].mxu0 %v7651_v35  ;;  %11142 = vmatpush3.bf16.msra.mxu1 %v12806_v26  ;;  %v7904_v26 = vsel %vm542_vm2, %v7902_v10, %v7903_v11  ;;  %v7909_v35 = vrot.slane %v7873_v23, 4  ;;  %v12826_v10 = vld [vmem:[#allocation4 + $0x2f0] sm:$0xff]   ;;  %v3536_v27 = vld [vmem:[#allocation2 + $0x348] sm:$0x3f]  ;;  %v12852_v52 = vld [vmem:[#allocation4 + $0x358] sm:$0xff]  }
 0x1c0   : > { %11718 = vmatpush3.bf16.msra.mxu0 %v12807_v29  ;;  %11143 = vmatprep.subr.bf16.mxu1 %v12808_v36  ;;  %v7906_v29 = vrot.slane %v7871_v16, 4  ;;  %v12827_v11 = vld [vmem:[#allocation4 + $0x770] sm:$0xff]  }
 0x1c1   : > { %11719 = vmatprep.subr.bf16.mxu0 %v12809_v37  ;;  %11129 = vmatprep.mubr.bf16.mxu1 %v2760_v41  ;;  %v7910_v50 = vsel %vm542_vm2, %v7908_v34, %v7909_v35  ;;  %v3258_v16 = vld [vmem:[#allocation2 + $0x1b0] sm:$0xfc]  ;;  %v3263_v35 = vld [vmem:[#allocation2 + $0x1f8] sm:$0x3] }
 0x1c2   : > { %11705 = vmatprep.mubr.bf16.mxu0 %v7652_v38  ;;  %v7874_v38 = vld [vmem:[#allocation2 + $0xa8] sm:$0xf0]  ;;  %v7907_v41 = vsel %vm542_vm2, %v7905_v28, %v7906_v29  ;;  %v3292_v23 = vrot.slane %v3258_v16, 2  ;;  %v12830_v28 = vld [vmem:[#allocation4 + $0x300] sm:$0xff]  }
 0x1c3   : > { %11144 = vmatpush3.bf16.msra.mxu1 %v12808_v36  ;;  %v2992_v36 = vld [vmem:[#allocation2 + $0x228] sm:$0xf0]  ;;  %v12831_v29 = vld [vmem:[#allocation4 + $0x780] sm:$0xff]  }
 0x1c4   : > { %11720 = vmatpush3.bf16.msra.mxu0 %v12809_v37  ;;  %11145 = vmatprep.subr.bf16.mxu1 %v12810_v42  ;;  %v2993_v37 = vld [vmem:[#allocation2 + $0x230] sm:$0xf]  ;;  %v3029_v45 = vrot.slane %v2992_v36, 4  ;;  %v12832_v36 = vld [vmem:[#allocation4 + $0x308] sm:$0xff]  }
 0x1c5   : > { %11721 = vmatprep.subr.bf16.mxu0 %v12811_v47  ;;  %v3030_v46 = vrot.slane %v2993_v37, 4  ;;  %v12833_v37 = vld [vmem:[#allocation4 + $0x788] sm:$0xff]  }
 0x1c6   : > { %11130 = vmatmul.mubr.bf16.gmra.mrb[12].mxu1 %v2763_v55  ;;  %v12823_v55 = vld [vmem:[#allocation4 + $0x760] sm:$0xff]  }
 0x1c7   : > { %11706 = vmatmul.mubr.bf16.gmra.mrb[12].mxu0 %v7653_v48  ;;  %11146 = vmatpush3.bf16.msra.mxu1 %v12810_v42  ;;  %v12820_v42 = vld [vmem:[#allocation4 + $0x2d8] sm:$0xff]   ;;  %v7911_v48 = vrot.slane %v7874_v38, 4  ;;  %v3031_v59 = vsel %vm542_vm2, %v3029_v45, %v3030_v46  ;;  %v12835_v45 = vld [vmem:[#allocation4 + $0x790] sm:$0xff]  }
 0x1c8   : > { %11722 = vmatpush3.bf16.msra.mxu0 %v12811_v47  ;;  %11147 = vmatprep.subr.bf16.mxu1 %v12812_v49  ;;  %v12822_v47 = vld [vmem:[#allocation4 + $0x2e0] sm:$0xff]   ;;  %v8140_v38 = vld [vmem:[#allocation2 + $0x58] sm:$0xff] }
 0x1c9   : > { %11723 = vmatprep.subr.bf16.mxu0 %v12813_v56  ;;  %11149 = vmatprep.mubr.bf16.mxu1 %v3016_v63  ;;  %v12825_v63 = vld [vmem:[#allocation4 + $0x768] sm:$0xff]   ;;  %v8141_v46 = vld [vmem:[#allocation2 + $0x78] sm:$0xff] }
 0x1ca   : > { %11725 = vmatprep.mubr.bf16.mxu0 %v7898_v1  ;;  %v2997_v1 = vld [vmem:[#allocation2 + $0x270] sm:$0xf] }
 0x1cb   : > { %11148 = vmatpush3.bf16.msra.mxu1 %v12812_v49  ;;  %v7912_v49 = vrot.slane %v7875_v40, 4  ;;  %v3036_v9 = vrot.slane %v2997_v1, 4  ;;  %v3298_v40 = vrot.slane %v3262_v33, 2 }
 0x1cc   : > { %11724 = vmatpush3.bf16.msra.mxu0 %v12813_v56  ;;  %11165 = vmatprep.subr.bf16.mxu1 %v12814_v4  ;;  %v12824_v56 = vld [vmem:[#allocation4 + $0x2e8] sm:$0xff]  }
 0x1cd   : > { %11741 = vmatprep.subr.bf16.mxu0 %v12815_v7  ;;  %v7913_v62 = vsel %vm542_vm2, %v7911_v48, %v7912_v49 }
 0x1ce   : > { %11150 = vmatmul.mubr.bf16.vlgmr.msra.gmra.mrb[0].mxu1 %v3019_v17  ;;  %v3259_v17 = vld [vmem:[#allocation2 + $0x1b8] sm:$0x3] }
 0x1cf   : > { %11726 = vmatmul.mubr.bf16.vlgmr.msra.gmra.mrb[0].mxu0 %v7901_v21  ;;  %11166 = vmatpush3.bf16.msra.mxu1 %v12814_v4  ;;  %v3256_v4 = vld [vmem:[#allocation2 + $0x190] sm:$0xfc]  ;;  %v12829_v21 = vld [vmem:[#allocation4 + $0x778] sm:$0xff]  }
 0x1d0   : > { %11742 = vmatpush3.bf16.msra.mxu0 %v12815_v7  ;;  %11167 = vmatprep.subr.bf16.mxu1 %v12816_v13  ;;  %v7916_v7 = vsel %vm542_vm2, %v7914_v60, %v7915_v61  ;;  %v3289_v14 = vrot.slane %v3256_v4, 2  ;;  %v12838_v60 = vld [vmem:[#allocation4 + $0x320] sm:$0xff]   ;;  %v3271_v4 = vld [vmem:[#allocation2 + $0x278] sm:$0x3] }
 0x1d1   : > { %11743 = vmatprep.subr.bf16.mxu0 %v12817_v18  ;;  %11153 = vmatprep.mubr.bf16.mxu1 %v3022_v24  ;;  %v3293_v24 = vrot.slane %v3259_v17, 2  ;;  %v12839_v61 = vld [vmem:[#allocation4 + $0x7a0] sm:$0xff]  }
 0x1d2   : > { %11729 = vmatprep.mubr.bf16.mxu0 %v7904_v26  ;;  %v3291_v25 = vsel %vm3288_vm6, %v3289_v14, %v3290_v15  ;;  %v3260_v26 = vld [vmem:[#allocation2 + $0x1d0] sm:$0xfc]  ;;  %v8145_v14 = vld [vmem:[#allocation2 + $0xf8] sm:$0xff] }
 0x1d3   : > { %11168 = vmatpush3.bf16.msra.mxu1 %v12816_v13  ;;  %v7918_v13 = vrot.slane %v7879_v3, 4  ;;  %v3294_v34 = vsel %vm3288_vm6, %v3292_v23, %v3293_v24  ;;  %v3270_v3 = vld [vmem:[#allocation2 + $0x270] sm:$0xfc]  ;;  %v12844_v15 = vld [vmem:[#allocation4 + $0x338] sm:$0xff]   ;;  %v8356_v23 = vld [vmem:[#allocation2 + $0x300] sm:$0xff] }
 0x1d4   : > { %11744 = vmatpush3.bf16.msra.mxu0 %v12817_v18  ;;  %11169 = vmatprep.subr.bf16.mxu1 %v12818_v30  ;;  %v3037_v18 = vsel %vm542_vm2, %v3035_v8, %v3036_v9  ;;  %v3310_v8 = vrot.slane %v3270_v3, 2  ;;  %v3311_v9 = vrot.slane %v3271_v4, 2  ;;  %v8361_v3 = vld [vmem:[#allocation2 + $0x3a0] sm:$0xff]  ;;  %v12856_v4 = vld [vmem:[#allocation4 + $0x368] sm:$0xff]  }
 0x1d5   : > { %11745 = vmatprep.subr.bf16.mxu0 %v12819_v31  ;;  %v7919_v19 = vsel %vm542_vm2, %v7917_v12, %v7918_v13  ;;  %v12842_v12 = vld [vmem:[#allocation4 + $0x330] sm:$0xff]  }
 0x1d6   : > { %11154 = vmatmul.mubr.bf16.gmra.mrb[4].mxu1 %v3025_v39  ;;  %v12843_v13 = vld [vmem:[#allocation4 + $0x7b0] sm:$0xff]  }
 0x1d7   : > { %11730 = vmatmul.mubr.bf16.gmra.mrb[4].mxu0 %v7907_v41  ;;  %11170 = vmatpush3.bf16.msra.mxu1 %v12818_v30  ;;  %v8139_v30 = vld [vmem:[#allocation2 + $0x38] sm:$0xff]  ;;  %v3299_v41 = vrot.slane %v3263_v35, 2  ;;  %v3537_v35 = vld [vmem:[#allocation2 + $0x360] sm:$0xc0] }
 0x1d8   : > { %11746 = vmatpush3.bf16.msra.mxu0 %v12819_v31  ;;  %11171 = vmatprep.subr.bf16.mxu1 %v12820_v42  ;;  %v3295_v31 = vrot.slane %v3260_v26, 2  ;;  %v3535_v26 = vld [vmem:[#allocation2 + $0x340] sm:$0xc0] }
 0x1d9   : > { %11747 = vmatprep.subr.bf16.mxu0 %v12821_v43  ;;  %11157 = vmatprep.mubr.bf16.mxu1 %v3028_v44  ;;  %v12834_v44 = vld [vmem:[#allocation4 + $0x310] sm:$0xff]  }
 0x1da   : > { %11733 = vmatprep.mubr.bf16.mxu0 %v7910_v50  ;;  %v3297_v39 = vsel %vm3288_vm6, %v3295_v31, %v3296_v32  ;;  %v3300_v50 = vsel %vm3288_vm6, %v3298_v40, %v3299_v41  ;;  %v3569_v31 = vrot.slane %v3535_v26, 6  ;;  %v3570_v32 = vrot.slane %v3536_v27, 6  ;;  %v3540_v40 = vld [vmem:[#allocation2 + $0x388] sm:$0x3f]  ;;  %v8358_v41 = vld [vmem:[#allocation2 + $0x340] sm:$0xff] }
 0x1db   : > { %11172 = vmatpush3.bf16.msra.mxu1 %v12820_v42  ;;  %v3264_v42 = vld [vmem:[#allocation2 + $0x210] sm:$0xfc]  ;;  %v8576_v26 = vld [vmem:[#allocation2 + $0x328] sm:$0xf0] }
 0x1dc   : > { %11748 = vmatpush3.bf16.msra.mxu0 %v12821_v43  ;;  %11173 = vmatprep.subr.bf16.mxu1 %v12822_v47  ;;  %v3265_v43 = vld [vmem:[#allocation2 + $0x218] sm:$0x3]  ;;  %v3301_v48 = vrot.slane %v3264_v42, 2  ;;  %v3572_v42 = vrot.slane %v3537_v35, 6  ;;  %v8577_v27 = vld [vmem:[#allocation2 + $0x330] sm:$0xf] }
 0x1dd   : > { %11749 = vmatprep.subr.bf16.mxu0 %v12823_v55  ;;  %v3302_v49 = vrot.slane %v3265_v43, 2 }
 0x1de   : > { %11158 = vmatmul.mubr.bf16.gmra.mrb[8].mxu1 %v3031_v59  ;;  %v3269_v59 = vld [vmem:[#allocation2 + $0x258] sm:$0x3] }
 0x1df   : > { %11734 = vmatmul.mubr.bf16.gmra.mrb[8].mxu0 %v7913_v62  ;;  %11174 = vmatpush3.bf16.msra.mxu1 %v12822_v47  ;;  %v12836_v47 = vld [vmem:[#allocation4 + $0x318] sm:$0xff]   ;;  %v3303_v54 = vsel %vm3288_vm6, %v3301_v48, %v3302_v49  ;;  %v3308_v1 = vrot.slane %v3269_v59, 2  ;;  %v3541_v48 = vld [vmem:[#allocation2 + $0x3a0] sm:$0xc0]  ;;  %v3542_v49 = vld [vmem:[#allocation2 + $0x3a8] sm:$0x3f] }
 0x1e0   : > { %11750 = vmatpush3.bf16.msra.mxu0 %v12823_v55  ;;  %11175 = vmatprep.subr.bf16.mxu1 %v12824_v56  ;;  %v8142_v55 = vld [vmem:[#allocation2 + $0x98] sm:$0xff]  ;;  %v12855_v59 = vld [vmem:[#allocation4 + $0x7e0] sm:$0xff]  }
 0x1e1   : > { %11751 = vmatprep.subr.bf16.mxu0 %v12825_v63  ;;  %11161 = vmatprep.mubr.bf16.mxu1 %v3034_v5  ;;  %v8143_v62 = vld [vmem:[#allocation2 + $0xb8] sm:$0xff]  ;;  %v12841_v5 = vld [vmem:[#allocation4 + $0x7a8] sm:$0xff]   ;;  %v3309_v6 = vsel %vm3288_vm6, %v3307_v0, %v3308_v1 }
 0x1e2   : > { %11737 = vmatprep.mubr.bf16.mxu0 %v7916_v7  ;;  %v8144_v7 = vld [vmem:[#allocation2 + $0xd8] sm:$0xff] }
 0x1e3   : > { %11176 = vmatpush3.bf16.msra.mxu1 %v12824_v56  ;;  %v3304_v56 = vrot.slane %v3266_v51, 2  ;;  %v8359_v51 = vld [vmem:[#allocation2 + $0x360] sm:$0xff] }
 0x1e4   : > { %11752 = vmatpush3.bf16.msra.mxu0 %v12825_v63  ;;  %11177 = vmatprep.subr.bf16.mxu1 %v12826_v10  ;;  %v12840_v63 = vld [vmem:[#allocation4 + $0x328] sm:$0xff]  }
 0x1e5   : > { %11753 = vmatprep.subr.bf16.mxu0 %v12827_v11  ;;  %v3306_v2 = vsel %vm3288_vm6, %v3304_v56, %v3305_v57  ;;  %v3579_v57 = vrot.slane %v3542_v49, 6  ;;  %v3813_v49 = vld [vmem:[#allocation2 + $0x388] sm:$0xf0] }
 0x1e6   : > { %11162 = vmatmul.mubr.bf16.gmra.mrb[12].mxu1 %v3037_v18  ;;  %v3533_v18 = vld [vmem:[#allocation2 + $0x320] sm:$0xc0] }
 0x1e7   : > { %11738 = vmatmul.mubr.bf16.gmra.mrb[12].mxu0 %v7919_v19  ;;  %11178 = vmatpush3.bf16.msra.mxu1 %v12826_v10  ;;  %v3531_v10 = vld [vmem:[#allocation2 + $0x300] sm:$0xc0]  ;;  %v3312_v19 = vsel %vm3288_vm6, %v3310_v8, %v3311_v9  ;;  %v3566_v24 = vrot.slane %v3533_v18, 6  ;;  %v3805_v9 = vld [vmem:[#allocation2 + $0x308] sm:$0xf0] }
 0x1e8   : > { %11754 = vmatpush3.bf16.msra.mxu0 %v12827_v11  ;;  %11179 = vmatprep.subr.bf16.mxu1 %v12828_v20  ;;  %v3532_v11 = vld [vmem:[#allocation2 + $0x308] sm:$0x3f]  ;;  %v3563_v16 = vrot.slane %v3531_v10, 6  ;;  %v8362_v8 = vld [vmem:[#allocation2 + $0x3c0] sm:$0xff]  ;;  %v3806_v10 = vld [vmem:[#allocation2 + $0x310] sm:$0xf] }
 0x1e9   : > { %11755 = vmatprep.subr.bf16.mxu0 %v12829_v21  ;;  %11181 = vmatprep.mubr.bf16.mxu1 %v3291_v25  ;;  %v3564_v17 = vrot.slane %v3532_v11, 6  ;;  %v8363_v18 = vld [vmem:[#allocation2 + $0x3e0] sm:$0xff] }
 0x1ea   : > { %11757 = vmatprep.mubr.bf16.mxu0 %v8138_v22 }
 0x1eb   : > { %11180 = vmatpush3.bf16.msra.mxu1 %v12828_v20  ;;  %v3534_v20 = vld [vmem:[#allocation2 + $0x328] sm:$0x3f]  ;;  %v3565_v22 = vsel %vm2739_vm5, %v3563_v16, %v3564_v17  ;;  %v3837_v16 = vrot.slane %v3805_v9, 4  ;;  %v3838_v17 = vrot.slane %v3806_v10, 4  ;;  %v12868_v10 = vld [vmem:[#allocation4 + $0x398] sm:$0xff]  }
 0x1ec   : > { %11756 = vmatpush3.bf16.msra.mxu0 %v12829_v21  ;;  %11197 = vmatprep.subr.bf16.mxu1 %v12830_v28  ;;  %v12845_v21 = vld [vmem:[#allocation4 + $0x7b8] sm:$0xff]   ;;  %v3567_v25 = vrot.slane %v3534_v20, 6 }
 0x1ed   : > { %11773 = vmatprep.subr.bf16.mxu0 %v12831_v29 }
 0x1ee   : > { %11182 = vmatmul.mubr.bf16.vlgmr.msra.gmra.mrb[0].mxu1 %v3294_v34  ;;  %v3568_v33 = vsel %vm2739_vm5, %v3566_v24, %v3567_v25  ;;  %v12848_v34 = vld [vmem:[#allocation4 + $0x348] sm:$0xff]   ;;  %v12861_v25 = vld [vmem:[#allocation4 + $0x7f8] sm:$0xff]  }
 0x1ef   : > { %11758 = vmatmul.mubr.bf16.vlgmr.msra.gmra.mrb[0].mxu0 %v8139_v30  ;;  %11198 = vmatpush3.bf16.msra.mxu1 %v12830_v28  ;;  %v12846_v28 = vld [vmem:[#allocation4 + $0x340] sm:$0xff]  }
 0x1f0   : > { %11774 = vmatpush3.bf16.msra.mxu0 %v12831_v29  ;;  %11199 = vmatprep.subr.bf16.mxu1 %v12832_v36  ;;  %v12847_v29 = vld [vmem:[#allocation4 + $0x7c0] sm:$0xff]  }
 0x1f1   : > { %11775 = vmatprep.subr.bf16.mxu0 %v12833_v37  ;;  %11185 = vmatprep.mubr.bf16.mxu1 %v3297_v39  ;;  %v8357_v30 = vld [vmem:[#allocation2 + $0x320] sm:$0xff] }
 0x1f2   : > { %11761 = vmatprep.mubr.bf16.mxu0 %v8140_v38  ;;  %v3571_v38 = vsel %vm2739_vm5, %v3569_v31, %v3570_v32  ;;  %v3539_v39 = vld [vmem:[#allocation2 + $0x380] sm:$0xc0]  ;;  %v3839_v31 = vsel %vm542_vm2, %v3837_v16, %v3838_v17  ;;  %v8579_v32 = vld [vmem:[#allocation2 + $0x350] sm:$0xf] }
 0x1f3   : > { %11200 = vmatpush3.bf16.msra.mxu1 %v12832_v36  ;;  %v3538_v36 = vld [vmem:[#allocation2 + $0x368] sm:$0x3f] }
 0x1f4   : > { %11776 = vmatpush3.bf16.msra.mxu0 %v12833_v37  ;;  %11201 = vmatprep.subr.bf16.mxu1 %v12834_v44  ;;  %v12849_v37 = vld [vmem:[#allocation4 + $0x7c8] sm:$0xff]   ;;  %v3573_v43 = vrot.slane %v3538_v36, 6  ;;  %v12862_v36 = vld [vmem:[#allocation4 + $0x380] sm:$0xff]  }
 0x1f5   : > { %11777 = vmatprep.subr.bf16.mxu0 %v12835_v45 }
 0x1f6   : > { %11186 = vmatmul.mubr.bf16.gmra.mrb[4].mxu1 %v3300_v50  ;;  %v3574_v50 = vsel %vm2739_vm5, %v3572_v42, %v3573_v43  ;;  %v8613_v43 = vrot.slane %v8579_v32, 4  ;;  %v12872_v32 = vld [vmem:[#allocation4 + $0x3a8] sm:$0xff]  }
 0x1f7   : > { %11762 = vmatmul.mubr.bf16.gmra.mrb[4].mxu0 %v8141_v46  ;;  %11202 = vmatpush3.bf16.msra.mxu1 %v12834_v44  ;;  %v12850_v44 = vld [vmem:[#allocation4 + $0x350] sm:$0xff]   ;;  %v3575_v46 = vrot.slane %v3539_v39, 6  ;;  %v12863_v39 = vld [vmem:[#allocation4 + $0x800] sm:$0xff]  }
 0x1f8   : > { %11778 = vmatpush3.bf16.msra.mxu0 %v12835_v45  ;;  %11203 = vmatprep.subr.bf16.mxu1 %v12836_v47  ;;  %v12851_v45 = vld [vmem:[#allocation4 + $0x7d0] sm:$0xff]  }
 0x1f9   : > { %11779 = vmatprep.subr.bf16.mxu0 %v12837_v53  ;;  %11189 = vmatprep.mubr.bf16.mxu1 %v3303_v54  ;;  %v8360_v54 = vld [vmem:[#allocation2 + $0x380] sm:$0xff] }
 0x1fa   : > { %11765 = vmatprep.mubr.bf16.mxu0 %v8142_v55  ;;  %v3578_v55 = vrot.slane %v3541_v48, 6  ;;  %v8581_v48 = vld [vmem:[#allocation2 + $0x370] sm:$0xf] }
 0x1fb   : > { %11204 = vmatpush3.bf16.msra.mxu1 %v12836_v47  ;;  %v3576_v47 = vrot.slane %v3540_v40, 6 }
 0x1fc   : > { %11780 = vmatpush3.bf16.msra.mxu0 %v12837_v53  ;;  %11205 = vmatprep.subr.bf16.mxu1 %v12838_v60  ;;  %v12853_v53 = vld [vmem:[#allocation4 + $0x7d8] sm:$0xff]  }
 0x1fd   : > { %11781 = vmatprep.subr.bf16.mxu0 %v12839_v61  ;;  %v3577_v56 = vsel %vm2739_vm5, %v3575_v46, %v3576_v47  ;;  %v12864_v46 = vld [vmem:[#allocation4 + $0x388] sm:$0xff]  }
 0x1fe   : > { %11190 = vmatmul.mubr.bf16.gmra.mrb[8].mxu1 %v3306_v2  ;;  %v3580_v2 = vsel %vm2739_vm5, %v3578_v55, %v3579_v57  ;;  %v8580_v47 = vld [vmem:[#allocation2 + $0x368] sm:$0xf0]  ;;  %v8583_v55 = vld [vmem:[#allocation2 + $0x390] sm:$0xf] }
 0x1ff   : > { %11766 = vmatmul.mubr.bf16.gmra.mrb[8].mxu0 %v8143_v62  ;;  %11206 = vmatpush3.bf16.msra.mxu1 %v12838_v60  ;;  %v3543_v60 = vld [vmem:[#allocation2 + $0x3c0] sm:$0xc0] }
 0x200   : > { %11782 = vmatpush3.bf16.msra.mxu0 %v12839_v61  ;;  %11207 = vmatprep.subr.bf16.mxu1 %v12840_v63  ;;  %v3544_v61 = vld [vmem:[#allocation2 + $0x3c8] sm:$0x3f]  ;;  %v3545_v62 = vld [vmem:[#allocation2 + $0x3e0] sm:$0xc0]  ;;  %v3581_v0 = vrot.slane %v3543_v60, 6  ;;  %v12866_v60 = vld [vmem:[#allocation4 + $0x390] sm:$0xff]  }
 0x201   : > { %11783 = vmatprep.subr.bf16.mxu0 %v12841_v5  ;;  %11193 = vmatprep.mubr.bf16.mxu1 %v3309_v6  ;;  %v3582_v1 = vrot.slane %v3544_v61, 6  ;;  %v3584_v6 = vrot.slane %v3545_v62, 6  ;;  %v8615_v61 = vrot.slane %v8580_v47, 4  ;;  %v8616_v62 = vrot.slane %v8581_v48, 4  ;;  %v4081_v48 = vld [vmem:[#allocation2 + $0x330] sm:$0xfc] }
 0x202   : > { %11769 = vmatprep.mubr.bf16.mxu0 %v8144_v7 }
 0x203   : > { %11208 = vmatpush3.bf16.msra.mxu1 %v12840_v63  ;;  %v3546_v63 = vld [vmem:[#allocation2 + $0x3e8] sm:$0x3f]  ;;  %v3583_v11 = vsel %vm2739_vm5, %v3581_v0, %v3582_v1  ;;  %v3849_v0 = vrot.slane %v3813_v49, 4  ;;  %v8617_v9 = vsel %vm542_vm2, %v8615_v61, %v8616_v62  ;;  %v4082_v49 = vld [vmem:[#allocation2 + $0x338] sm:$0x3]  ;;  %v12879_v61 = vld [vmem:[#allocation4 + $0x840] sm:$0xff]  }
 0x204   : > { %11784 = vmatpush3.bf16.msra.mxu0 %v12841_v5  ;;  %11209 = vmatprep.subr.bf16.mxu1 %v12842_v12  ;;  %v12857_v5 = vld [vmem:[#allocation4 + $0x7e8] sm:$0xff]   ;;  %v3585_v7 = vrot.slane %v3546_v63, 6  ;;  %v12867_v63 = vld [vmem:[#allocation4 + $0x810] sm:$0xff]   ;;  %v8849_v62 = vld [vmem:[#allocation2 + $0x338] sm:$0xff] }
 0x205   : > { %11785 = vmatprep.subr.bf16.mxu0 %v12843_v13 }
 0x206   : > { %11194 = vmatmul.mubr.bf16.gmra.mrb[12].mxu1 %v3312_v19  ;;  %v12860_v19 = vld [vmem:[#allocation4 + $0x378] sm:$0xff]   ;;  %v3586_v24 = vsel %vm2739_vm5, %v3584_v6, %v3585_v7  ;;  %v8584_v6 = vld [vmem:[#allocation2 + $0x3a8] sm:$0xf0] }
 0x207   : > { %11770 = vmatmul.mubr.bf16.gmra.mrb[12].mxu0 %v8145_v14  ;;  %11210 = vmatpush3.bf16.msra.mxu1 %v12842_v12  ;;  %v8574_v12 = vld [vmem:[#allocation2 + $0x308] sm:$0xf0]  ;;  %v12858_v14 = vld [vmem:[#allocation4 + $0x370] sm:$0xff]   ;;  %v8621_v16 = vrot.slane %v8584_v6, 4  ;;  %v8850_v6 = vld [vmem:[#allocation2 + $0x358] sm:$0xff] }
 0x208   : > { %11786 = vmatpush3.bf16.msra.mxu0 %v12843_v13  ;;  %11211 = vmatprep.subr.bf16.mxu1 %v12844_v15  ;;  %v8575_v13 = vld [vmem:[#allocation2 + $0x310] sm:$0xf]  ;;  %v8606_v20 = vrot.slane %v8574_v12, 4 }
 0x209   : > { %11787 = vmatprep.subr.bf16.mxu0 %v12845_v21  ;;  %11213 = vmatprep.mubr.bf16.mxu1 %v3565_v22  ;;  %v3807_v22 = vld [vmem:[#allocation2 + $0x328] sm:$0xf0] }
 0x20a   : > { %11789 = vmatprep.mubr.bf16.mxu0 %v8356_v23  ;;  %v3808_v23 = vld [vmem:[#allocation2 + $0x330] sm:$0xf] }
 0x20b   : > { %11212 = vmatpush3.bf16.msra.mxu1 %v12844_v15  ;;  %v12859_v15 = vld [vmem:[#allocation4 + $0x7f0] sm:$0xff]   ;;  %v3841_v35 = vrot.slane %v3808_v23, 4  ;;  %v12871_v23 = vld [vmem:[#allocation4 + $0x820] sm:$0xff]  }
 0x20c   : > { %11788 = vmatpush3.bf16.msra.mxu0 %v12845_v21  ;;  %11229 = vmatprep.subr.bf16.mxu1 %v12846_v28  ;;  %v8607_v21 = vrot.slane %v8575_v13, 4 }
 0x20d   : > { %11805 = vmatprep.subr.bf16.mxu0 %v12847_v29 }
 0x20e   : > { %11214 = vmatmul.mubr.bf16.vlgmr.msra.gmra.mrb[0].mxu1 %v3568_v33  ;;  %v8608_v33 = vsel %vm542_vm2, %v8606_v20, %v8607_v21  ;;  %v3818_v20 = vld [vmem:[#allocation2 + $0x3d0] sm:$0xf]  ;;  %v8586_v21 = vld [vmem:[#allocation2 + $0x3c8] sm:$0xf0] }
 0x20f   : > { %11790 = vmatmul.mubr.bf16.vlgmr.msra.gmra.mrb[0].mxu0 %v8357_v30  ;;  %11230 = vmatpush3.bf16.msra.mxu1 %v12846_v28  ;;  %v3809_v28 = vld [vmem:[#allocation2 + $0x348] sm:$0xf0] }
 0x210   : > { %11806 = vmatpush3.bf16.msra.mxu0 %v12847_v29  ;;  %11231 = vmatprep.subr.bf16.mxu1 %v12848_v34  ;;  %v3810_v29 = vld [vmem:[#allocation2 + $0x350] sm:$0xf]  ;;  %v8578_v30 = vld [vmem:[#allocation2 + $0x348] sm:$0xf0]  ;;  %v3843_v40 = vrot.slane %v3809_v28, 4 }
 0x211   : > { %11807 = vmatprep.subr.bf16.mxu0 %v12849_v37  ;;  %11217 = vmatprep.mubr.bf16.mxu1 %v3571_v38  ;;  %v8610_v38 = vrot.slane %v8577_v27, 4  ;;  %v8612_v42 = vrot.slane %v8578_v30, 4  ;;  %v8624_v27 = vrot.slane %v8586_v21, 4  ;;  %v3820_v30 = vld [vmem:[#allocation2 + $0x3f0] sm:$0xf] }
 0x212   : > { %11793 = vmatprep.mubr.bf16.mxu0 %v8358_v41  ;;  %v3844_v41 = vrot.slane %v3810_v29, 4  ;;  %v3819_v29 = vld [vmem:[#allocation2 + $0x3e8] sm:$0xf0]  ;;  %v4090_v21 = vld [vmem:[#allocation2 + $0x3b8] sm:$0x3] }
 0x213   : > { %11232 = vmatpush3.bf16.msra.mxu1 %v12848_v34  ;;  %v3840_v34 = vrot.slane %v3807_v22, 4  ;;  %v8614_v57 = vsel %vm542_vm2, %v8612_v42, %v8613_v43  ;;  %v8587_v22 = vld [vmem:[#allocation2 + $0x3d0] sm:$0xf]  ;;  %v4080_v42 = vld [vmem:[#allocation2 + $0x318] sm:$0x3] }
 0x214   : > { %11808 = vmatpush3.bf16.msra.mxu0 %v12849_v37  ;;  %11233 = vmatprep.subr.bf16.mxu1 %v12850_v44  ;;  %v8609_v37 = vrot.slane %v8576_v26, 4  ;;  %v8625_v28 = vrot.slane %v8587_v22, 4  ;;  %v4112_v47 = vrot.slane %v4080_v42, 2  ;;  %v8852_v22 = vld [vmem:[#allocation2 + $0x398] sm:$0xff]  ;;  %v4354_v42 = vld [vmem:[#allocation2 + $0x480] sm:$0xc0] }
 0x215   : > { %11809 = vmatprep.subr.bf16.mxu0 %v12851_v45 }
 0x216   : > { %11218 = vmatmul.mubr.bf16.gmra.mrb[4].mxu1 %v3574_v50  ;;  %v3842_v50 = vsel %vm542_vm2, %v3840_v34, %v3841_v35  ;;  %v8588_v34 = vld [vmem:[#allocation2 + $0x3e8] sm:$0xf0]  ;;  %v8589_v35 = vld [vmem:[#allocation2 + $0x3f0] sm:$0xf] }
 0x217   : > { %11794 = vmatmul.mubr.bf16.gmra.mrb[4].mxu0 %v8359_v51  ;;  %11234 = vmatpush3.bf16.msra.mxu1 %v12850_v44  ;;  %v3811_v44 = vld [vmem:[#allocation2 + $0x368] sm:$0xf0]  ;;  %v8627_v43 = vrot.slane %v8588_v34, 4 }
 0x218   : > { %11810 = vmatpush3.bf16.msra.mxu0 %v12851_v45  ;;  %11235 = vmatprep.subr.bf16.mxu1 %v12852_v52  ;;  %v3812_v45 = vld [vmem:[#allocation2 + $0x370] sm:$0xf]  ;;  %v12865_v51 = vld [vmem:[#allocation4 + $0x808] sm:$0xff]  }
 0x219   : > { %11811 = vmatprep.subr.bf16.mxu0 %v12853_v53  ;;  %11221 = vmatprep.mubr.bf16.mxu1 %v3577_v56  ;;  %v3845_v56 = vsel %vm542_vm2, %v3843_v40, %v3844_v41  ;;  %v4079_v40 = vld [vmem:[#allocation2 + $0x310] sm:$0xfc]  ;;  %v8626_v41 = vsel %vm542_vm2, %v8624_v27, %v8625_v28  ;;  %v4092_v27 = vld [vmem:[#allocation2 + $0x3d8] sm:$0x3]  ;;  %v12886_v28 = vld [vmem:[#allocation4 + $0x3e0] sm:$0xff]  }
 0x21a   : > { %11797 = vmatprep.mubr.bf16.mxu0 %v8360_v54  ;;  %v8582_v54 = vld [vmem:[#allocation2 + $0x388] sm:$0xf0] }
 0x21b   : > { %11236 = vmatpush3.bf16.msra.mxu1 %v12852_v52  ;;  %v3814_v52 = vld [vmem:[#allocation2 + $0x390] sm:$0xf]  ;;  %v12888_v34 = vld [vmem:[#allocation4 + $0x3e8] sm:$0xff]  }
 0x21c   : > { %11812 = vmatpush3.bf16.msra.mxu0 %v12853_v53  ;;  %11237 = vmatprep.subr.bf16.mxu1 %v12854_v58  ;;  %v8611_v53 = vsel %vm542_vm2, %v8609_v37, %v8610_v38  ;;  %v3850_v1 = vrot.slane %v3814_v52, 4  ;;  %v3858_v37 = vrot.slane %v3819_v29, 4  ;;  %v3859_v38 = vrot.slane %v3820_v30, 4  ;;  %v12876_v52 = vld [vmem:[#allocation4 + $0x3b8] sm:$0xff]   ;;  %v12887_v29 = vld [vmem:[#allocation4 + $0x860] sm:$0xff]  }
 0x21d   : > { %11813 = vmatprep.subr.bf16.mxu0 %v12855_v59  ;;  %v8853_v30 = vld [vmem:[#allocation2 + $0x3b8] sm:$0xff] }
 0x21e   : > { %11222 = vmatmul.mubr.bf16.gmra.mrb[8].mxu1 %v3580_v2  ;;  %v8618_v2 = vrot.slane %v8582_v54, 4  ;;  %v8848_v54 = vld [vmem:[#allocation2 + $0x318] sm:$0xff] }
 0x21f   : > { %11798 = vmatmul.mubr.bf16.gmra.mrb[8].mxu0 %v8361_v3  ;;  %11238 = vmatpush3.bf16.msra.mxu1 %v12854_v58  ;;  %v3846_v58 = vrot.slane %v3811_v44, 4  ;;  %v8619_v3 = vrot.slane %v8583_v55, 4  ;;  %v8628_v44 = vrot.slane %v8589_v35, 4  ;;  %v4114_v55 = vrot.slane %v4081_v48, 2  ;;  %v4093_v35 = vld [vmem:[#allocation2 + $0x3f0] sm:$0xfc] }
 0x220   : > { %11814 = vmatpush3.bf16.msra.mxu0 %v12855_v59  ;;  %11239 = vmatprep.subr.bf16.mxu1 %v12856_v4  ;;  %v3847_v59 = vrot.slane %v3812_v45, 4  ;;  %v12875_v45 = vld [vmem:[#allocation4 + $0x830] sm:$0xff]   ;;  %v4386_v48 = vrot.slane %v4354_v42, 6  ;;  %v4628_v42 = vld [vmem:[#allocation2 + $0x488] sm:$0xf0] }
 0x221   : > { %11815 = vmatprep.subr.bf16.mxu0 %v12857_v5  ;;  %11225 = vmatprep.mubr.bf16.mxu1 %v3583_v11  ;;  %v12869_v11 = vld [vmem:[#allocation4 + $0x818] sm:$0xff]  }
 0x222   : > { %11801 = vmatprep.mubr.bf16.mxu0 %v8362_v8  ;;  %v3848_v7 = vsel %vm542_vm2, %v3846_v58, %v3847_v59  ;;  %v8585_v8 = vld [vmem:[#allocation2 + $0x3b0] sm:$0xf]  ;;  %v4084_v59 = vld [vmem:[#allocation2 + $0x358] sm:$0x3] }
 0x223   : > { %11240 = vmatpush3.bf16.msra.mxu1 %v12856_v4  ;;  %v3815_v4 = vld [vmem:[#allocation2 + $0x3a8] sm:$0xf0]  ;;  %v8622_v17 = vrot.slane %v8585_v8, 4  ;;  %v4083_v58 = vld [vmem:[#allocation2 + $0x350] sm:$0xfc] }
 0x224   : > { %11816 = vmatpush3.bf16.msra.mxu0 %v12857_v5  ;;  %11241 = vmatprep.subr.bf16.mxu1 %v12858_v14  ;;  %v3816_v5 = vld [vmem:[#allocation2 + $0x3b0] sm:$0xf]  ;;  %v3852_v12 = vrot.slane %v3815_v4, 4  ;;  %v12880_v4 = vld [vmem:[#allocation4 + $0x3c8] sm:$0xff]  }
 0x225   : > { %11817 = vmatprep.subr.bf16.mxu0 %v12859_v15  ;;  %v3853_v13 = vrot.slane %v3816_v5, 4  ;;  %v12881_v5 = vld [vmem:[#allocation4 + $0x848] sm:$0xff]  }
 0x226   : > { %11226 = vmatmul.mubr.bf16.gmra.mrb[12].mxu1 %v3586_v24 }
 0x227   : > { %11802 = vmatmul.mubr.bf16.gmra.mrb[12].mxu0 %v8363_v18  ;;  %11242 = vmatpush3.bf16.msra.mxu1 %v12858_v14  ;;  %v3851_v14 = vsel %vm542_vm2, %v3849_v0, %v3850_v1  ;;  %v3817_v18 = vld [vmem:[#allocation2 + $0x3c8] sm:$0xf0]  ;;  %v3854_v26 = vsel %vm542_vm2, %v3852_v12, %v3853_v13  ;;  %v4118_v0 = vrot.slane %v4084_v59, 2  ;;  %v4085_v1 = vld [vmem:[#allocation2 + $0x370] sm:$0xfc] }
 0x228   : > { %11818 = vmatpush3.bf16.msra.mxu0 %v12859_v15  ;;  %11243 = vmatprep.subr.bf16.mxu1 %v12860_v19  ;;  %v12870_v15 = vld [vmem:[#allocation4 + $0x3a0] sm:$0xff]   ;;  %v3855_v24 = vrot.slane %v3817_v18, 4  ;;  %v4120_v8 = vrot.slane %v4085_v1, 2  ;;  %v12882_v12 = vld [vmem:[#allocation4 + $0x3d0] sm:$0xff]   ;;  %v12884_v18 = vld [vmem:[#allocation4 + $0x3d8] sm:$0xff]  }
 0x229   : > { %11819 = vmatprep.subr.bf16.mxu0 %v12861_v25  ;;  %11245 = vmatprep.mubr.bf16.mxu1 %v3839_v31  ;;  %v8623_v31 = vsel %vm542_vm2, %v8621_v16, %v8622_v17  ;;  %v12883_v13 = vld [vmem:[#allocation4 + $0x850] sm:$0xff]   ;;  %v4359_v59 = vld [vmem:[#allocation2 + $0x4c8] sm:$0x3f]  ;;  %v9068_v1 = vld [vmem:[#allocation2 + $0x620] sm:$0xff] }
 0x22a   : > { %11821 = vmatprep.mubr.bf16.mxu0 %v8608_v33  ;;  %v12873_v33 = vld [vmem:[#allocation4 + $0x828] sm:$0xff]  }
 0x22b   : > { %11244 = vmatpush3.bf16.msra.mxu1 %v12860_v19  ;;  %v8620_v19 = vsel %vm542_vm2, %v8618_v2, %v8619_v3  ;;  %v4086_v3 = vld [vmem:[#allocation2 + $0x378] sm:$0x3] }
 0x22c   : > { %11820 = vmatpush3.bf16.msra.mxu0 %v12861_v25  ;;  %11261 = vmatprep.subr.bf16.mxu1 %v12862_v36  ;;  %v3856_v25 = vrot.slane %v3818_v20, 4  ;;  %v4089_v20 = vld [vmem:[#allocation2 + $0x3b0] sm:$0xfc] }
 0x22d   : > { %11837 = vmatprep.subr.bf16.mxu0 %v12863_v39 }
 0x22e   : > { %11246 = vmatmul.mubr.bf16.vlgmr.msra.gmra.mrb[0].mxu1 %v3842_v50  ;;  %v3860_v50 = vsel %vm542_vm2, %v3858_v37, %v3859_v38  ;;  %v12889_v37 = vld [vmem:[#allocation4 + $0x868] sm:$0xff]  }
 0x22f   : > { %11822 = vmatmul.mubr.bf16.vlgmr.msra.gmra.mrb[0].mxu0 %v8611_v53  ;;  %11262 = vmatpush3.bf16.msra.mxu1 %v12862_v36  ;;  %v3857_v36 = vsel %vm542_vm2, %v3855_v24, %v3856_v25  ;;  %v12877_v53 = vld [vmem:[#allocation4 + $0x838] sm:$0xff]   ;;  %v4126_v24 = vrot.slane %v4089_v20, 2  ;;  %v4127_v25 = vrot.slane %v4090_v21, 2  ;;  %v4365_v20 = vld [vmem:[#allocation2 + $0x528] sm:$0x3f] }
 0x230   : > { %11838 = vmatpush3.bf16.msra.mxu0 %v12863_v39  ;;  %11263 = vmatprep.subr.bf16.mxu1 %v12864_v46  ;;  %v12874_v39 = vld [vmem:[#allocation4 + $0x3b0] sm:$0xff]   ;;  %v12901_v21 = vld [vmem:[#allocation4 + $0x898] sm:$0xff]  }
 0x231   : > { %11839 = vmatprep.subr.bf16.mxu0 %v12865_v51  ;;  %11249 = vmatprep.mubr.bf16.mxu1 %v3845_v56  ;;  %v4115_v56 = vrot.slane %v4082_v49, 2 }
 0x232   : > { %11825 = vmatprep.mubr.bf16.mxu0 %v8614_v57 }
 0x233   : > { %11264 = vmatpush3.bf16.msra.mxu1 %v12864_v46  ;;  %v4111_v46 = vrot.slane %v4079_v40, 2  ;;  %v4116_v2 = vsel %vm3288_vm6, %v4114_v55, %v4115_v56  ;;  %v4132_v40 = vrot.slane %v4093_v35, 2  ;;  %v9067_v55 = vld [vmem:[#allocation2 + $0x600] sm:$0xff] }
 0x234   : > { %11840 = vmatpush3.bf16.msra.mxu0 %v12865_v51  ;;  %11265 = vmatprep.subr.bf16.mxu1 %v12866_v60  ;;  %v8629_v51 = vsel %vm542_vm2, %v8627_v43, %v8628_v44  ;;  %v4355_v43 = vld [vmem:[#allocation2 + $0x488] sm:$0x3f]  ;;  %v12890_v44 = vld [vmem:[#allocation4 + $0x3f0] sm:$0xff]   ;;  %v4368_v35 = vld [vmem:[#allocation2 + $0x560] sm:$0xc0] }
 0x235   : > { %11841 = vmatprep.subr.bf16.mxu0 %v12867_v63  ;;  %v4113_v57 = vsel %vm3288_vm6, %v4111_v46, %v4112_v47  ;;  %v8855_v46 = vld [vmem:[#allocation2 + $0x3f8] sm:$0xff]  ;;  %v4387_v49 = vrot.slane %v4355_v43, 6  ;;  %v4629_v43 = vld [vmem:[#allocation2 + $0x490] sm:$0xf] }
 0x236   : > { %11250 = vmatmul.mubr.bf16.gmra.mrb[4].mxu1 %v3848_v7  ;;  %v12892_v47 = vld [vmem:[#allocation4 + $0x3f8] sm:$0xff]  }
 0x237   : > { %11826 = vmatmul.mubr.bf16.gmra.mrb[4].mxu0 %v8617_v9  ;;  %11266 = vmatpush3.bf16.msra.mxu1 %v12866_v60  ;;  %v12878_v60 = vld [vmem:[#allocation4 + $0x3c0] sm:$0xff]   ;;  %v4121_v9 = vrot.slane %v4086_v3, 2 }
 0x238   : > { %11842 = vmatpush3.bf16.msra.mxu0 %v12867_v63  ;;  %11267 = vmatprep.subr.bf16.mxu1 %v12868_v10  ;;  %v4117_v63 = vrot.slane %v4083_v58, 2  ;;  %v4358_v58 = vld [vmem:[#allocation2 + $0x4c0] sm:$0xc0] }
 0x239   : > { %11843 = vmatprep.subr.bf16.mxu0 %v12869_v11  ;;  %11253 = vmatprep.mubr.bf16.mxu1 %v3851_v14  ;;  %v8851_v14 = vld [vmem:[#allocation2 + $0x378] sm:$0xff]  ;;  %v4122_v17 = vsel %vm3288_vm6, %v4120_v8, %v4121_v9  ;;  %v4360_v3 = vld [vmem:[#allocation2 + $0x4e0] sm:$0xc0] }
 0x23a   : > { %11829 = vmatprep.mubr.bf16.mxu0 %v8620_v19  ;;  %v4119_v7 = vsel %vm3288_vm6, %v4117_v63, %v4118_v0  ;;  %v12885_v19 = vld [vmem:[#allocation4 + $0x858] sm:$0xff]   ;;  %v4393_v63 = vrot.slane %v4359_v59, 6  ;;  %v4395_v8 = vrot.slane %v4360_v3, 6  ;;  %v9288_v59 = vld [vmem:[#allocation2 + $0x630] sm:$0xf] }
 0x23b   : > { %11268 = vmatpush3.bf16.msra.mxu1 %v12868_v10  ;;  %v4087_v10 = vld [vmem:[#allocation2 + $0x390] sm:$0xfc] }
 0x23c   : > { %11844 = vmatpush3.bf16.msra.mxu0 %v12869_v11  ;;  %11269 = vmatprep.subr.bf16.mxu1 %v12870_v15  ;;  %v4088_v11 = vld [vmem:[#allocation2 + $0x398] sm:$0x3] }
 0x23d   : > { %11845 = vmatprep.subr.bf16.mxu0 %v12871_v23  ;;  %v4124_v16 = vrot.slane %v4088_v11, 2  ;;  %v4363_v11 = vld [vmem:[#allocation2 + $0x508] sm:$0x3f] }
 0x23e   : > { %11254 = vmatmul.mubr.bf16.gmra.mrb[8].mxu1 %v3854_v26  ;;  %v4091_v26 = vld [vmem:[#allocation2 + $0x3d0] sm:$0xfc] }
 0x23f   : > { %11830 = vmatmul.mubr.bf16.gmra.mrb[8].mxu0 %v8623_v31  ;;  %11270 = vmatpush3.bf16.msra.mxu1 %v12870_v15  ;;  %v4123_v15 = vrot.slane %v4087_v10, 2  ;;  %v4129_v31 = vrot.slane %v4091_v26, 2  ;;  %v4362_v10 = vld [vmem:[#allocation2 + $0x500] sm:$0xc0] }
 0x240   : > { %11846 = vmatpush3.bf16.msra.mxu0 %v12871_v23  ;;  %11271 = vmatprep.subr.bf16.mxu1 %v12872_v32  ;;  %v4366_v26 = vld [vmem:[#allocation2 + $0x540] sm:$0xc0] }
 0x241   : > { %11847 = vmatprep.subr.bf16.mxu0 %v12873_v33  ;;  %11257 = vmatprep.mubr.bf16.mxu1 %v3857_v36  ;;  %v4125_v23 = vsel %vm3288_vm6, %v4123_v15, %v4124_v16  ;;  %v4094_v36 = vld [vmem:[#allocation2 + $0x3f8] sm:$0x3]  ;;  %v4399_v15 = vrot.slane %v4363_v11, 6 }
 0x242   : > { %11833 = vmatprep.mubr.bf16.mxu0 %v8626_v41  ;;  %v4133_v41 = vrot.slane %v4094_v36, 2  ;;  %v4369_v36 = vld [vmem:[#allocation2 + $0x568] sm:$0x3f] }
 0x243   : > { %11272 = vmatpush3.bf16.msra.mxu1 %v12872_v32  ;;  %v4130_v32 = vrot.slane %v4092_v27, 2  ;;  %v4367_v27 = vld [vmem:[#allocation2 + $0x548] sm:$0x3f] }
 0x244   : > { %11848 = vmatpush3.bf16.msra.mxu0 %v12873_v33  ;;  %11273 = vmatprep.subr.bf16.mxu1 %v12874_v39  ;;  %v4128_v33 = vsel %vm3288_vm6, %v4126_v24, %v4127_v25  ;;  %v4402_v25 = vrot.slane %v4365_v20, 6 }
 0x245   : > { %11849 = vmatprep.subr.bf16.mxu0 %v12875_v45  ;;  %v4131_v38 = vsel %vm3288_vm6, %v4129_v31, %v4130_v32  ;;  %v4405_v31 = vrot.slane %v4367_v27, 6 }
 0x246   : > { %11258 = vmatmul.mubr.bf16.gmra.mrb[12].mxu1 %v3860_v50  ;;  %v4134_v50 = vsel %vm3288_vm6, %v4132_v40, %v4133_v41  ;;  %v4407_v40 = vrot.slane %v4368_v35, 6  ;;  %v4408_v41 = vrot.slane %v4369_v36, 6 }
 0x247   : > { %11834 = vmatmul.mubr.bf16.gmra.mrb[12].mxu0 %v8629_v51  ;;  %11274 = vmatpush3.bf16.msra.mxu1 %v12874_v39  ;;  %v8854_v39 = vld [vmem:[#allocation2 + $0x3d8] sm:$0xff] }
 0x248   : > { %11850 = vmatpush3.bf16.msra.mxu0 %v12875_v45  ;;  %11275 = vmatprep.subr.bf16.mxu1 %v12876_v52  ;;  %v12891_v45 = vld [vmem:[#allocation4 + $0x870] sm:$0xff]   ;;  %v12893_v51 = vld [vmem:[#allocation4 + $0x878] sm:$0xff]  }
 0x249   : > { %11851 = vmatprep.subr.bf16.mxu0 %v12877_v53  ;;  %11277 = vmatprep.mubr.bf16.mxu1 %v4113_v57 }
 0x24a   : > { %11853 = vmatprep.mubr.bf16.mxu0 %v8848_v54  ;;  %v4388_v54 = vsel %vm2739_vm5, %v4386_v48, %v4387_v49  ;;  %v4660_v48 = vrot.slane %v4628_v42, 4  ;;  %v4661_v49 = vrot.slane %v4629_v43, 4  ;;  %v9295_v42 = vld [vmem:[#allocation2 + $0x6a8] sm:$0xf0]  ;;  %v9296_v43 = vld [vmem:[#allocation2 + $0x6b0] sm:$0xf] }
 0x24b   : > { %11276 = vmatpush3.bf16.msra.mxu1 %v12876_v52  ;;  %v4356_v52 = vld [vmem:[#allocation2 + $0x4a0] sm:$0xc0] }
 0x24c   : > { %11852 = vmatpush3.bf16.msra.mxu0 %v12877_v53  ;;  %11293 = vmatprep.subr.bf16.mxu1 %v12878_v60  ;;  %v4357_v53 = vld [vmem:[#allocation2 + $0x4a8] sm:$0x3f]  ;;  %v4389_v56 = vrot.slane %v4356_v52, 6 }
 0x24d   : > { %11869 = vmatprep.subr.bf16.mxu0 %v12879_v61  ;;  %v4390_v57 = vrot.slane %v4357_v53, 6 }
 0x24e   : > { %11278 = vmatmul.mubr.bf16.vlgmr.msra.gmra.mrb[0].mxu1 %v4116_v2  ;;  %v12896_v2 = vld [vmem:[#allocation4 + $0x408] sm:$0xff]  }
 0x24f   : > { %11854 = vmatmul.mubr.bf16.vlgmr.msra.gmra.mrb[0].mxu0 %v8849_v62  ;;  %11294 = vmatpush3.bf16.msra.mxu1 %v12878_v60  ;;  %v12894_v60 = vld [vmem:[#allocation4 + $0x400] sm:$0xff]   ;;  %v4392_v62 = vrot.slane %v4358_v58, 6  ;;  %v4391_v0 = vsel %vm2739_vm5, %v4389_v56, %v4390_v57  ;;  %v4631_v56 = vld [vmem:[#allocation2 + $0x4b0] sm:$0xf]  ;;  %v12909_v57 = vld [vmem:[#allocation4 + $0x8b8] sm:$0xff]  }
 0x250   : > { %11870 = vmatpush3.bf16.msra.mxu0 %v12879_v61  ;;  %11295 = vmatprep.subr.bf16.mxu1 %v12880_v4  ;;  %v12895_v61 = vld [vmem:[#allocation4 + $0x880] sm:$0xff]   ;;  %v9287_v58 = vld [vmem:[#allocation2 + $0x628] sm:$0xf0] }
 0x251   : > { %11871 = vmatprep.subr.bf16.mxu0 %v12881_v5  ;;  %11281 = vmatprep.mubr.bf16.mxu1 %v4119_v7  ;;  %v9069_v7 = vld [vmem:[#allocation2 + $0x640] sm:$0xff]  ;;  %v9320_v3 = vrot.slane %v9287_v58, 4 }
 0x252   : > { %11857 = vmatprep.mubr.bf16.mxu0 %v8850_v6  ;;  %v4394_v6 = vsel %vm2739_vm5, %v4392_v62, %v4393_v63 }
 0x253   : > { %11296 = vmatpush3.bf16.msra.mxu1 %v12880_v4  ;;  %v4361_v4 = vld [vmem:[#allocation2 + $0x4e8] sm:$0x3f] }
 0x254   : > { %11872 = vmatpush3.bf16.msra.mxu0 %v12881_v5  ;;  %11297 = vmatprep.subr.bf16.mxu1 %v12882_v12  ;;  %v12897_v5 = vld [vmem:[#allocation4 + $0x888] sm:$0xff]   ;;  %v4396_v9 = vrot.slane %v4361_v4, 6  ;;  %v9321_v4 = vrot.slane %v9288_v59, 4 }
 0x255   : > { %11873 = vmatprep.subr.bf16.mxu0 %v12883_v13 }
 0x256   : > { %11282 = vmatmul.mubr.bf16.gmra.mrb[4].mxu1 %v4122_v17  ;;  %v4397_v16 = vsel %vm2739_vm5, %v4395_v8, %v4396_v9  ;;  %v9070_v17 = vld [vmem:[#allocation2 + $0x660] sm:$0xff] }
 0x257   : > { %11858 = vmatmul.mubr.bf16.gmra.mrb[4].mxu0 %v8851_v14  ;;  %11298 = vmatpush3.bf16.msra.mxu1 %v12882_v12  ;;  %v12898_v12 = vld [vmem:[#allocation4 + $0x410] sm:$0xff]   ;;  %v4398_v14 = vrot.slane %v4362_v10, 6 }
 0x258   : > { %11874 = vmatpush3.bf16.msra.mxu0 %v12883_v13  ;;  %11299 = vmatprep.subr.bf16.mxu1 %v12884_v18  ;;  %v12899_v13 = vld [vmem:[#allocation4 + $0x890] sm:$0xff]  }
 0x259   : > { %11875 = vmatprep.subr.bf16.mxu0 %v12885_v19  ;;  %11285 = vmatprep.mubr.bf16.mxu1 %v4125_v23  ;;  %v9071_v23 = vld [vmem:[#allocation2 + $0x680] sm:$0xff] }
 0x25a   : > { %11861 = vmatprep.mubr.bf16.mxu0 %v8852_v22  ;;  %v4400_v22 = vsel %vm2739_vm5, %v4398_v14, %v4399_v15  ;;  %v12912_v14 = vld [vmem:[#allocation4 + $0x448] sm:$0xff]  }
 0x25b   : > { %11300 = vmatpush3.bf16.msra.mxu1 %v12884_v18  ;;  %v12900_v18 = vld [vmem:[#allocation4 + $0x418] sm:$0xff]   ;;  %v4634_v15 = vld [vmem:[#allocation2 + $0x4e8] sm:$0xf0] }
 0x25c   : > { %11876 = vmatpush3.bf16.msra.mxu0 %v12885_v19  ;;  %11301 = vmatprep.subr.bf16.mxu1 %v12886_v28  ;;  %v4364_v19 = vld [vmem:[#allocation2 + $0x520] sm:$0xc0] }
 0x25d   : > { %11877 = vmatprep.subr.bf16.mxu0 %v12887_v29  ;;  %v4401_v24 = vrot.slane %v4364_v19, 6  ;;  %v9292_v19 = vld [vmem:[#allocation2 + $0x670] sm:$0xf] }
 0x25e   : > { %11286 = vmatmul.mubr.bf16.gmra.mrb[8].mxu1 %v4128_v33  ;;  %v9072_v33 = vld [vmem:[#allocation2 + $0x6a0] sm:$0xff] }
 0x25f   : > { %11862 = vmatmul.mubr.bf16.gmra.mrb[8].mxu0 %v8853_v30  ;;  %11302 = vmatpush3.bf16.msra.mxu1 %v12886_v28  ;;  %v12902_v28 = vld [vmem:[#allocation4 + $0x420] sm:$0xff]   ;;  %v4404_v30 = vrot.slane %v4366_v26, 6  ;;  %v4403_v32 = vsel %vm2739_vm5, %v4401_v24, %v4402_v25  ;;  %v4636_v25 = vld [vmem:[#allocation2 + $0x508] sm:$0xf0]  ;;  %v4637_v26 = vld [vmem:[#allocation2 + $0x510] sm:$0xf] }
 0x260   : > { %11878 = vmatpush3.bf16.msra.mxu0 %v12887_v29  ;;  %11303 = vmatprep.subr.bf16.mxu1 %v12888_v34  ;;  %v12903_v29 = vld [vmem:[#allocation4 + $0x8a0] sm:$0xff]  }
 0x261   : > { %11879 = vmatprep.subr.bf16.mxu0 %v12889_v37  ;;  %11289 = vmatprep.mubr.bf16.mxu1 %v4131_v38  ;;  %v4406_v38 = vsel %vm2739_vm5, %v4404_v30, %v4405_v31  ;;  %v9294_v30 = vld [vmem:[#allocation2 + $0x690] sm:$0xf] }
 0x262   : > { %11865 = vmatprep.mubr.bf16.mxu0 %v8854_v39  ;;  %v9073_v39 = vld [vmem:[#allocation2 + $0x6c0] sm:$0xff]  ;;  %v12915_v31 = vld [vmem:[#allocation4 + $0x8d0] sm:$0xff]   ;;  %v9330_v36 = vrot.slane %v9294_v30, 4 }
 0x263   : > { %11304 = vmatpush3.bf16.msra.mxu1 %v12888_v34  ;;  %v12904_v34 = vld [vmem:[#allocation4 + $0x428] sm:$0xff]  }
 0x264   : > { %11880 = vmatpush3.bf16.msra.mxu0 %v12889_v37  ;;  %11305 = vmatprep.subr.bf16.mxu1 %v12890_v44  ;;  %v12905_v37 = vld [vmem:[#allocation4 + $0x8a8] sm:$0xff]  }
 0x265   : > { %11881 = vmatprep.subr.bf16.mxu0 %v12891_v45 }
 0x266   : > { %11290 = vmatmul.mubr.bf16.gmra.mrb[12].mxu1 %v4134_v50  ;;  %v4409_v50 = vsel %vm2739_vm5, %v4407_v40, %v4408_v41  ;;  %v4639_v40 = vld [vmem:[#allocation2 + $0x530] sm:$0xf]  ;;  %v12917_v41 = vld [vmem:[#allocation4 + $0x8d8] sm:$0xff]  }
 0x267   : > { %11866 = vmatmul.mubr.bf16.gmra.mrb[12].mxu0 %v8855_v46  ;;  %11306 = vmatpush3.bf16.msra.mxu1 %v12890_v44  ;;  %v12906_v44 = vld [vmem:[#allocation4 + $0x430] sm:$0xff]  }
 0x268   : > { %11882 = vmatpush3.bf16.msra.mxu0 %v12891_v45  ;;  %11307 = vmatprep.subr.bf16.mxu1 %v12892_v47  ;;  %v9285_v45 = vld [vmem:[#allocation2 + $0x608] sm:$0xf0]  ;;  %v9286_v46 = vld [vmem:[#allocation2 + $0x610] sm:$0xf] }
 0x269   : > { %11883 = vmatprep.subr.bf16.mxu0 %v12893_v51  ;;  %11309 = vmatprep.mubr.bf16.mxu1 %v4388_v54  ;;  %v9317_v52 = vrot.slane %v9285_v45, 4  ;;  %v9318_v53 = vrot.slane %v9286_v46, 4  ;;  %v12908_v54 = vld [vmem:[#allocation4 + $0x438] sm:$0xff]   ;;  %v12918_v45 = vld [vmem:[#allocation4 + $0x460] sm:$0xff]  }
 0x26a   : > { %11885 = vmatprep.mubr.bf16.mxu0 %v9067_v55  ;;  %v4630_v55 = vld [vmem:[#allocation2 + $0x4a8] sm:$0xf0] }
 0x26b   : > { %11308 = vmatpush3.bf16.msra.mxu1 %v12892_v47  ;;  %v12907_v47 = vld [vmem:[#allocation4 + $0x8b0] sm:$0xff]   ;;  %v9319_v62 = vsel %vm542_vm2, %v9317_v52, %v9318_v53  ;;  %v4663_v63 = vrot.slane %v4630_v55, 4  ;;  %v9333_v52 = vrot.slane %v9296_v43, 4  ;;  %v9297_v53 = vld [vmem:[#allocation2 + $0x6c8] sm:$0xf0]  ;;  %v12919_v55 = vld [vmem:[#allocation4 + $0x8e0] sm:$0xff]  }
 0x26c   : > { %11884 = vmatpush3.bf16.msra.mxu0 %v12893_v51  ;;  %11325 = vmatprep.subr.bf16.mxu1 %v12894_v60  ;;  %v9074_v51 = vld [vmem:[#allocation2 + $0x6e0] sm:$0xff]  ;;  %v9335_v59 = vrot.slane %v9297_v53, 4  ;;  %v9562_v43 = vld [vmem:[#allocation2 + $0x678] sm:$0xff] }
 0x26d   : > { %11901 = vmatprep.subr.bf16.mxu0 %v12895_v61 }
 0x26e   : > { %11310 = vmatmul.mubr.bf16.vlgmr.msra.gmra.mrb[0].mxu1 %v4391_v0  ;;  %v4664_v0 = vrot.slane %v4631_v56, 4 }
 0x26f   : > { %11886 = vmatmul.mubr.bf16.vlgmr.msra.gmra.mrb[0].mxu0 %v9068_v1  ;;  %11326 = vmatpush3.bf16.msra.mxu1 %v12894_v60  ;;  %v4662_v60 = vsel %vm542_vm2, %v4660_v48, %v4661_v49  ;;  %v4632_v1 = vld [vmem:[#allocation2 + $0x4c8] sm:$0xf0]  ;;  %v4676_v48 = vrot.slane %v4639_v40, 4 }
 0x270   : > { %11902 = vmatpush3.bf16.msra.mxu0 %v12895_v61  ;;  %11327 = vmatprep.subr.bf16.mxu1 %v12896_v2  ;;  %v12910_v61 = vld [vmem:[#allocation4 + $0x440] sm:$0xff]   ;;  %v4666_v8 = vrot.slane %v4632_v1, 4  ;;  %v4665_v10 = vsel %vm542_vm2, %v4663_v63, %v4664_v0  ;;  %v4640_v49 = vld [vmem:[#allocation2 + $0x548] sm:$0xf0]  ;;  %v4643_v0 = vld [vmem:[#allocation2 + $0x570] sm:$0xf] }
 0x271   : > { %11903 = vmatprep.subr.bf16.mxu0 %v12897_v5  ;;  %11313 = vmatprep.mubr.bf16.mxu1 %v4394_v6  ;;  %v9290_v6 = vld [vmem:[#allocation2 + $0x650] sm:$0xf]  ;;  %v4678_v56 = vrot.slane %v4640_v49, 4  ;;  %v4642_v63 = vld [vmem:[#allocation2 + $0x568] sm:$0xf0] }
 0x272   : > { %11889 = vmatprep.mubr.bf16.mxu0 %v9069_v7  ;;  %v12911_v7 = vld [vmem:[#allocation4 + $0x8c0] sm:$0xff]   ;;  %v12921_v1 = vld [vmem:[#allocation4 + $0x8e8] sm:$0xff]   ;;  %v4915_v49 = vld [vmem:[#allocation2 + $0x558] sm:$0x3] }
 0x273   : > { %11328 = vmatpush3.bf16.msra.mxu1 %v12896_v2  ;;  %v4633_v2 = vld [vmem:[#allocation2 + $0x4d0] sm:$0xf]  ;;  %v4953_v53 = vrot.slane %v4915_v49, 2 }
 0x274   : > { %11904 = vmatpush3.bf16.msra.mxu0 %v12897_v5  ;;  %11329 = vmatprep.subr.bf16.mxu1 %v12898_v12  ;;  %v9289_v5 = vld [vmem:[#allocation2 + $0x648] sm:$0xf0]  ;;  %v4667_v9 = vrot.slane %v4633_v2, 4 }
 0x275   : > { %11905 = vmatprep.subr.bf16.mxu0 %v12899_v13  ;;  %v9323_v11 = vrot.slane %v9289_v5, 4  ;;  %v9299_v2 = vld [vmem:[#allocation2 + $0x6e8] sm:$0xf0] }
 0x276   : > { %11314 = vmatmul.mubr.bf16.gmra.mrb[4].mxu1 %v4397_v16  ;;  %v4635_v16 = vld [vmem:[#allocation2 + $0x4f0] sm:$0xf]  ;;  %v4668_v20 = vsel %vm542_vm2, %v4666_v8, %v4667_v9  ;;  %v4903_v9 = vld [vmem:[#allocation2 + $0x498] sm:$0x3] }
 0x277   : > { %11890 = vmatmul.mubr.bf16.gmra.mrb[4].mxu0 %v9070_v17  ;;  %11330 = vmatpush3.bf16.msra.mxu1 %v12898_v12  ;;  %v9324_v12 = vrot.slane %v9290_v6, 4  ;;  %v12913_v17 = vld [vmem:[#allocation4 + $0x8c8] sm:$0xff]   ;;  %v4670_v24 = vrot.slane %v4635_v16, 4  ;;  %v4681_v6 = vrot.slane %v4642_v63, 4  ;;  %v4902_v8 = vld [vmem:[#allocation2 + $0x490] sm:$0xfc] }
 0x278   : > { %11906 = vmatpush3.bf16.msra.mxu0 %v12899_v13  ;;  %11331 = vmatprep.subr.bf16.mxu1 %v12900_v18  ;;  %v9322_v13 = vsel %vm542_vm2, %v9320_v3, %v9321_v4  ;;  %v9300_v3 = vld [vmem:[#allocation2 + $0x6f0] sm:$0xf]  ;;  %v9566_v63 = vld [vmem:[#allocation2 + $0x6f8] sm:$0xff] }
 0x279   : > { %11907 = vmatprep.subr.bf16.mxu0 %v12901_v21  ;;  %11317 = vmatprep.mubr.bf16.mxu1 %v4400_v22  ;;  %v9325_v22 = vsel %vm542_vm2, %v9323_v11, %v9324_v12  ;;  %v9338_v11 = vrot.slane %v9299_v2, 4  ;;  %v9339_v12 = vrot.slane %v9300_v3, 4 }
 0x27a   : > { %11893 = vmatprep.mubr.bf16.mxu0 %v9071_v23  ;;  %v4669_v23 = vrot.slane %v4634_v15, 4  ;;  %v4935_v15 = vrot.slane %v4903_v9, 2 }
 0x27b   : > { %11332 = vmatpush3.bf16.msra.mxu1 %v12900_v18  ;;  %v9291_v18 = vld [vmem:[#allocation2 + $0x668] sm:$0xf0] }
 0x27c   : > { %11908 = vmatpush3.bf16.msra.mxu0 %v12901_v21  ;;  %11333 = vmatprep.subr.bf16.mxu1 %v12902_v28  ;;  %v12914_v21 = vld [vmem:[#allocation4 + $0x450] sm:$0xff]   ;;  %v9326_v27 = vrot.slane %v9291_v18, 4  ;;  %v12924_v18 = vld [vmem:[#allocation4 + $0x478] sm:$0xff]  }
 0x27d   : > { %11909 = vmatprep.subr.bf16.mxu0 %v12903_v29 }
 0x27e   : > { %11318 = vmatmul.mubr.bf16.gmra.mrb[8].mxu1 %v4403_v32  ;;  %v4672_v32 = vrot.slane %v4636_v25, 4  ;;  %v9559_v25 = vld [vmem:[#allocation2 + $0x618] sm:$0xff] }
 0x27f   : > { %11894 = vmatmul.mubr.bf16.gmra.mrb[8].mxu0 %v9072_v33  ;;  %11334 = vmatpush3.bf16.msra.mxu1 %v12902_v28  ;;  %v9327_v28 = vrot.slane %v9292_v19, 4  ;;  %v4673_v33 = vrot.slane %v4637_v26, 4  ;;  %v4904_v19 = vld [vmem:[#allocation2 + $0x4b0] sm:$0xfc] }
 0x280   : > { %11910 = vmatpush3.bf16.msra.mxu0 %v12903_v29  ;;  %11335 = vmatprep.subr.bf16.mxu1 %v12904_v34  ;;  %v9293_v29 = vld [vmem:[#allocation2 + $0x688] sm:$0xf0]  ;;  %v4937_v26 = vrot.slane %v4904_v19, 2 }
 0x281   : > { %11911 = vmatprep.subr.bf16.mxu0 %v12905_v37  ;;  %11321 = vmatprep.mubr.bf16.mxu1 %v4406_v38  ;;  %v9329_v35 = vrot.slane %v9293_v29, 4  ;;  %v12916_v38 = vld [vmem:[#allocation4 + $0x458] sm:$0xff]  }
 0x282   : > { %11897 = vmatprep.mubr.bf16.mxu0 %v9073_v39  ;;  %v4638_v39 = vld [vmem:[#allocation2 + $0x528] sm:$0xf0] }
 0x283   : > { %11336 = vmatpush3.bf16.msra.mxu1 %v12904_v34  ;;  %v4671_v34 = vsel %vm542_vm2, %v4669_v23, %v4670_v24  ;;  %v9331_v46 = vsel %vm542_vm2, %v9329_v35, %v9330_v36  ;;  %v4907_v23 = vld [vmem:[#allocation2 + $0x4d8] sm:$0x3]  ;;  %v4910_v36 = vld [vmem:[#allocation2 + $0x510] sm:$0xfc] }
 0x284   : > { %11912 = vmatpush3.bf16.msra.mxu0 %v12905_v37  ;;  %11337 = vmatprep.subr.bf16.mxu1 %v12906_v44  ;;  %v9328_v37 = vsel %vm542_vm2, %v9326_v27, %v9327_v28  ;;  %v4941_v29 = vrot.slane %v4907_v23, 2  ;;  %v9561_v35 = vld [vmem:[#allocation2 + $0x658] sm:$0xff]  ;;  %v4946_v40 = vrot.slane %v4910_v36, 2 }
 0x285   : > { %11913 = vmatprep.subr.bf16.mxu0 %v12907_v47 }
 0x286   : > { %11322 = vmatmul.mubr.bf16.gmra.mrb[12].mxu1 %v4409_v50  ;;  %v4641_v50 = vld [vmem:[#allocation2 + $0x550] sm:$0xf] }
 0x287   : > { %11898 = vmatmul.mubr.bf16.gmra.mrb[12].mxu0 %v9074_v51  ;;  %11338 = vmatpush3.bf16.msra.mxu1 %v12906_v44  ;;  %v4674_v44 = vsel %vm542_vm2, %v4672_v32, %v4673_v33  ;;  %v9332_v51 = vrot.slane %v9295_v42, 4  ;;  %v4908_v33 = vld [vmem:[#allocation2 + $0x4f0] sm:$0xfc] }
 0x288   : > { %11914 = vmatpush3.bf16.msra.mxu0 %v12907_v47  ;;  %11339 = vmatprep.subr.bf16.mxu1 %v12908_v54  ;;  %v4675_v47 = vrot.slane %v4638_v39, 4 }
 0x289   : > { %11915 = vmatprep.subr.bf16.mxu0 %v12909_v57  ;;  %11341 = vmatprep.mubr.bf16.mxu1 %v4662_v60 }
 0x28a   : > { %11917 = vmatprep.mubr.bf16.mxu0 %v9319_v62  ;;  %v4677_v58 = vsel %vm542_vm2, %v4675_v47, %v4676_v48  ;;  %v12920_v62 = vld [vmem:[#allocation4 + $0x468] sm:$0xff]   ;;  %v9563_v47 = vld [vmem:[#allocation2 + $0x698] sm:$0xff]  ;;  %v4914_v48 = vld [vmem:[#allocation2 + $0x550] sm:$0xfc] }
 0x28b   : > { %11340 = vmatpush3.bf16.msra.mxu1 %v12908_v54  ;;  %v9298_v54 = vld [vmem:[#allocation2 + $0x6d0] sm:$0xf] }
 0x28c   : > { %11916 = vmatpush3.bf16.msra.mxu0 %v12909_v57  ;;  %11357 = vmatprep.subr.bf16.mxu1 %v12910_v61  ;;  %v4679_v57 = vrot.slane %v4641_v50, 4  ;;  %v9336_v60 = vrot.slane %v9298_v54, 4 }
 0x28d   : > { %11933 = vmatprep.subr.bf16.mxu0 %v12911_v7 }
 0x28e   : > { %11342 = vmatmul.mubr.bf16.vlgmr.msra.gmra.mrb[0].mxu1 %v4665_v10  ;;  %v4680_v4 = vsel %vm542_vm2, %v4678_v56, %v4679_v57  ;;  %v9337_v5 = vsel %vm542_vm2, %v9335_v59, %v9336_v60  ;;  %v12922_v10 = vld [vmem:[#allocation4 + $0x470] sm:$0xff]   ;;  %v9565_v59 = vld [vmem:[#allocation2 + $0x6d8] sm:$0xff] }
 0x28f   : > { %11918 = vmatmul.mubr.bf16.vlgmr.msra.gmra.mrb[0].mxu0 %v9322_v13  ;;  %11358 = vmatpush3.bf16.msra.mxu1 %v12910_v61  ;;  %v9334_v61 = vsel %vm542_vm2, %v9332_v51, %v9333_v52  ;;  %v12923_v13 = vld [vmem:[#allocation4 + $0x8f0] sm:$0xff]   ;;  %v4952_v52 = vrot.slane %v4914_v48, 2 }
 0x290   : > { %11934 = vmatpush3.bf16.msra.mxu0 %v12911_v7  ;;  %11359 = vmatprep.subr.bf16.mxu1 %v12912_v14  ;;  %v4682_v7 = vrot.slane %v4643_v0, 4  ;;  %v4916_v57 = vld [vmem:[#allocation2 + $0x570] sm:$0xfc]  ;;  %v13535_v0 = vld [vmem:[#allocation7] ss:$0 sm:$0xff] }
 0x291   : > { %11935 = vmatprep.subr.bf16.mxu0 %v12913_v17  ;;  %11345 = vmatprep.mubr.bf16.mxu1 %v4668_v20  ;;  %v4905_v20 = vld [vmem:[#allocation2 + $0x4b8] sm:$0x3]  ;;  %v4954_v56 = vsel %vm3288_vm6, %v4952_v52, %v4953_v53  ;;  %v4955_v60 = vrot.slane %v4916_v57, 2 }
 0x292   : > { %11921 = vmatprep.mubr.bf16.mxu0 %v9325_v22  ;;  %v4683_v16 = vsel %vm542_vm2, %v4681_v6, %v4682_v7  ;;  %v4906_v22 = vld [vmem:[#allocation2 + $0x4d0] sm:$0xfc]  ;;  %v4938_v27 = vrot.slane %v4905_v20, 2 }
 0x293   : > { %11360 = vmatpush3.bf16.msra.mxu1 %v12912_v14  ;;  %v4934_v14 = vrot.slane %v4902_v8, 2  ;;  %v4940_v28 = vrot.slane %v4906_v22, 2 }
 0x294   : > { %11936 = vmatpush3.bf16.msra.mxu0 %v12913_v17  ;;  %11361 = vmatprep.subr.bf16.mxu1 %v12914_v21  ;;  %v9340_v17 = vsel %vm542_vm2, %v9338_v11, %v9339_v12  ;;  %v4939_v30 = vsel %vm3288_vm6, %v4937_v26, %v4938_v27 }
 0x295   : > { %11937 = vmatprep.subr.bf16.mxu0 %v12915_v31  ;;  %v4936_v24 = vsel %vm3288_vm6, %v4934_v14, %v4935_v15  ;;  %v4942_v32 = vsel %vm3288_vm6, %v4940_v28, %v4941_v29 }
 0x296   : > { %11346 = vmatmul.mubr.bf16.gmra.mrb[4].mxu1 %v4671_v34  ;;  %v4909_v34 = vld [vmem:[#allocation2 + $0x4f8] sm:$0x3] }
 0x297   : > { %11922 = vmatmul.mubr.bf16.gmra.mrb[4].mxu0 %v9328_v37  ;;  %11362 = vmatpush3.bf16.msra.mxu1 %v12914_v21  ;;  %v12925_v21 = vld [vmem:[#allocation4 + $0x8f8] sm:$0xff]   ;;  %v4944_v39 = vrot.slane %v4909_v34, 2 }
 0x298   : > { %11938 = vmatpush3.bf16.msra.mxu0 %v12915_v31  ;;  %11363 = vmatprep.subr.bf16.mxu1 %v12916_v38  ;;  %v9560_v31 = vld [vmem:[#allocation2 + $0x638] sm:$0xff] }
 0x299   : > { %11939 = vmatprep.subr.bf16.mxu0 %v12917_v41  ;;  %11349 = vmatprep.mubr.bf16.mxu1 %v4674_v44  ;;  %v4911_v37 = vld [vmem:[#allocation2 + $0x518] sm:$0x3] }
 0x29a   : > { %11925 = vmatprep.mubr.bf16.mxu0 %v9331_v46  ;;  %v4913_v46 = vld [vmem:[#allocation2 + $0x538] sm:$0x3] }
 0x29b   : > { %11364 = vmatpush3.bf16.msra.mxu1 %v12916_v38  ;;  %v4943_v38 = vrot.slane %v4908_v33, 2  ;;  %v4950_v51 = vrot.slane %v4913_v46, 2 }
 0x29c   : > { %11940 = vmatpush3.bf16.msra.mxu0 %v12917_v41  ;;  %11365 = vmatprep.subr.bf16.mxu1 %v12918_v45  ;;  %v4947_v41 = vrot.slane %v4911_v37, 2 }
 0x29d   : > { %11941 = vmatprep.subr.bf16.mxu0 %v12919_v55  ;;  %v4945_v42 = vsel %vm3288_vm6, %v4943_v38, %v4944_v39 }
 0x29e   : > { %11350 = vmatmul.mubr.bf16.gmra.mrb[8].mxu1 %v4677_v58  ;;  %v4948_v44 = vsel %vm3288_vm6, %v4946_v40, %v4947_v41  ;;  %v4917_v58 = vld [vmem:[#allocation2 + $0x578] sm:$0x3] }
 0x29f   : > { %11926 = vmatmul.mubr.bf16.gmra.mrb[8].mxu0 %v9334_v61  ;;  %11366 = vmatpush3.bf16.msra.mxu1 %v12918_v45  ;;  %v4912_v45 = vld [vmem:[#allocation2 + $0x530] sm:$0xfc]  ;;  %v4956_v61 = vrot.slane %v4917_v58, 2 }
 0x2a0   : > { %11942 = vmatpush3.bf16.msra.mxu0 %v12919_v55  ;;  %11367 = vmatprep.subr.bf16.mxu1 %v12920_v62  ;;  %v4949_v50 = vrot.slane %v4912_v45, 2  ;;  %v9564_v55 = vld [vmem:[#allocation2 + $0x6b8] sm:$0xff] }
 0x2a1   : > { %11943 = vmatprep.subr.bf16.mxu0 %v12921_v1  ;;  %11353 = vmatprep.mubr.bf16.mxu1 %v4680_v4 }
 0x2a2   : > { %11929 = vmatprep.mubr.bf16.mxu0 %v9337_v5  ;;  %v4951_v54 = vsel %vm3288_vm6, %v4949_v50, %v4950_v51 }
 0x2a3   : > { %11368 = vmatpush3.bf16.msra.mxu1 %v12920_v62  ;;  %v4957_v62 = vsel %vm3288_vm6, %v4955_v60, %v4956_v61 }
 0x2a4   : > { %11944 = vmatpush3.bf16.msra.mxu0 %v12921_v1  ;;  %11369 = vmatprep.subr.bf16.mxu1 %v12922_v10 }
 0x2a5   : > { %11945 = vmatprep.subr.bf16.mxu0 %v12923_v13 }
 0x2a6   : > { %11354 = vmatmul.mubr.bf16.gmra.mrb[12].mxu1 %v4683_v16 }
 0x2a7   : > { %11930 = vmatmul.mubr.bf16.gmra.mrb[12].mxu0 %v9340_v17  ;;  %11370 = vmatpush3.bf16.msra.mxu1 %v12922_v10 }
 0x2a8   : > { %11946 = vmatpush3.bf16.msra.mxu0 %v12923_v13  ;;  %11371 = vmatprep.subr.bf16.mxu1 %v12924_v18 }
 0x2a9   : > { %11947 = vmatprep.subr.bf16.mxu0 %v12925_v21  ;;  %11373 = vmatprep.mubr.bf16.mxu1 %v4936_v24 }
 0x2aa   : > { %11949 = vmatprep.mubr.bf16.mxu0 %v9559_v25 }
 0x2ab   : > { %11372 = vmatpush3.bf16.msra.mxu1 %v12924_v18 }
 0x2ac   : > { %11948 = vmatpush3.bf16.msra.mxu0 %v12925_v21 }
 0x2ae   : > { %11374 = vmatmul.mubr.bf16.vlgmr.msra.gmra.mrb[0].mxu1 %v4939_v30 }
 0x2af   : > { %11950 = vmatmul.mubr.bf16.vlgmr.msra.gmra.mrb[0].mxu0 %v9560_v31  ;;  %11377 = vmatprep.mubr.bf16.mxu1 %v4942_v32 }
 0x2b0   : > { %11953 = vmatprep.mubr.bf16.mxu0 %v9561_v35 }
 0x2b6   : > { %11378 = vmatmul.mubr.bf16.gmra.mrb[4].mxu1 %v4945_v42 }
 0x2b7   : > { %11954 = vmatmul.mubr.bf16.gmra.mrb[4].mxu0 %v9562_v43  ;;  %11381 = vmatprep.mubr.bf16.mxu1 %v4948_v44 }
 0x2b8   : > { %11957 = vmatprep.mubr.bf16.mxu0 %v9563_v47 }
 0x2be   : > { %11382 = vmatmul.mubr.bf16.gmra.mrb[8].mxu1 %v4951_v54 }
 0x2bf   : > { %11958 = vmatmul.mubr.bf16.gmra.mrb[8].mxu0 %v9564_v55  ;;  %11385 = vmatprep.mubr.bf16.mxu1 %v4954_v56 }
 0x2c0   : > { %11961 = vmatprep.mubr.bf16.mxu0 %v9565_v59 }
 0x2c6   : > { %11386 = vmatmul.mubr.bf16.gmra.mrb[12].mxu1 %v4957_v62 }
 0x2c7   : > { %11962 = vmatmul.mubr.bf16.gmra.mrb[12].mxu0 %v9566_v63 }
 0x381   : > { %v11375_v1 = vpop.f32.mrb[0].mxu1 }
 0x382   : > { %v11965_v2 = vadd.f32 %v11375_v1, %v13535_v0  ;;  %v11951_v3 = vpop.f32.mrb[0].mxu0  ;;  %v5081_v4 = vpop.f32.mrb[1].mxu1 }
 0x383   : > { %v11967_v5 = vadd.f32 %v13535_v0, %v5081_v4  ;;  %v9682_v6 = vpop.f32.mrb[1].mxu0  ;;  %v11376_v7 = vpop.f32.mrb[2].mxu1 }
 0x384   : > { %v11966_v8 = vadd.f32 %v11965_v2, %v11951_v3  ;;  %v11969_v9 = vadd.f32 %v11376_v7, %v13535_v0  ;;  %v11952_v10 = vpop.f32.mrb[2].mxu0  ;;  %v5084_v11 = vpop.f32.mrb[3].mxu1 }
 0x385   : > { %v11968_v12 = vadd.f32 %v11967_v5, %v9682_v6  ;;  %v11971_v13 = vadd.f32 %v13535_v0, %v5084_v11  ;;  %v9685_v14 = vpop.f32.mrb[3].mxu0 }
 0x386   : > { %9795 = vst [vmem:[%s13282_s6 + $0x10] sm:$0xff] %v11966_v8  ;;  %v11970_v15 = vadd.f32 %v11969_v9, %v11952_v10 }
 0x387   : > { %9793 = vst [vmem:[%s13282_s6] sm:$0xff] %v11968_v12  ;;  %v11972_v16 = vadd.f32 %v11971_v13, %v9685_v14 }
 0x388   : > { %9796 = vst [vmem:[%s13282_s6 + $0x18] sm:$0xff] %v11970_v15 }
 0x389   : > { %9794 = vst [vmem:[%s13282_s6 + $0x8] sm:$0xff] %v11972_v16  ;;  %v11379_v17 = vpop.f32.mrb[4].mxu1 }
 0x38a   : > { %v11973_v18 = vadd.f32 %v11379_v17, %v13535_v0  ;;  %v11955_v19 = vpop.f32.mrb[4].mxu0  ;;  %v5097_v20 = vpop.f32.mrb[5].mxu1 }
 0x38b   : > { %v11975_v21 = vadd.f32 %v13535_v0, %v5097_v20  ;;  %v9698_v22 = vpop.f32.mrb[5].mxu0  ;;  %v11380_v23 = vpop.f32.mrb[6].mxu1 }
 0x38c   : > { %v11974_v24 = vadd.f32 %v11973_v18, %v11955_v19  ;;  %v11977_v25 = vadd.f32 %v11380_v23, %v13535_v0  ;;  %v11956_v26 = vpop.f32.mrb[6].mxu0  ;;  %v5100_v27 = vpop.f32.mrb[7].mxu1 }
 0x38d   : > { %v11976_v28 = vadd.f32 %v11975_v21, %v9698_v22  ;;  %v11979_v29 = vadd.f32 %v13535_v0, %v5100_v27  ;;  %v9701_v30 = vpop.f32.mrb[7].mxu0 }
 0x38e   : > { %9799 = vst [vmem:[%s13282_s6 + $0x30] sm:$0xff] %v11974_v24  ;;  %v11978_v31 = vadd.f32 %v11977_v25, %v11956_v26 }
 0x38f   : > { %9797 = vst [vmem:[%s13282_s6 + $0x20] sm:$0xff] %v11976_v28  ;;  %v11980_v32 = vadd.f32 %v11979_v29, %v9701_v30 }
 0x390   : > { %9800 = vst [vmem:[%s13282_s6 + $0x38] sm:$0xff] %v11978_v31 }
 0x391   : > { %9798 = vst [vmem:[%s13282_s6 + $0x28] sm:$0xff] %v11980_v32  ;;  %v11383_v33 = vpop.f32.mrb[8].mxu1 }
 0x392   : > { %v11981_v34 = vadd.f32 %v11383_v33, %v13535_v0  ;;  %v11959_v35 = vpop.f32.mrb[8].mxu0  ;;  %v5113_v36 = vpop.f32.mrb[9].mxu1 }
 0x393   : > { %v11983_v37 = vadd.f32 %v13535_v0, %v5113_v36  ;;  %v9714_v38 = vpop.f32.mrb[9].mxu0  ;;  %v11384_v39 = vpop.f32.mrb[10].mxu1 }
 0x394   : > { %v11982_v40 = vadd.f32 %v11981_v34, %v11959_v35  ;;  %v11985_v41 = vadd.f32 %v11384_v39, %v13535_v0  ;;  %v11960_v42 = vpop.f32.mrb[10].mxu0  ;;  %v5116_v43 = vpop.f32.mrb[11].mxu1 }
 0x395   : > { %v11984_v44 = vadd.f32 %v11983_v37, %v9714_v38  ;;  %v11987_v45 = vadd.f32 %v13535_v0, %v5116_v43  ;;  %v9717_v46 = vpop.f32.mrb[11].mxu0 }
 0x396   : > { %9803 = vst [vmem:[%s13282_s6 + $0x50] sm:$0xff] %v11982_v40  ;;  %v11986_v47 = vadd.f32 %v11985_v41, %v11960_v42 }
 0x397   : > { %9801 = vst [vmem:[%s13282_s6 + $0x40] sm:$0xff] %v11984_v44  ;;  %v11988_v48 = vadd.f32 %v11987_v45, %v9717_v46 }
 0x398   : > { %9804 = vst [vmem:[%s13282_s6 + $0x58] sm:$0xff] %v11986_v47 }
 0x399   : > { %9802 = vst [vmem:[%s13282_s6 + $0x48] sm:$0xff] %v11988_v48  ;;  %v11387_v49 = vpop.f32.mrb[12].mxu1 }
 0x39a   : > { %v11989_v50 = vadd.f32 %v11387_v49, %v13535_v0  ;;  %v11963_v51 = vpop.f32.mrb[12].mxu0  ;;  %v5129_v52 = vpop.f32.mrb[13].mxu1 }
 0x39b   : > { %v11991_v53 = vadd.f32 %v13535_v0, %v5129_v52  ;;  %v9730_v54 = vpop.f32.mrb[13].mxu0  ;;  %v11388_v55 = vpop.f32.mrb[14].mxu1 }
 0x39c   : > { %v11990_v56 = vadd.f32 %v11989_v50, %v11963_v51  ;;  %v11993_v57 = vadd.f32 %v11388_v55, %v13535_v0  ;;  %v11964_v58 = vpop.f32.mrb[14].mxu0  ;;  %v5132_v59 = vpop.f32.mrb[15].mxu1 }
 0x39d   : > { %v11992_v60 = vadd.f32 %v11991_v53, %v9730_v54  ;;  %v11995_v61 = vadd.f32 %v13535_v0, %v5132_v59  ;;  %v9733_v62 = vpop.f32.mrb[15].mxu0 }
 0x39e   : > { %9807 = vst [vmem:[%s13282_s6 + $0x70] sm:$0xff] %v11990_v56  ;;  %v11994_v63 = vadd.f32 %v11993_v57, %v11964_v58 }
 0x39f   : > { %9805 = vst [vmem:[%s13282_s6 + $0x60] sm:$0xff] %v11992_v60  ;;  %v11996_v1 = vadd.f32 %v11995_v61, %v9733_v62 }
 0x3a0   : > { %9808 = vst [vmem:[%s13282_s6 + $0x78] sm:$0xff] %v11994_v63 }
 0x3a1   : > { %9806 = vst [vmem:[%s13282_s6 + $0x68] sm:$0xff] %v11996_v1 }
 0x3a2   : > { %13019 = shalt.err (!%p13016_p4)
}
 0x3a3   : > { %s13020_s22 = scalar_lea.hbm %s13572_s24, 2048  ;;  %s13024_s18 = scalar_lea.hbm %s13636_s3, 8192 }
 0x3a4   : > { %p13021_p5 = scmp.ne.s32.totalorder %s13572_s24, %s13020_s22  ;;  %p13025_p9 = scmp.lt.u32.totalorder %s13572_s24, %s13636_s3 }
 0x3a5   : > { %p13026_p11 = scmp.lt.u32.totalorder %s13024_s18, %s13020_s22  ;;  %p13028_p3 = scmp.lt.u32.totalorder %s13020_s22, %s13572_s24 }
 0x3a6   : > { %p13022_p6 = pnand %p13021_p5, %p13654_p8 }
 0x3a7   : > { %p13027_p13 = por %p13026_p11, %p13025_p9 }
 0x3a8   : > { %p13023_p7 = pneg %p13022_p6 }
 0x3a9   : > { %p13029_p0 = por %p13028_p3, %p13027_p13 }
 0x3ab   : > { %p13030_p2 = pnand %p13029_p0, %p13023_p7 }
 0x3ad   : > { %13033 = shalt.err (!%p13030_p2)
}
 0x3ae   : > { %s13118_s9 = smov 128   ;;  %s13119_s10 = smov 8  }
 0x3af   : > { %12549 = dma.vmem_to_hbm [thread:$0]  (%p13654_p8), %s13574_s16, 2048, %s13572_s24, %s13581_s25, %s13118_s9, %s13118_s9, %s13119_s10  }
 0x3b0 PF: > { %p12566_p10 = scmp.ge.s32.totalorder %s13110_s19, 2  ;;  %s9842_s11 = sand.u32 1, %s13082_s12  }
 0x3b1   : > { %p13655_p12 = scmp.ne.s32.totalorder %s13648_s27, 0  ;;  %s9843_s15 = scalar_lea.sflag [#allocation6], %s9842_s11 }
 0x3b3   : > { %p12559_p1 = pnand %p12566_p10, %p13655_p12 }
 0x3b5   : > { %13077 = dma.done.wait (!%p12559_p1), %s9843_s15, 2048  }
 0x3b6   : > { %13079 = vsyncadd (!%p12559_p1), %s9843_s15, 4294965248  ;;  %s18_s19 = sadd.s32 1, %s13110_s19   ;;  %s13656_s16 = sld [smem:[#allocation19_spill]] }
 0x3b7   : > { %p15_p4 = scmp.ge.s32.totalorder %s18_s19, 6   ;;  %s13657_s26 = sld [smem:[#allocation20_spill]] }
 0x3b8   : > { %s13658_s18 = sld [smem:[#allocation21_spill]]  ;;  %s13659_s12 = smov %s13086_s13 }
 0x3b9   : > { %s13660_s13 = smov %s13090_s14  ;;  %s13661_s14 = smov %s13219_s5 }
 0x3ba   : > { %s13662_s15 = smov %s13102_s17  ;;  %17 = sbr.rel (!%p15_p4) target bundleno = 7 (0x7), region = 120 }
 0x3bd   : > { %s13663_s17 = smov %s13657_s26 }
 0x3c1   :  { %9848 = vsyncpa [#allocation5], 1 }
 0x3c2   :  { %9850 = vsyncpa [#allocation5 + $0x1], 1 }
 0x3c3   :  { %9851 = vsyncpa [#allocation8], 1 }
 0x3c4   :  { %9852 = vsyncpa [#allocation6], 1 }
 0x3c5   :  { %9854 = vsyncpa [#allocation6 + $0x1], 1 }

</bundles_post_ra>
